<compile_context>
chip_gen: v7x
topology: tpu7x:2x2x1
jax: 0.10.0
libtpu: 0.0.40
codegen_flags: <defaults>
</compile_context>

<pallas_src>
import functools
import math

import jax
import jax.numpy as jnp
from jax.experimental import pallas as pl
from jax.experimental.pallas import tpu as pltpu

_COMPUTE_DTYPE = jnp.bfloat16


@functools.lru_cache(maxsize=None)
def _vmem_limit_bytes():
    """~80% of physical VMEM (51 MiB on v7x, 102 MiB on v5e/v6e)."""
    try:
        cap = int(pltpu.get_tpu_info().vmem_capacity_bytes)
        return int(cap * 0.8)
    except Exception:
        return 64 * 1024 * 1024  # conservative fallback


def _pick_row_tile(n, block_rows):
    """Largest multiple-of-8 row tile <= block_rows that divides n."""
    if n <= block_rows:
        return n
    tm = max(8, (block_rows // 8) * 8)
    while tm > 8 and n % tm:
        tm -= 8
    return tm if n % tm == 0 else n


def _fit_row_tile(n, block_rows, per_row_bytes, resident_bytes):
    """Shrink the row tile until the (double-buffered) working set fits VMEM."""
    budget = _vmem_limit_bytes()
    tm = _pick_row_tile(n, block_rows)
    while tm > 8 and resident_bytes + 2 * tm * per_row_bytes > budget:
        tm = _pick_row_tile(n, max(8, tm // 2))
    # TODO(synk): for graphs where even tm=8 stripes blow VMEM (n >> 100k),
    # add an adj-column (contraction) grid axis with an f32 accumulator.
    return tm


def _row_softmax(z):
    m = jnp.max(z, axis=-1, keepdims=True)
    e = jnp.exp(z - m)
    return e * pl.reciprocal(jnp.sum(e, axis=-1, keepdims=True), approx=True)


# ---------------------------------------------------------------------------
# Fully fused forward — one pallas_call, everything VMEM-resident.
# ---------------------------------------------------------------------------
def _dgcn_fused_kernel(alpha_ref, x_ref, adj_ref, k_ref, q_ref,
                       w1_ref, w2_ref, wl_ref, bl_ref, wg_ref, o_ref):
    cdt = _COMPUTE_DTYPE
    f32 = jnp.float32
    x = x_ref[...]
    adj = adj_ref[...]

    # gc1:  x1 = relu(adj @ (x @ W1)).  The adjacency matmul (K=n, N=h1) is the
    # FLOP-dominant, MXU-friendly op; the x@W1 matmul is tiny.
    s1 = jnp.dot(x, w1_ref[...], preferred_element_type=f32)
    x1 = jnp.maximum(jnp.dot(adj, s1.astype(cdt), preferred_element_type=f32), 0.0)

    # gc2:  x2 = softmax(adj @ (x1 @ W2), dim=-1)
    s2 = jnp.dot(x1.astype(cdt), w2_ref[...], preferred_element_type=f32)
    x2 = _row_softmax(jnp.dot(adj, s2.astype(cdt), preferred_element_type=f32))

    # wave_x = softmax(x @ W_lin + b, dim=-1)
    wave = _row_softmax(
        jnp.dot(x, wl_ref[...], preferred_element_type=f32) + bl_ref[...])

    # S = wave_x @ W_gcn ;  emb = x2 + (a*k + (1-a)*q) @ S
    s = jnp.dot(wave.astype(cdt), wg_ref[...], preferred_element_type=f32)
    a = alpha_ref[0]
    mix = (a * k_ref[...].astype(f32)
           + (1.0 - a) * q_ref[...].astype(f32)).astype(cdt)
    emb = x2 + jnp.dot(mix, s.astype(cdt), preferred_element_type=f32)
    o_ref[...] = emb.astype(o_ref.dtype)


def _dgcn_fused(alpha, x, adj, k, q, w1, w2, wl, bl, wg, *,
                out_dtype=jnp.float32):
    n, f_in = x.shape
    h1 = w1.shape[1]
    c = wg.shape[1]
    flops = int(2 * n * f_in * h1 + 2 * n * n * h1      # gc1
                + 2 * n * h1 * c + 2 * n * n * c        # gc2
                + 2 * n * f_in * c                      # lin
                + 2 * n * c * c + 2 * n * n * c         # gcn branch
                + 3 * n * n)                            # k/q mix
    bytes_accessed = int(2 * (3 * n * n + n * f_in + f_in * h1 + h1 * c
                              + f_in * c + c * c) + 4 * (c + n * c))
    vspec = pl.BlockSpec(memory_space=pltpu.MemorySpace.VMEM)
    sspec = pl.BlockSpec(memory_space=pltpu.MemorySpace.SMEM)
    return pl.pallas_call(
        _dgcn_fused_kernel,
        out_shape=jax.ShapeDtypeStruct((n, c), out_dtype),
        in_specs=[sspec] + [vspec] * 9,
        out_specs=vspec,
        compiler_params=pltpu.CompilerParams(
            vmem_limit_bytes=_vmem_limit_bytes()),
        cost_estimate=pl.CostEstimate(flops=flops, transcendentals=2 * n * c,
                                      bytes_accessed=bytes_accessed),
    )(alpha, x, adj, k, q, w1, w2, wl, bl, wg)


def _fused_fits(n, f_in, h1, c):
    """Conservative check that the single-call kernel fits the VMEM budget."""
    in_bytes = 2 * (3 * n * n + n * f_in + f_in * h1 + h1 * c + f_in * c + c * c)
    out_bytes = 4 * n * c
    temp_bytes = 4 * (4 * n * n + 8 * n * max(f_in, h1, c))  # f32 temporaries
    return in_bytes + out_bytes + temp_bytes < _vmem_limit_bytes() // 2


# ---------------------------------------------------------------------------
# Tiled path kernels (large graphs).  All grids are megacore-"parallel".
# ---------------------------------------------------------------------------
def _linear_softmax_kernel(x_ref, w_ref, b_ref, o_ref):
    acc = jnp.dot(x_ref[...], w_ref[...], preferred_element_type=jnp.float32)
    o_ref[...] = _row_softmax(acc + b_ref[...]).astype(o_ref.dtype)


def _linear_softmax(x, w, b, block_rows):
    n, f_in = x.shape
    c = w.shape[1]
    tm = _fit_row_tile(n, block_rows,
                       per_row_bytes=2 * (f_in + c),
                       resident_bytes=2 * f_in * c + 4 * c)
    cost = pl.CostEstimate(flops=int(2 * n * f_in * c), transcendentals=n * c,
                           bytes_accessed=int(2 * (n * f_in + f_in * c + n * c)))
    return pl.pallas_call(
        _linear_softmax_kernel,
        out_shape=jax.ShapeDtypeStruct((n, c), _COMPUTE_DTYPE),
        grid_spec=pltpu.PrefetchScalarGridSpec(
            num_scalar_prefetch=0,
            grid=(n // tm,),
            in_specs=[
                pl.BlockSpec((tm, f_in), lambda i: (i, 0)),
                pl.BlockSpec((f_in, c), lambda i: (0, 0)),
                pl.BlockSpec((1, c), lambda i: (0, 0)),
            ],
            out_specs=pl.BlockSpec((tm, c), lambda i: (i, 0)),
        ),
        compiler_params=pltpu.CompilerParams(
            dimension_semantics=("parallel",),
            vmem_limit_bytes=_vmem_limit_bytes()),
        cost_estimate=cost,
    )(x, w, b)


def _adj_relu_kernel(adj_ref, s_ref, o_ref):
    acc = jnp.dot(adj_ref[...], s_ref[...], preferred_element_type=jnp.float32)
    o_ref[...] = jnp.maximum(acc, 0.0).astype(o_ref.dtype)


def _adj_relu(adj, s, block_rows):
    """x1 = relu(adj @ S) with S = x @ W_gc1 resident in VMEM."""
    n = adj.shape[0]
    f = s.shape[1]
    tm = _fit_row_tile(n, block_rows,
                       per_row_bytes=2 * n + 2 * f,
                       resident_bytes=2 * n * f)
    cost = pl.CostEstimate(flops=int(2 * n * n * f), transcendentals=0,
                           bytes_accessed=int(2 * (n * n + 2 * n * f)))
    return pl.pallas_call(
        _adj_relu_kernel,
        out_shape=jax.ShapeDtypeStruct((n, f), _COMPUTE_DTYPE),
        grid_spec=pltpu.PrefetchScalarGridSpec(
            num_scalar_prefetch=0,
            grid=(n // tm,),
            in_specs=[
                pl.BlockSpec((tm, n), lambda i: (i, 0)),   # adj row stripe
                pl.BlockSpec((n, f), lambda i: (0, 0)),    # S (resident)
            ],
            out_specs=pl.BlockSpec((tm, f), lambda i: (i, 0)),
        ),
        compiler_params=pltpu.CompilerParams(
            dimension_semantics=("parallel",),
            vmem_limit_bytes=_vmem_limit_bytes()),
        cost_estimate=cost,
    )(adj, s)


def _gc2_blend_kernel(alpha_ref, adj_ref, k_ref, q_ref, s2_ref, sg_ref, o_ref):
    # x2 block = softmax(adj_blk @ S2); out block = x2 + (a*k + (1-a)*q)_blk @ Sg
    x2 = _row_softmax(
        jnp.dot(adj_ref[...], s2_ref[...], preferred_element_type=jnp.float32))
    a = alpha_ref[0]
    mix = (a * k_ref[...].astype(jnp.float32)
           + (1.0 - a) * q_ref[...].astype(jnp.float32)).astype(_COMPUTE_DTYPE)
    emb = x2 + jnp.dot(mix, sg_ref[...], preferred_element_type=jnp.float32)
    o_ref[...] = emb.astype(o_ref.dtype)


def _gc2_blend(alpha, adj, k, q, s2, sg, block_rows):
    n = adj.shape[0]
    c = s2.shape[1]
    tm = _fit_row_tile(n, block_rows,
                       per_row_bytes=3 * 2 * n + 4 * c,
                       resident_bytes=2 * 2 * n * c)
    cost = pl.CostEstimate(
        flops=int(4 * n * n * c + 3 * n * n + n * c),
        transcendentals=n * c,
        bytes_accessed=int(2 * (3 * n * n + 2 * n * c) + 4 * n * c))
    return pl.pallas_call(
        _gc2_blend_kernel,
        out_shape=jax.ShapeDtypeStruct((n, c), jnp.float32),
        grid_spec=pltpu.PrefetchScalarGridSpec(
            num_scalar_prefetch=0,
            grid=(n // tm,),
            in_specs=[
                pl.BlockSpec(memory_space=pltpu.MemorySpace.SMEM),  # sigmoid(apha)
                pl.BlockSpec((tm, n), lambda i: (i, 0)),            # adj stripe
                pl.BlockSpec((tm, n), lambda i: (i, 0)),            # k stripe
                pl.BlockSpec((tm, n), lambda i: (i, 0)),            # q stripe
                pl.BlockSpec((n, c), lambda i: (0, 0)),             # S2 (resident)
                pl.BlockSpec((n, c), lambda i: (0, 0)),             # Sg (resident)
            ],
            out_specs=pl.BlockSpec((tm, c), lambda i: (i, 0)),
        ),
        compiler_params=pltpu.CompilerParams(
            dimension_semantics=("parallel",),
            vmem_limit_bytes=_vmem_limit_bytes()),
        cost_estimate=cost,
    )(alpha, adj, k, q, s2, sg)


# ---------------------------------------------------------------------------
# DGCN forward (eval mode) and pure-JAX reference.
# ---------------------------------------------------------------------------
@functools.partial(jax.jit, static_argnames=("block_rows", "mode"))
def dgcn_forward(params, x, adj, k, q, *, block_rows=512, mode="auto"):
    # TODO(synk): dropout is identity here (training=False); training-mode
    # random masking is not implemented in the kernels.
    cdt = _COMPUTE_DTYPE
    x_c = x.astype(cdt)
    adj_c = adj.astype(cdt)   # no-op if caller already stores these in bf16
    k_c = k.astype(cdt)
    q_c = q.astype(cdt)
    w1 = params["gc1_w"].astype(cdt)
    w2 = params["gc2_w"].astype(cdt)
    wl = params["lin_w"].astype(cdt)
    bl = params["lin_b"].astype(jnp.float32).reshape(1, -1)
    wg = params["gcn_w"].astype(cdt)
    alpha = jax.nn.sigmoid(params["apha"].astype(jnp.float32)).reshape((1,))

    n, f_in = x.shape
    h1 = w1.shape[1]
    c = wg.shape[1]

    use_fused = (mode == "fused") or (mode == "auto" and _fused_fits(n, f_in, h1, c))
    if use_fused:
        return _dgcn_fused(alpha, x_c, adj_c, k_c, q_c, w1, w2, wl, bl, wg)

    # Tiled path for large graphs.  Small (n x f) support matmuls are left to
    # XLA (bf16 operands, f32 accumulation); adjacency-dominant work runs in
    # row-tiled, megacore-parallel Pallas kernels.
    s1 = jnp.dot(x_c, w1, preferred_element_type=jnp.float32).astype(cdt)
    x1 = _adj_relu(adj_c, s1, block_rows)                       # bf16
    s2 = jnp.dot(x1, w2, preferred_element_type=jnp.float32).astype(cdt)
    wave = _linear_softmax(x_c, wl, bl, block_rows)             # bf16
    sg = jnp.dot(wave, wg, preferred_element_type=jnp.float32).astype(cdt)
    return _gc2_blend(alpha, adj_c, k_c, q_c, s2, sg, block_rows)


def dgcn_reference(params, x, adj, k, q):
    x1 = jax.nn.relu(adj @ (x @ params["gc1_w"]))
    x2 = jax.nn.softmax(adj @ (x1 @ params["gc2_w"]), axis=-1)
    wave_x = jax.nn.softmax(x @ params["lin_w"] + params["lin_b"], axis=-1)
    a = jax.nn.sigmoid(params["apha"])
    s = wave_x @ params["gcn_w"]
    emb1 = x2 + k @ s
    emb2 = x2 + q @ s
    return a * emb1 + (1.0 - a) * emb2


def xavier_uniform(key, shape, dtype=jnp.float32):
    fan_in, fan_out = shape
    bound = math.sqrt(6.0 / (fan_in + fan_out))
    return jax.random.uniform(key, shape, dtype, minval=-bound, maxval=bound)


if __name__ == "__main__":
    # Small, tile-friendly shapes consistent with the DGCN module.
    N = 256        # graph nodes
    NFEAT = 64     # input features
    NHID1 = 128    # gc1 output
    NCLASS = 128   # gc2 / lin / gcn output (lane-dense)

    key = jax.random.PRNGKey(0)
    kx, ka, kk, kq, kw1, kw2, kw3, kw4, kb, kal = jax.random.split(key, 10)

    def normalized_adj(kr, n):
        a = (jax.random.uniform(kr, (n, n)) < 0.1).astype(jnp.float32)
        a = a + jnp.eye(n, dtype=jnp.float32)
        return a / jnp.sum(a, axis=1, keepdims=True)

    x = jax.random.normal(kx, (N, NFEAT), dtype=jnp.float32)
    adj = normalized_adj(ka, N)
    k_mat = normalized_adj(kk, N)     # DGCN's `k` diffusion matrix
    q_mat = normalized_adj(kq, N)     # DGCN's `q` diffusion matrix

    params = {
        "gc1_w": xavier_uniform(kw1, (NFEAT, NHID1)),
        "gc2_w": xavier_uniform(kw2, (NHID1, NCLASS)),
        "gcn_w": xavier_uniform(kw3, (NCLASS, NCLASS)),
        "lin_w": xavier_uniform(kw4, (NFEAT, NCLASS)),
        "lin_b": jax.random.uniform(kb, (NCLASS,), minval=-0.1, maxval=0.1),
        "apha": jax.random.normal(kal, (1,), dtype=jnp.float32),
    }

    # Store the reused n x n operands in bf16 ONCE, outside the jitted forward
    # (avoids a full f32->bf16 HBM pass over adj/k/q on every call).
    adj_c = adj.astype(_COMPUTE_DTYPE)
    k_c = k_mat.astype(_COMPUTE_DTYPE)
    q_c = q_mat.astype(_COMPUTE_DTYPE)

    ref = dgcn_reference(params, x, adj, k_mat, q_mat)

    # 1) auto mode -> fully fused single pallas_call at this size.
    out_fused = jax.block_until_ready(dgcn_forward(params, x, adj_c, k_c, q_c))
    assert out_fused.shape == (N, NCLASS)
    err_f = float(jnp.max(jnp.abs(out_fused - ref)))
    assert jnp.allclose(out_fused, ref, atol=2.5e-2, rtol=2.5e-2), \
        f"fused path max |err| = {err_f}"

    # 2) tiled path (forced, block_rows=128 -> multi-step parallel grids).
    out_tiled = jax.block_until_ready(
        dgcn_forward(params, x, adj_c, k_c, q_c, block_rows=128, mode="tiled"))
    err_t = float(jnp.max(jnp.abs(out_tiled - ref)))
    assert jnp.allclose(out_tiled, ref, atol=2.5e-2, rtol=2.5e-2), \
        f"tiled path max |err| = {err_t}"

    print("KERNEL_OK")
</pallas_src>

<mosaic_0001>
module attributes {stable_mosaic.version = 11 : i64} {
  func.func @_dgcn_fused_kernel(%arg0: memref<1xf32, #tpu.memory_space<smem>>, %arg1: memref<256x64xbf16, #tpu.memory_space<vmem>>, %arg2: memref<256x256xbf16, #tpu.memory_space<vmem>>, %arg3: memref<256x256xbf16, #tpu.memory_space<vmem>>, %arg4: memref<256x256xbf16, #tpu.memory_space<vmem>>, %arg5: memref<64x128xbf16, #tpu.memory_space<vmem>>, %arg6: memref<128x128xbf16, #tpu.memory_space<vmem>>, %arg7: memref<64x128xbf16, #tpu.memory_space<vmem>>, %arg8: memref<1x128xf32, #tpu.memory_space<vmem>>, %arg9: memref<128x128xbf16, #tpu.memory_space<vmem>>, %arg10: memref<256x128xf32, #tpu.memory_space<vmem>>) attributes {dimension_semantics = [], scalar_prefetch = 0 : i64, scratch_operands = 0 : i64, tpu.core_type = #tpu.core_type<tc>} {
    %c0 = arith.constant 0 : index
    %c0_0 = arith.constant 0 : index
    %0 = vector.load %arg1[%c0, %c0_0] : memref<256x64xbf16, #tpu.memory_space<vmem>>, vector<256x64xbf16>
    %c0_1 = arith.constant 0 : index
    %c0_2 = arith.constant 0 : index
    %1 = vector.load %arg2[%c0_1, %c0_2] : memref<256x256xbf16, #tpu.memory_space<vmem>>, vector<256x256xbf16>
    %c0_3 = arith.constant 0 : index
    %c0_4 = arith.constant 0 : index
    %2 = vector.load %arg5[%c0_3, %c0_4] : memref<64x128xbf16, #tpu.memory_space<vmem>>, vector<64x128xbf16>
    %cst = arith.constant dense<0.000000e+00> : vector<256x128xf32>
    %3 = tpu.matmul %0, %2, %cst {dimension_numbers = #tpu.dot_dimension_numbers<[1], [0], [0], [1], [0, 0, 1, 1], [], []>} : vector<256x64xbf16>, vector<64x128xbf16>, vector<256x128xf32> -> vector<256x128xf32>
    %4 = arith.truncf %3 : vector<256x128xf32> to vector<256x128xbf16>
    %cst_5 = arith.constant dense<0.000000e+00> : vector<256x128xf32>
    %5 = tpu.matmul %1, %4, %cst_5 {dimension_numbers = #tpu.dot_dimension_numbers<[1], [0], [0], [1], [0, 0, 1, 1], [], []>} : vector<256x256xbf16>, vector<256x128xbf16>, vector<256x128xf32> -> vector<256x128xf32>
    %cst_6 = arith.constant 0.000000e+00 : f32
    %6 = vector.broadcast %cst_6 : f32 to vector<256x128xf32>
    %7 = arith.maximumf %5, %6 : vector<256x128xf32>
    %8 = arith.truncf %7 : vector<256x128xf32> to vector<256x128xbf16>
    %c0_7 = arith.constant 0 : index
    %c0_8 = arith.constant 0 : index
    %9 = vector.load %arg6[%c0_7, %c0_8] : memref<128x128xbf16, #tpu.memory_space<vmem>>, vector<128x128xbf16>
    %cst_9 = arith.constant dense<0.000000e+00> : vector<256x128xf32>
    %10 = tpu.matmul %8, %9, %cst_9 {dimension_numbers = #tpu.dot_dimension_numbers<[1], [0], [0], [1], [0, 0, 1, 1], [], []>} : vector<256x128xbf16>, vector<128x128xbf16>, vector<256x128xf32> -> vector<256x128xf32>
    %11 = arith.truncf %10 : vector<256x128xf32> to vector<256x128xbf16>
    %cst_10 = arith.constant dense<0.000000e+00> : vector<256x128xf32>
    %12 = tpu.matmul %1, %11, %cst_10 {dimension_numbers = #tpu.dot_dimension_numbers<[1], [0], [0], [1], [0, 0, 1, 1], [], []>} : vector<256x256xbf16>, vector<256x128xbf16>, vector<256x128xf32> -> vector<256x128xf32>
    %cst_11 = arith.constant dense<0xFF800000> : vector<256xf32>
    %13 = vector.multi_reduction <maximumf>, %12, %cst_11 [1] : vector<256x128xf32> to vector<256xf32>
    %14 = vector.shape_cast %13 : vector<256xf32> to vector<256x1xf32>
    %15 = vector.broadcast %14 : vector<256x1xf32> to vector<256x128xf32>
    %16 = arith.subf %12, %15 : vector<256x128xf32>
    %17 = math.exp %16 : vector<256x128xf32>
    %cst_12 = arith.constant dense<0.000000e+00> : vector<256xf32>
    %18 = vector.multi_reduction <add>, %17, %cst_12 [1] : vector<256x128xf32> to vector<256xf32>
    %19 = vector.shape_cast %18 : vector<256xf32> to vector<256x1xf32>
    %20 = tpu.reciprocal %19 {approx = true} : vector<256x1xf32> -> vector<256x1xf32>
    %21 = vector.broadcast %20 : vector<256x1xf32> to vector<256x128xf32>
    %22 = arith.mulf %17, %21 : vector<256x128xf32>
    %c0_13 = arith.constant 0 : index
    %c0_14 = arith.constant 0 : index
    %23 = vector.load %arg7[%c0_13, %c0_14] : memref<64x128xbf16, #tpu.memory_space<vmem>>, vector<64x128xbf16>
    %cst_15 = arith.constant dense<0.000000e+00> : vector<256x128xf32>
    %24 = tpu.matmul %0, %23, %cst_15 {dimension_numbers = #tpu.dot_dimension_numbers<[1], [0], [0], [1], [0, 0, 1, 1], [], []>} : vector<256x64xbf16>, vector<64x128xbf16>, vector<256x128xf32> -> vector<256x128xf32>
    %c0_16 = arith.constant 0 : index
    %c0_17 = arith.constant 0 : index
    %25 = vector.load %arg8[%c0_16, %c0_17] : memref<1x128xf32, #tpu.memory_space<vmem>>, vector<1x128xf32>
    %26 = vector.broadcast %25 : vector<1x128xf32> to vector<256x128xf32>
    %27 = arith.addf %24, %26 : vector<256x128xf32>
    %cst_18 = arith.constant dense<0xFF800000> : vector<256xf32>
    %28 = vector.multi_reduction <maximumf>, %27, %cst_18 [1] : vector<256x128xf32> to vector<256xf32>
    %29 = vector.shape_cast %28 : vector<256xf32> to vector<256x1xf32>
    %30 = vector.broadcast %29 : vector<256x1xf32> to vector<256x128xf32>
    %31 = arith.subf %27, %30 : vector<256x128xf32>
    %32 = math.exp %31 : vector<256x128xf32>
    %cst_19 = arith.constant dense<0.000000e+00> : vector<256xf32>
    %33 = vector.multi_reduction <add>, %32, %cst_19 [1] : vector<256x128xf32> to vector<256xf32>
    %34 = vector.shape_cast %33 : vector<256xf32> to vector<256x1xf32>
    %35 = tpu.reciprocal %34 {approx = true} : vector<256x1xf32> -> vector<256x1xf32>
    %36 = vector.broadcast %35 : vector<256x1xf32> to vector<256x128xf32>
    %37 = arith.mulf %32, %36 : vector<256x128xf32>
    %38 = arith.truncf %37 : vector<256x128xf32> to vector<256x128xbf16>
    %c0_20 = arith.constant 0 : index
    %c0_21 = arith.constant 0 : index
    %39 = vector.load %arg9[%c0_20, %c0_21] : memref<128x128xbf16, #tpu.memory_space<vmem>>, vector<128x128xbf16>
    %cst_22 = arith.constant dense<0.000000e+00> : vector<256x128xf32>
    %40 = tpu.matmul %38, %39, %cst_22 {dimension_numbers = #tpu.dot_dimension_numbers<[1], [0], [0], [1], [0, 0, 1, 1], [], []>} : vector<256x128xbf16>, vector<128x128xbf16>, vector<256x128xf32> -> vector<256x128xf32>
    %c0_23 = arith.constant 0 : index
    %41 = memref.load %arg0[%c0_23] : memref<1xf32, #tpu.memory_space<smem>>
    %c0_24 = arith.constant 0 : index
    %c0_25 = arith.constant 0 : index
    %42 = vector.load %arg3[%c0_24, %c0_25] : memref<256x256xbf16, #tpu.memory_space<vmem>>, vector<256x256xbf16>
    %43 = arith.extf %42 : vector<256x256xbf16> to vector<256x256xf32>
    %44 = vector.broadcast %41 : f32 to vector<256x256xf32>
    %45 = arith.mulf %44, %43 : vector<256x256xf32>
    %cst_26 = arith.constant 1.000000e+00 : f32
    %46 = arith.subf %cst_26, %41 : f32
    %c0_27 = arith.constant 0 : index
    %c0_28 = arith.constant 0 : index
    %47 = vector.load %arg4[%c0_27, %c0_28] : memref<256x256xbf16, #tpu.memory_space<vmem>>, vector<256x256xbf16>
    %48 = arith.extf %47 : vector<256x256xbf16> to vector<256x256xf32>
    %49 = vector.broadcast %46 : f32 to vector<256x256xf32>
    %50 = arith.mulf %49, %48 : vector<256x256xf32>
    %51 = arith.addf %45, %50 : vector<256x256xf32>
    %52 = arith.truncf %51 : vector<256x256xf32> to vector<256x256xbf16>
    %53 = arith.truncf %40 : vector<256x128xf32> to vector<256x128xbf16>
    %cst_29 = arith.constant dense<0.000000e+00> : vector<256x128xf32>
    %54 = tpu.matmul %52, %53, %cst_29 {dimension_numbers = #tpu.dot_dimension_numbers<[1], [0], [0], [1], [0, 0, 1, 1], [], []>} : vector<256x256xbf16>, vector<256x128xbf16>, vector<256x128xf32> -> vector<256x128xf32>
    %55 = arith.addf %22, %54 : vector<256x128xf32>
    %c0_30 = arith.constant 0 : index
    %c0_31 = arith.constant 0 : index
    %56 = vector.load %arg10[%c0_30, %c0_31] : memref<256x128xf32, #tpu.memory_space<vmem>>, vector<256x128xf32>
    tpu.vector_store %arg10[%c0_30, %c0_31], %55 {strides = array<i32>} : memref<256x128xf32, #tpu.memory_space<vmem>>, vector<256x128xf32>,
    return
  }
}

</mosaic_0001>

<bundles_post_ra>
// kernel: dgcn_forward.1
= control target key start
LH: loop header
LB: loop body
LE: loop exit
PB: predicated region body
PF: predicated region fallthrough
CT: control target
= control target key end

     0   :  { %16 = vsyncpa [#allocation4], 0  ;;  %s5492_s0 = inlined_call_operand.<no memory space> [shape: f32[1], index: 0, kind: input, shape index: {}]   ;;  %s5493_s1 = inlined_call_operand.hbm [shape: bf16[256,64], index: 1, kind: input, shape index: {}]   ;;  %s5494_s2 = inlined_call_operand.hbm [shape: bf16[256,256], index: 2, kind: input, shape index: {}]   ;;  %s5495_s3 = inlined_call_operand.hbm [shape: bf16[256,256], index: 3, kind: input, shape index: {}]   ;;  %s5496_s4 = inlined_call_operand.hbm [shape: bf16[256,256], index: 4, kind: input, shape index: {}]   ;;  %s5497_s5 = inlined_call_operand.hbm [shape: bf16[64,128], index: 5, kind: input, shape index: {}]   ;;  %s5498_s6 = inlined_call_operand.hbm [shape: bf16[128,128], index: 6, kind: input, shape index: {}]   ;;  %s5499_s7 = inlined_call_operand.hbm [shape: bf16[64,128], index: 7, kind: input, shape index: {}]   ;;  %s5500_s8 = inlined_call_operand.hbm [shape: f32[1,128], index: 8, kind: input, shape index: {}]   ;;  %s5501_s9 = inlined_call_operand.hbm [shape: bf16[128,128], index: 9, kind: input, shape index: {}]   ;;  %s5502_s10 = inlined_call_operand.hbm [shape: f32[256,128], index: 10, kind: output, shape index: {}]  }
   0x1   :  { %17 = vsyncpa [#allocation7], 0 }
   0x2   :  { %18 = vsyncpa [#allocation10], 0 }
   0x3   :  { %19 = vsyncpa [#allocation13], 0 }
   0x4   :  { %20 = vsyncpa [#allocation16], 0 }
   0x5   :  { %21 = vsyncpa [#allocation5], 0  ;;  %s4346_s13 = smov [#allocation6]   ;;  %s4114_s17 = scalar_lea.hbm %s5494_s2, 4096 }
   0x6   :  { %s41_s14 = sshll.u32 %s4346_s13, 4  ;;  %p4115_p0 = scmp.ne.s32.totalorder %s5494_s2, %s4114_s17  ;;  %s42_s14 = int_to_ptr.vmem [resolvable:$true] %s41_s14 }
   0x7   :  { %p4118_p1 = scmp.lt.u32.totalorder %s4114_s17, %s5494_s2 }
   0x9   :  { %p4120_p2 = pnand %p4118_p1, %p4115_p0 }
   0xb   :  { %4123 = shalt.err (!%p4120_p2)
}
   0xc   :  { %s4124_s22 = scalar_lea.vmem %s42_s14, 4096  ;;  %p4129_p4 = scmp.lt.s32.totalorder %s42_s14, %s42_s14 }
   0xd   :  { %p4125_p3 = scmp.ne.s32.totalorder %s42_s14, %s4124_s22  ;;  %p4130_p5 = scmp.lt.s32.totalorder %s4124_s22, %s4124_s22 }
   0xf   :  { %p4131_p6 = por %p4130_p5, %p4129_p4 }
  0x11   :  { %p4132_p7 = pnand %p4131_p6, %p4125_p3 }
  0x13   :  { %4135 = shalt.err (!%p4132_p7)
}
  0x14   :  { %s4347_s23 = smov 128   ;;  %s4348_s24 = smov 8  }
  0x15   :  { %47 = dma.hbm_to_vmem [thread:$0]  %s5494_s2, 4096, %s42_s14, [#allocation7], %s4347_s23, %s4347_s23, %s4348_s24  }
  0x16   :  { %s4349_s27 = smov [#allocation9]   ;;  %s4136_s11 = scalar_lea.hbm %s5496_s4, 4096 }
  0x17   :  { %s65_s28 = sshll.u32 %s4349_s27, 4  ;;  %p4137_p8 = scmp.ne.s32.totalorder %s5496_s4, %s4136_s11  ;;  %s66_s28 = int_to_ptr.vmem [resolvable:$true] %s65_s28 }
  0x18   :  { %p4140_p9 = scmp.lt.u32.totalorder %s4136_s11, %s5496_s4 }
  0x1a   :  { %p4142_p10 = pnand %p4140_p9, %p4137_p8 }
  0x1c   :  { %4145 = shalt.err (!%p4142_p10)
}
  0x1d   :  { %s4146_s17 = scalar_lea.vmem %s66_s28, 4096  ;;  %p4151_p12 = scmp.lt.s32.totalorder %s66_s28, %s66_s28 }
  0x1e   :  { %p4147_p11 = scmp.ne.s32.totalorder %s66_s28, %s4146_s17  ;;  %p4152_p13 = scmp.lt.s32.totalorder %s4146_s17, %s4146_s17 }
  0x20   :  { %p4153_p0 = por %p4152_p13, %p4151_p12 }
  0x22   :  { %p4154_p1 = pnand %p4153_p0, %p4147_p11 }
  0x24   :  { %4157 = shalt.err (!%p4154_p1)
}
  0x25   :  { %71 = dma.hbm_to_vmem [thread:$0]  %s5496_s4, 4096, %s66_s28, [#allocation10], %s4347_s23, %s4347_s23, %s4348_s24  }
  0x26   :  { %s4350_s18 = smov [#allocation12]   ;;  %s4351_s20 = smov [#allocation15]  }
  0x27   :  { %s89_s19 = sshll.u32 %s4350_s18, 4  ;;  %s114_s21 = sshll.u32 %s4351_s20, 4  ;;  %s90_s19 = int_to_ptr.vmem [resolvable:$true] %s89_s19  ;;  %s4445_s21 = int_to_ptr.vmem [resolvable:$true] %s114_s21 }
  0x28   :  { %s4158_s26 = scalar_lea.hbm %s5498_s6, 1024 }
  0x29   :  { %p4159_p2 = scmp.ne.s32.totalorder %s5498_s6, %s4158_s26  ;;  %p4162_p3 = scmp.lt.u32.totalorder %s4158_s26, %s5498_s6 }
  0x2b   :  { %p4164_p4 = pnand %p4162_p3, %p4159_p2 }
  0x2d   :  { %4167 = shalt.err (!%p4164_p4)
}
  0x2e   :  { %s4168_s4 = scalar_lea.vmem %s90_s19, 1024  ;;  %p4173_p6 = scmp.lt.s32.totalorder %s90_s19, %s90_s19 }
  0x2f   :  { %p4169_p5 = scmp.ne.s32.totalorder %s90_s19, %s4168_s4  ;;  %p4174_p7 = scmp.lt.s32.totalorder %s4168_s4, %s4168_s4 }
  0x31   :  { %p4175_p8 = por %p4174_p7, %p4173_p6 }
  0x33   :  { %p4176_p9 = pnand %p4175_p8, %p4169_p5 }
  0x35   :  { %4179 = shalt.err (!%p4176_p9)
}
  0x36   :  { %s4352_s28 = smov 64   ;;  %s4353_s12 = smov 4  }
  0x37   :  { %95 = dma.hbm_to_vmem [thread:$0]  %s5498_s6, 1024, %s90_s19, [#allocation13], %s4352_s28, %s4352_s28, %s4353_s12  }
  0x38   :  { %s4180_s2 = scalar_lea.hbm %s5500_s8, 16 }
  0x39   :  { %p4181_p10 = scmp.ne.s32.totalorder %s5500_s8, %s4180_s2  ;;  %p4184_p11 = scmp.lt.u32.totalorder %s4180_s2, %s5500_s8 }
  0x3b   :  { %p4186_p12 = pnand %p4184_p11, %p4181_p10 }
  0x3d   :  { %4189 = shalt.err (!%p4186_p12)
}
  0x3e   :  { %s4190_s25 = scalar_lea.vmem %s4445_s21, 16  ;;  %s4194_s6 = scalar_lea.vmem %s4445_s21, 32 }
  0x3f   :  { %p4191_p13 = scmp.ne.s32.totalorder %s4445_s21, %s4190_s25  ;;  %p4195_p0 = scmp.lt.s32.totalorder %s4445_s21, %s4445_s21 }
  0x40   :  { %p4196_p1 = scmp.lt.s32.totalorder %s4194_s6, %s4190_s25 }
  0x42   :  { %p4197_p2 = por %p4196_p1, %p4195_p0 }
  0x44   :  { %p4198_p3 = pnand %p4197_p2, %p4191_p13 }
  0x46   :  { %4201 = shalt.err (!%p4198_p3)
}
  0x47   :  { %117 = dma.hbm_to_vmem [thread:$0]  %s5500_s8, 16, %s4445_s21, [#allocation16]  }
  0x48   :  { %s4354_s27 = smov [#allocation3]   ;;  %s4355_s30 = smov [#allocation8]  }
  0x49   :  { %s29_s29 = sshll.u32 %s4354_s27, 4  ;;  %s53_s11 = sshll.u32 %s4355_s30, 4  ;;  %s30_s29 = int_to_ptr.vmem [resolvable:$true] %s29_s29  ;;  %s4480_s11 = int_to_ptr.vmem [resolvable:$true] %s53_s11 }
  0x4a   :  { %s4202_s15 = scalar_lea.hbm %s5493_s1, 2048 }
  0x4b   :  { %p4203_p4 = scmp.ne.s32.totalorder %s5493_s1, %s4202_s15  ;;  %p4206_p5 = scmp.lt.u32.totalorder %s4202_s15, %s5493_s1 }
  0x4d   :  { %p4208_p6 = pnand %p4206_p5, %p4203_p4 }
  0x4f   :  { %4211 = shalt.err (!%p4208_p6)
}
  0x50   :  { %s4212_s8 = scalar_lea.vmem %s30_s29, 2048  ;;  %p4217_p8 = scmp.lt.s32.totalorder %s30_s29, %s30_s29 }
  0x51   :  { %p4213_p7 = scmp.ne.s32.totalorder %s30_s29, %s4212_s8  ;;  %p4218_p9 = scmp.lt.s32.totalorder %s4212_s8, %s4212_s8 }
  0x53   :  { %p4219_p10 = por %p4218_p9, %p4217_p8 }
  0x55   :  { %p4220_p11 = pnand %p4219_p10, %p4213_p7 }
  0x57   :  { %4223 = shalt.err (!%p4220_p11)
}
  0x58   :  { %35 = dma.hbm_to_vmem [thread:$0]  %s5493_s1, 2048, %s30_s29, [#allocation4], %s4352_s28, %s4352_s28, %s4353_s12  }
  0x59   :  { %s4224_s25 = scalar_lea.hbm %s5495_s3, 4096 }
  0x5a   :  { %p4225_p12 = scmp.ne.s32.totalorder %s5495_s3, %s4224_s25  ;;  %p4228_p13 = scmp.lt.u32.totalorder %s4224_s25, %s5495_s3 }
  0x5c   :  { %p4230_p0 = pnand %p4228_p13, %p4225_p12 }
  0x5e   :  { %4233 = shalt.err (!%p4230_p0)
}
  0x5f   :  { %s4234_s30 = scalar_lea.vmem %s4480_s11, 4096  ;;  %p4239_p2 = scmp.lt.s32.totalorder %s4480_s11, %s4480_s11 }
  0x60   :  { %p4235_p1 = scmp.ne.s32.totalorder %s4480_s11, %s4234_s30  ;;  %p4240_p3 = scmp.lt.s32.totalorder %s4234_s30, %s4234_s30 }
  0x62   :  { %p4241_p4 = por %p4240_p3, %p4239_p2 }
  0x64   :  { %p4242_p5 = pnand %p4241_p4, %p4235_p1 }
  0x66   :  { %4245 = shalt.err (!%p4242_p5)
}
  0x67   :  { %59 = dma.hbm_to_vmem [thread:$0]  %s5495_s3, 4096, %s4480_s11, [#allocation7], %s4347_s23, %s4347_s23, %s4348_s24  }
  0x68   :  { %s4356_s4 = smov [#allocation11]   ;;  %s4357_s15 = smov [#allocation14]  }
  0x69   :  { %s77_s13 = sshll.u32 %s4356_s4, 4  ;;  %s101_s16 = sshll.u32 %s4357_s15, 4  ;;  %s78_s13 = int_to_ptr.vmem [resolvable:$true] %s77_s13  ;;  %s4517_s16 = int_to_ptr.vmem [resolvable:$true] %s101_s16 }
  0x6a   :  { %s4246_s14 = scalar_lea.hbm %s5497_s5, 512 }
  0x6b   :  { %p4247_p6 = scmp.ne.s32.totalorder %s5497_s5, %s4246_s14  ;;  %p4250_p7 = scmp.lt.u32.totalorder %s4246_s14, %s5497_s5 }
  0x6d   :  { %p4252_p8 = pnand %p4250_p7, %p4247_p6 }
  0x6f   :  { %4255 = shalt.err (!%p4252_p8)
}
  0x70   :  { %s4256_s3 = scalar_lea.vmem %s78_s13, 512  ;;  %p4261_p10 = scmp.lt.s32.totalorder %s78_s13, %s78_s13 }
  0x71   :  { %p4257_p9 = scmp.ne.s32.totalorder %s78_s13, %s4256_s3  ;;  %p4262_p11 = scmp.lt.s32.totalorder %s4256_s3, %s4256_s3 }
  0x73   :  { %p4263_p12 = por %p4262_p11, %p4261_p10 }
  0x75   :  { %p4264_p13 = pnand %p4263_p12, %p4257_p9 }
  0x77   :  { %4267 = shalt.err (!%p4264_p13)
}
  0x78   :  { %83 = dma.hbm_to_vmem [thread:$0]  %s5497_s5, 512, %s78_s13, [#allocation10], %s4352_s28, %s4352_s28, %s4353_s12  }
  0x79   :  { %s4268_s19 = scalar_lea.hbm %s5499_s7, 512 }
  0x7a   :  { %p4269_p0 = scmp.ne.s32.totalorder %s5499_s7, %s4268_s19  ;;  %p4272_p1 = scmp.lt.u32.totalorder %s4268_s19, %s5499_s7 }
  0x7c   :  { %p4274_p2 = pnand %p4272_p1, %p4269_p0 }
  0x7e   :  { %4277 = shalt.err (!%p4274_p2)
}
  0x7f   :  { %s4278_s29 = scalar_lea.vmem %s4517_s16, 512  ;;  %p4283_p4 = scmp.lt.s32.totalorder %s4517_s16, %s4517_s16 }
  0x80   :  { %p4279_p3 = scmp.ne.s32.totalorder %s4517_s16, %s4278_s29  ;;  %p4284_p5 = scmp.lt.s32.totalorder %s4278_s29, %s4278_s29 }
  0x82   :  { %p4285_p6 = por %p4284_p5, %p4283_p4 }
  0x84   :  { %p4286_p7 = pnand %p4285_p6, %p4279_p3 }
  0x86   :  { %4289 = shalt.err (!%p4286_p7)
}
  0x87   :  { %107 = dma.hbm_to_vmem [thread:$0]  %s5499_s7, 512, %s4517_s16, [#allocation13], %s4352_s28, %s4352_s28, %s4353_s12  }
  0x88   :  { %s4358_s13 = smov [#allocation17]   ;;  %s4290_s14 = scalar_lea.hbm %s5501_s9, 1024 }
  0x89   :  { %s123_s15 = sshll.u32 %s4358_s13, 4  ;;  %p4291_p8 = scmp.ne.s32.totalorder %s5501_s9, %s4290_s14  ;;  %s124_s15 = int_to_ptr.vmem [resolvable:$true] %s123_s15 }
  0x8a   :  { %p4294_p9 = scmp.lt.u32.totalorder %s4290_s14, %s5501_s9 }
  0x8c   :  { %p4296_p10 = pnand %p4294_p9, %p4291_p8 }
  0x8e   :  { %4299 = shalt.err (!%p4296_p10)
}
  0x8f   :  { %s4300_s3 = scalar_lea.vmem %s124_s15, 1024  ;;  %p4305_p12 = scmp.lt.s32.totalorder %s124_s15, %s124_s15 }
  0x90   :  { %p4301_p11 = scmp.ne.s32.totalorder %s124_s15, %s4300_s3  ;;  %p4306_p13 = scmp.lt.s32.totalorder %s4300_s3, %s4300_s3 }
  0x92   :  { %p4307_p0 = por %p4306_p13, %p4305_p12 }
  0x94   :  { %p4308_p1 = pnand %p4307_p0, %p4301_p11 }
  0x96   :  { %4311 = shalt.err (!%p4308_p1)
}
  0x97   :  { %129 = dma.hbm_to_vmem [thread:$0]  %s5501_s9, 1024, %s124_s15, [#allocation16], %s4352_s28, %s4352_s28, %s4353_s12  }
  0x98   :  { %4334 = dma.done.wait [#allocation4], 2048  }
  0x99   :  { %4335 = vsyncadd [#allocation4], 4294965248 }
  0x9a   :  { %4336 = dma.done.wait [#allocation7], 8192  }
  0x9b   :  { %4337 = vsyncadd [#allocation7], 4294959104 }
  0x9c   :  { %4338 = dma.done.wait [#allocation10], 4608  }
  0x9d   :  { %4339 = vsyncadd [#allocation10], 4294962688 }
  0x9e   :  { %4340 = dma.done.wait [#allocation13], 1536  }
  0x9f   :  { %4341 = vsyncadd [#allocation13], 4294965760 }
  0xa0   :  { %4342 = dma.done.wait [#allocation16], 1040  }
  0xa1   :  { %4343 = vsyncadd [#allocation16], 4294966256  ;;  %v3765_v0 = vld [vmem:[#allocation11] sm:$0xff]   ;;  %v3766_v1 = vld [vmem:[#allocation11 + $0x8] sm:$0xff]   ;;  %vm334_vm0 = vcmask 523264   ;;  %s2510_s12 = ssub.f32 1.0, %s5492_s0 }
  0xa2   :  { %3559 = vmatprep.subr.bf16.mxu0 %v3765_v0  ;;  %v3767_v2 = vld [vmem:[#allocation11 + $0x10] sm:$0xff]   ;;  %v3769_v3 = vld [vmem:[#allocation3] sm:$0xff]   ;;  %v3768_v4 = vld [vmem:[#allocation11 + $0x18] sm:$0xff]  }
  0xa3   :  { %3560 = vmatpush3.bf16.msra.mxu0 %v3765_v0  ;;  %3567 = vmatprep.mubr.msk.bf16.mxu0 %vm334_vm0, %v3769_v3  ;;  %v3770_v5 = vld [vmem:[#allocation3 + $0x8] sm:$0xff]   ;;  %v3771_v6 = vld [vmem:[#allocation3 + $0x10] sm:$0xff]   ;;  %v3772_v7 = vld [vmem:[#allocation3 + $0x18] sm:$0xff]  }
  0xa4   :  { %3561 = vmatprep.subr.bf16.mxu0 %v3766_v1  ;;  %v3773_v8 = vld [vmem:[#allocation3 + $0x20] sm:$0xff]   ;;  %v4574_v9 = vld [vmem:[#allocation3 + $0x28] sm:$0xff]   ;;  %v4576_v10 = vld [vmem:[#allocation3 + $0x30] sm:$0xff]  }
  0xa5   :  { %v4582_v11 = vld [vmem:[#allocation3 + $0x38] sm:$0xff]   ;;  %v4584_v12 = vld [vmem:[#allocation3 + $0x40] sm:$0xff]   ;;  %v4590_v13 = vld [vmem:[#allocation3 + $0x48] sm:$0xff]  }
  0xa6   :  { %v4592_v14 = vld [vmem:[#allocation3 + $0x50] sm:$0xff]   ;;  %v4598_v15 = vld [vmem:[#allocation3 + $0x58] sm:$0xff]   ;;  %v4600_v16 = vld [vmem:[#allocation3 + $0x60] sm:$0xff]  }
  0xa7   :  { %3562 = vmatpush3.bf16.msra.mxu0 %v3766_v1  ;;  %v4606_v17 = vld [vmem:[#allocation3 + $0x68] sm:$0xff]   ;;  %v4608_v18 = vld [vmem:[#allocation3 + $0x70] sm:$0xff]   ;;  %v4614_v19 = vld [vmem:[#allocation3 + $0x78] sm:$0xff]  }
  0xa8   :  { %3563 = vmatprep.subr.bf16.mxu0 %v3767_v2  ;;  %5525 = vst [vmem:[#allocation25_spill] sm:$0xff] %v4608_v18  ;;  %5526 = vst [vmem:[#allocation26_spill] sm:$0xff] %v4614_v19  ;;  %v4618_v20 = vld [vmem:[#allocation6 + $0x4] ss:$8 sps:$4 sm:$0xff]  }
  0xa9   :  { %752 = vmatprep.mubr.bf16.mxu1 %v4618_v20 }
  0xab   :  { %3564 = vmatpush3.bf16.msra.mxu0 %v3767_v2 }
  0xac   :  { %3565 = vmatprep.subr.bf16.mxu0 %v3768_v4 }
  0xaf   :  { %3566 = vmatpush3.bf16.msra.mxu0 %v3768_v4 }
  0xb2   :  { %3568 = vmatmul.mubr.msk.bf16.vlgmr.msra.gmra.mrb[0].mxu0 %vm334_vm0, %v3770_v5  ;;  %v3833_v5 = vld [vmem:[#allocation12] sm:$0xff]  }
  0xb3   :  { %3571 = vmatprep.mubr.msk.bf16.mxu0 %vm334_vm0, %v3771_v6  ;;  %v3834_v6 = vld [vmem:[#allocation12 + $0x8] sm:$0xff]   ;;  %3599 = vmatprep.subr.bf16.mxu0 %v3833_v5 }
  0xb4   :  { %3600 = vmatpush3.bf16.msra.mxu0 %v3833_v5 }
  0xb5   :  { %3601 = vmatprep.subr.bf16.mxu0 %v3834_v6 }
  0xb8   :  { %3602 = vmatpush3.bf16.msra.mxu0 %v3834_v6 }
  0xba   :  { %3572 = vmatmul.mubr.msk.bf16.gmra.mrb[4].mxu0 %vm334_vm0, %v3772_v7  ;;  %v4621_v7 = vld [vmem:[#allocation6] ss:$8 sps:$4 sm:$0xff]  }
  0xbb   :  { %3575 = vmatprep.mubr.msk.bf16.mxu0 %vm334_vm0, %v3773_v8  ;;  %v3835_v8 = vld [vmem:[#allocation12 + $0x10] sm:$0xff]  }
  0xbc   :  { %3603 = vmatprep.subr.bf16.mxu0 %v3835_v8 }
  0xbd   :  { %3604 = vmatpush3.bf16.msra.mxu0 %v3835_v8 }
  0xc2   :  { %3576 = vmatmul.mubr.msk.bf16.gmra.mrb[8].mxu0 %vm334_vm0, %v4574_v9 }
  0xc3   :  { %3579 = vmatprep.mubr.msk.bf16.mxu0 %vm334_vm0, %v4576_v10 }
  0xca   :  { %3580 = vmatmul.mubr.msk.bf16.gmra.mrb[12].mxu0 %vm334_vm0, %v4582_v11 }
  0xcb   :  { %3583 = vmatprep.mubr.msk.bf16.mxu0 %vm334_vm0, %v4584_v12 }
  0xd2   :  { %3584 = vmatmul.mubr.msk.bf16.gmra.mrb[16].mxu0 %vm334_vm0, %v4590_v13 }
  0xd3   :  { %3587 = vmatprep.mubr.msk.bf16.mxu0 %vm334_vm0, %v4592_v14 }
  0xda   :  { %3588 = vmatmul.mubr.msk.bf16.gmra.mrb[20].mxu0 %vm334_vm0, %v4598_v15 }
  0xdb   :  { %3591 = vmatprep.mubr.msk.bf16.mxu0 %vm334_vm0, %v4600_v16 }
  0xe2   :  { %3592 = vmatmul.mubr.msk.bf16.gmra.mrb[24].mxu0 %vm334_vm0, %v4606_v17 }
  0xe3   :  { %3595 = vmatprep.mubr.msk.bf16.mxu0 %vm334_vm0, %v4608_v18 }
  0xea   :  { %3596 = vmatmul.mubr.msk.bf16.gmra.mrb[28].mxu0 %vm334_vm0, %v4614_v19 }
 0x185   :  { %v3569_v21 = vpop.f32.mrb[0].mxu0 }
 0x186   :  { %v417_v22 = vpop.f32.mrb[1].mxu0 }
 0x187   :  { %v3570_v23 = vpop.f32.mrb[2].mxu0 }
 0x188   :  { %v545_v24 = vpack.c.bf16 %v3570_v23, %v3569_v21  ;;  %v420_v25 = vpop.f32.mrb[3].mxu0  ;;  %v4623_v21 = vld [vmem:[#allocation6 + $0x14] ss:$8 sps:$4 sm:$0xff]   ;;  %v4627_v23 = vld [vmem:[#allocation6 + $0x10] ss:$8 sps:$4 sm:$0xff]  }
 0x189   :  { %v544_v26 = vpack.c.bf16 %v420_v25, %v417_v22  ;;  %v3836_v22 = vld [vmem:[#allocation12 + $0x18] sm:$0xff]   ;;  %v4633_v25 = vld [vmem:[#allocation6 + $0x20] ss:$8 sps:$4 sm:$0xff]  }
 0x18a   :  { %3605 = vmatprep.subr.bf16.mxu0 %v3836_v22 }
 0x18b   :  { %3606 = vmatpush3.bf16.msra.mxu0 %v3836_v22 }
 0x18d   :  { %v3573_v27 = vpop.f32.mrb[4].mxu0 }
 0x18e   :  { %v433_v28 = vpop.f32.mrb[5].mxu0 }
 0x18f   :  { %v3574_v29 = vpop.f32.mrb[6].mxu0 }
 0x190   :  { %v547_v30 = vpack.c.bf16 %v3574_v29, %v3573_v27  ;;  %v436_v31 = vpop.f32.mrb[7].mxu0  ;;  %v4639_v27 = vld [vmem:[#allocation6 + $0x30] ss:$8 sps:$4 sm:$0xff]   ;;  %v4645_v29 = vld [vmem:[#allocation6 + $0x40] ss:$8 sps:$4 sm:$0xff]  }
 0x191   :  { %v546_v32 = vpack.c.bf16 %v436_v31, %v433_v28  ;;  %v4641_v28 = vld [vmem:[#allocation6 + $0x44] ss:$8 sps:$4 sm:$0xff]   ;;  %v4651_v31 = vld [vmem:[#allocation6 + $0x50] ss:$8 sps:$4 sm:$0xff]  }
 0x195   :  { %v3577_v33 = vpop.f32.mrb[8].mxu0 }
 0x196   :  { %v449_v34 = vpop.f32.mrb[9].mxu0 }
 0x197   :  { %v3578_v35 = vpop.f32.mrb[10].mxu0 }
 0x198   :  { %v549_v36 = vpack.c.bf16 %v3578_v35, %v3577_v33  ;;  %v452_v37 = vpop.f32.mrb[11].mxu0  ;;  %v4657_v33 = vld [vmem:[#allocation6 + $0x60] ss:$8 sps:$4 sm:$0xff]   ;;  %v4663_v35 = vld [vmem:[#allocation6 + $0x70] ss:$8 sps:$4 sm:$0xff]  }
 0x199   :  { %v548_v38 = vpack.c.bf16 %v452_v37, %v449_v34  ;;  %v4659_v34 = vld [vmem:[#allocation6 + $0x74] ss:$8 sps:$4 sm:$0xff]   ;;  %v4669_v37 = vld [vmem:[#allocation6 + $0x80] ss:$8 sps:$4 sm:$0xff]  }
 0x19d   :  { %v3581_v39 = vpop.f32.mrb[12].mxu0 }
 0x19e   :  { %v465_v40 = vpop.f32.mrb[13].mxu0 }
 0x19f   :  { %v3582_v41 = vpop.f32.mrb[14].mxu0 }
 0x1a0   :  { %v551_v42 = vpack.c.bf16 %v3582_v41, %v3581_v39  ;;  %v468_v43 = vpop.f32.mrb[15].mxu0  ;;  %v4672_v39 = vld [vmem:[#allocation6 + $0x90] ss:$8 sps:$4 sm:$0xff]   ;;  %v4678_v41 = vld [vmem:[#allocation6 + $0xa0] ss:$8 sps:$4 sm:$0xff]  }
 0x1a1   :  { %v550_v44 = vpack.c.bf16 %v468_v43, %v465_v40  ;;  %v4674_v40 = vld [vmem:[#allocation6 + $0xa4] ss:$8 sps:$4 sm:$0xff]  }
 0x1a2   :  { %v3837_v43 = vld [vmem:[#allocation12 + $0x20] sm:$0xff]  }
 0x1a3   :  { %3607 = vmatprep.subr.bf16.mxu0 %v3837_v43 }
 0x1a4   :  { %3608 = vmatpush3.bf16.msra.mxu0 %v3837_v43 }
 0x1a5   :  { %v3585_v45 = vpop.f32.mrb[16].mxu0 }
 0x1a6   :  { %v481_v46 = vpop.f32.mrb[17].mxu0 }
 0x1a7   :  { %v3586_v47 = vpop.f32.mrb[18].mxu0 }
 0x1a8   :  { %v553_v48 = vpack.c.bf16 %v3586_v47, %v3585_v45  ;;  %v484_v49 = vpop.f32.mrb[19].mxu0  ;;  %v4686_v45 = vld [vmem:[#allocation6 + $0xc4] ss:$8 sps:$4 sm:$0xff]   ;;  %v3839_v47 = vld [vmem:[#allocation12 + $0x30] sm:$0xff]  }
 0x1a9   :  { %v552_v50 = vpack.c.bf16 %v484_v49, %v481_v46  ;;  %v3838_v46 = vld [vmem:[#allocation12 + $0x28] sm:$0xff]   ;;  %v4692_v49 = vld [vmem:[#allocation6 + $0xd4] ss:$8 sps:$4 sm:$0xff]  }
 0x1aa   :  { %3609 = vmatprep.subr.bf16.mxu0 %v3838_v46 }
 0x1ab   :  { %3155 = vmatprep.subr.bf16.mxu1 %v552_v50  ;;  %3610 = vmatpush3.bf16.msra.mxu0 %v3838_v46  ;;  %v3840_v50 = vld [vmem:[#allocation12 + $0x38] sm:$0xff]  }
 0x1ac   :  { %3156 = vmatpush3.bf16.msra.mxu1 %v544_v26  ;;  %v4635_v26 = vld [vmem:[#allocation6 + $0x34] ss:$8 sps:$4 sm:$0xff]   ;;  %3611 = vmatprep.subr.bf16.mxu0 %v3839_v47 }
 0x1ad   :  { %v3589_v51 = vpop.f32.mrb[20].mxu0  ;;  %3157 = vmatprep.subr.bf16.mxu1 %v553_v48  ;;  %v4690_v48 = vld [vmem:[#allocation6 + $0xc0] ss:$8 sps:$4 sm:$0xff]  }
 0x1ae   :  { %v497_v52 = vpop.f32.mrb[21].mxu0 }
 0x1af   :  { %v3590_v53 = vpop.f32.mrb[22].mxu0  ;;  %3612 = vmatpush3.bf16.msra.mxu0 %v3839_v47 }
 0x1b0   :  { %v555_v54 = vpack.c.bf16 %v3590_v53, %v3589_v51  ;;  %v500_v55 = vpop.f32.mrb[23].mxu0  ;;  %3158 = vmatpush3.bf16.msra.mxu1 %v545_v24  ;;  %v4629_v24 = vld [vmem:[#allocation6 + $0x24] ss:$8 sps:$4 sm:$0xff]   ;;  %3613 = vmatprep.subr.bf16.mxu0 %v3840_v50  ;;  %v4696_v51 = vld [vmem:[#allocation6 + $0xd0] ss:$8 sps:$4 sm:$0xff]  }
 0x1b1   :  { %v554_v56 = vpack.c.bf16 %v500_v55, %v497_v52  ;;  %v4698_v52 = vld [vmem:[#allocation6 + $0xe4] ss:$8 sps:$4 sm:$0xff]   ;;  %v4702_v53 = vld [vmem:[#allocation6 + $0xe0] ss:$8 sps:$4 sm:$0xff]   ;;  %v4708_v55 = vld [vmem:[#allocation6 + $0xf0] ss:$8 sps:$4 sm:$0xff]  }
 0x1b3   :  { %3159 = vmatprep.subr.bf16.mxu1 %v554_v56  ;;  %3614 = vmatpush3.bf16.msra.mxu0 %v3840_v50 }
 0x1b4   :  { %3160 = vmatpush3.bf16.msra.mxu1 %v546_v32  ;;  %v4653_v32 = vld [vmem:[#allocation6 + $0x64] ss:$8 sps:$4 sm:$0xff]  }
 0x1b5   :  { %v3593_v57 = vpop.f32.mrb[24].mxu0  ;;  %3161 = vmatprep.subr.bf16.mxu1 %v555_v54  ;;  %v4704_v54 = vld [vmem:[#allocation6 + $0xf4] ss:$8 sps:$4 sm:$0xff]  }
 0x1b6   :  { %v513_v58 = vpop.f32.mrb[25].mxu0 }
 0x1b7   :  { %v3594_v59 = vpop.f32.mrb[26].mxu0 }
 0x1b8   :  { %v557_v60 = vpack.c.bf16 %v3594_v59, %v3593_v57  ;;  %v516_v61 = vpop.f32.mrb[27].mxu0  ;;  %3162 = vmatpush3.bf16.msra.mxu1 %v547_v30  ;;  %v4647_v30 = vld [vmem:[#allocation6 + $0x54] ss:$8 sps:$4 sm:$0xff]  }
 0x1b9   :  { %v556_v62 = vpack.c.bf16 %v516_v61, %v513_v58 }
 0x1bb   :  { %3163 = vmatprep.subr.bf16.mxu1 %v556_v62 }
 0x1bc   :  { %3164 = vmatpush3.bf16.msra.mxu1 %v548_v38  ;;  %v3812_v38 = vld [vmem:[#allocation6 + $0x94] ss:$8 sps:$4 sm:$0xff]  }
 0x1bd   :  { %v3597_v63 = vpop.f32.mrb[28].mxu0  ;;  %3165 = vmatprep.subr.bf16.mxu1 %v557_v60 }
 0x1be   :  { %v529_v0 = vpop.f32.mrb[29].mxu0 }
 0x1bf   :  { %v3598_v1 = vpop.f32.mrb[30].mxu0 }
 0x1c0   :  { %v559_v2 = vpack.c.bf16 %v3598_v1, %v3597_v63  ;;  %v532_v3 = vpop.f32.mrb[31].mxu0  ;;  %3166 = vmatpush3.bf16.msra.mxu1 %v549_v36  ;;  %v4665_v36 = vld [vmem:[#allocation6 + $0x84] ss:$8 sps:$4 sm:$0xff]  }
 0x1c1   :  { %v558_v4 = vpack.c.bf16 %v532_v3, %v529_v0 }
 0x1c3   :  { %3167 = vmatprep.subr.bf16.mxu1 %v558_v4 }
 0x1c4   :  { %3168 = vmatpush3.bf16.msra.mxu1 %v550_v44  ;;  %v4684_v44 = vld [vmem:[#allocation6 + $0xb0] ss:$8 sps:$4 sm:$0xff]  }
 0x1c5   :  { %3169 = vmatprep.subr.bf16.mxu1 %v559_v2 }
 0x1c8   :  { %3170 = vmatpush3.bf16.msra.mxu1 %v551_v42  ;;  %v4680_v42 = vld [vmem:[#allocation6 + $0xb4] ss:$8 sps:$4 sm:$0xff]  }
 0x1cb   :  { %753 = vmatmul.mubr.bf16.vlgmr.msra.gmra.mrb[0].mxu1 %v4621_v7 }
 0x1cc   :  { %760 = vmatprep.mubr.bf16.mxu1 %v4623_v21 }
 0x1d3   :  { %761 = vmatmul.mubr.bf16.gmra.mrb[4].mxu1 %v4627_v23 }
 0x1d4   :  { %768 = vmatprep.mubr.bf16.mxu1 %v4629_v24 }
 0x1db   :  { %769 = vmatmul.mubr.bf16.gmra.mrb[8].mxu1 %v4633_v25 }
 0x1dc   :  { %776 = vmatprep.mubr.bf16.mxu1 %v4635_v26 }
 0x1e3   :  { %777 = vmatmul.mubr.bf16.gmra.mrb[12].mxu1 %v4639_v27 }
 0x1e4   :  { %784 = vmatprep.mubr.bf16.mxu1 %v4641_v28 }
 0x1eb   :  { %785 = vmatmul.mubr.bf16.gmra.mrb[16].mxu1 %v4645_v29 }
 0x1ec   :  { %792 = vmatprep.mubr.bf16.mxu1 %v4647_v30 }
 0x1f3   :  { %793 = vmatmul.mubr.bf16.gmra.mrb[20].mxu1 %v4651_v31 }
 0x1f4   :  { %800 = vmatprep.mubr.bf16.mxu1 %v4653_v32 }
 0x1fb   :  { %801 = vmatmul.mubr.bf16.gmra.mrb[24].mxu1 %v4657_v33 }
 0x1fc   :  { %808 = vmatprep.mubr.bf16.mxu1 %v4659_v34 }
 0x203   :  { %809 = vmatmul.mubr.bf16.gmra.mrb[28].mxu1 %v4663_v35 }
 0x204   :  { %816 = vmatprep.mubr.bf16.mxu1 %v4665_v36 }
 0x20b   :  { %817 = vmatmul.mubr.bf16.gmra.mrb[32].mxu1 %v4669_v37 }
 0x20c   :  { %824 = vmatprep.mubr.bf16.mxu1 %v3812_v38 }
 0x213   :  { %825 = vmatmul.mubr.bf16.gmra.mrb[36].mxu1 %v4672_v39 }
 0x214   :  { %832 = vmatprep.mubr.bf16.mxu1 %v4674_v40 }
 0x21b   :  { %833 = vmatmul.mubr.bf16.gmra.mrb[40].mxu1 %v4678_v41 }
 0x21c   :  { %840 = vmatprep.mubr.bf16.mxu1 %v4680_v42 }
 0x223   :  { %841 = vmatmul.mubr.bf16.gmra.mrb[44].mxu1 %v4684_v44 }
 0x224   :  { %848 = vmatprep.mubr.bf16.mxu1 %v4686_v45 }
 0x22b   :  { %849 = vmatmul.mubr.bf16.gmra.mrb[48].mxu1 %v4690_v48 }
 0x22c   :  { %856 = vmatprep.mubr.bf16.mxu1 %v4692_v49 }
 0x233   :  { %857 = vmatmul.mubr.bf16.gmra.mrb[52].mxu1 %v4696_v51 }
 0x234   :  { %864 = vmatprep.mubr.bf16.mxu1 %v4698_v52 }
 0x23b   :  { %865 = vmatmul.mubr.bf16.gmra.mrb[56].mxu1 %v4702_v53 }
 0x23c   :  { %872 = vmatprep.mubr.bf16.mxu1 %v4704_v54 }
 0x243   :  { %873 = vmatmul.mubr.bf16.gmra.mrb[60].mxu1 %v4708_v55 }
 0x244   :  { %1274 = vmatprep.mubr.bf16.mxu1 %v3812_v38 }
 0x29e   :  { %v3171_v56 = vpop.f32.mrb[0].mxu1 }
 0x29f   :  { %v3172_v57 = vpop.f32.mrb[1].mxu1 }
 0x2a0   :  { %v3173_v58 = vadd.f32 %v3172_v57, %v3171_v56  ;;  %v3174_v59 = vpop.f32.mrb[2].mxu1 }
 0x2a1   :  { %v3175_v60 = vpop.f32.mrb[3].mxu1 }
 0x2a2   :  { %v3176_v61 = vadd.f32 %v3175_v60, %v3174_v59  ;;  %v881_v62 = vmax.f32 %v3173_v58, 0.0 }
 0x2a4   :  { %v882_v63 = vmax.f32 %v3176_v61, 0.0 }
 0x2a6   :  { %v913_v0 = vpack.c.bf16 %v882_v63, %v881_v62  ;;  %v3177_v1 = vpop.f32.mrb[4].mxu1 }
 0x2a7   :  { %v3178_v2 = vpop.f32.mrb[5].mxu1 }
 0x2a8   :  { %v3179_v3 = vadd.f32 %v3178_v2, %v3177_v1  ;;  %v3180_v4 = vpop.f32.mrb[6].mxu1  ;;  %3615 = vmatprep.mubr.bf16.mxu0 %v913_v0 }
 0x2a9   :  { %v3181_v5 = vpop.f32.mrb[7].mxu1 }
 0x2aa   :  { %v3182_v6 = vadd.f32 %v3181_v5, %v3180_v4  ;;  %v883_v8 = vmax.f32 %v3179_v3, 0.0 }
 0x2ac   :  { %v884_v22 = vmax.f32 %v3182_v6, 0.0 }
 0x2ae   :  { %v914_v43 = vpack.c.bf16 %v884_v22, %v883_v8  ;;  %v3183_v38 = vpop.f32.mrb[8].mxu1 }
 0x2af   :  { %v3184_v46 = vpop.f32.mrb[9].mxu1 }
 0x2b0   :  { %v3185_v47 = vadd.f32 %v3184_v46, %v3183_v38  ;;  %v3186_v50 = vpop.f32.mrb[10].mxu1  ;;  %3616 = vmatmul.mubr.bf16.vlgmr.msra.gmra.mrb[32].mxu0 %v914_v43 }
 0x2b1   :  { %v3187_v56 = vpop.f32.mrb[11].mxu1 }
 0x2b2   :  { %v3188_v57 = vadd.f32 %v3187_v56, %v3186_v50  ;;  %v885_v58 = vmax.f32 %v3185_v47, 0.0 }
 0x2b4   :  { %v886_v59 = vmax.f32 %v3188_v57, 0.0 }
 0x2b6   :  { %v915_v60 = vpack.c.bf16 %v886_v59, %v885_v58  ;;  %v3189_v61 = vpop.f32.mrb[12].mxu1 }
 0x2b7   :  { %v3190_v62 = vpop.f32.mrb[13].mxu1 }
 0x2b8   :  { %v3191_v63 = vadd.f32 %v3190_v62, %v3189_v61  ;;  %v3192_v1 = vpop.f32.mrb[14].mxu1  ;;  %3619 = vmatprep.mubr.bf16.mxu0 %v915_v60 }
 0x2b9   :  { %v3193_v0 = vpop.f32.mrb[15].mxu1 }
 0x2ba   :  { %v3194_v2 = vadd.f32 %v3193_v0, %v3192_v1  ;;  %v887_v3 = vmax.f32 %v3191_v63, 0.0 }
 0x2bc   :  { %v888_v4 = vmax.f32 %v3194_v2, 0.0 }
 0x2be   :  { %v916_v5 = vpack.c.bf16 %v888_v4, %v887_v3  ;;  %v3195_v6 = vpop.f32.mrb[16].mxu1 }
 0x2bf   :  { %v3196_v8 = vpop.f32.mrb[17].mxu1 }
 0x2c0   :  { %v3197_v22 = vadd.f32 %v3196_v8, %v3195_v6  ;;  %v3198_v38 = vpop.f32.mrb[18].mxu1  ;;  %3620 = vmatmul.mubr.bf16.gmra.mrb[36].mxu0 %v916_v5 }
 0x2c1   :  { %v3199_v43 = vpop.f32.mrb[19].mxu1 }
 0x2c2   :  { %v3200_v46 = vadd.f32 %v3199_v43, %v3198_v38  ;;  %v889_v47 = vmax.f32 %v3197_v22, 0.0 }
 0x2c4   :  { %v890_v50 = vmax.f32 %v3200_v46, 0.0 }
 0x2c6   :  { %v917_v56 = vpack.c.bf16 %v890_v50, %v889_v47  ;;  %v3201_v57 = vpop.f32.mrb[20].mxu1 }
 0x2c7   :  { %v3202_v58 = vpop.f32.mrb[21].mxu1 }
 0x2c8   :  { %v3203_v59 = vadd.f32 %v3202_v58, %v3201_v57  ;;  %v3204_v61 = vpop.f32.mrb[22].mxu1  ;;  %3623 = vmatprep.mubr.bf16.mxu0 %v917_v56 }
 0x2c9   :  { %v3205_v60 = vpop.f32.mrb[23].mxu1 }
 0x2ca   :  { %v3206_v62 = vadd.f32 %v3205_v60, %v3204_v61  ;;  %v891_v63 = vmax.f32 %v3203_v59, 0.0 }
 0x2cc   :  { %v892_v1 = vmax.f32 %v3206_v62, 0.0 }
 0x2ce   :  { %v918_v0 = vpack.c.bf16 %v892_v1, %v891_v63  ;;  %v3207_v2 = vpop.f32.mrb[24].mxu1 }
 0x2cf   :  { %v3208_v3 = vpop.f32.mrb[25].mxu1 }
 0x2d0   :  { %v3209_v4 = vadd.f32 %v3208_v3, %v3207_v2  ;;  %v3210_v6 = vpop.f32.mrb[26].mxu1  ;;  %3624 = vmatmul.mubr.bf16.gmra.mrb[40].mxu0 %v918_v0 }
 0x2d1   :  { %v3211_v5 = vpop.f32.mrb[27].mxu1 }
 0x2d2   :  { %v3212_v8 = vadd.f32 %v3211_v5, %v3210_v6  ;;  %v893_v22 = vmax.f32 %v3209_v4, 0.0 }
 0x2d4   :  { %v894_v38 = vmax.f32 %v3212_v8, 0.0 }
 0x2d6   :  { %v919_v43 = vpack.c.bf16 %v894_v38, %v893_v22  ;;  %v3213_v46 = vpop.f32.mrb[28].mxu1 }
 0x2d7   :  { %v3214_v47 = vpop.f32.mrb[29].mxu1 }
 0x2d8   :  { %v3215_v50 = vadd.f32 %v3214_v47, %v3213_v46  ;;  %v3216_v57 = vpop.f32.mrb[30].mxu1  ;;  %3627 = vmatprep.mubr.bf16.mxu0 %v919_v43 }
 0x2d9   :  { %v3217_v56 = vpop.f32.mrb[31].mxu1 }
 0x2da   :  { %v3218_v58 = vadd.f32 %v3217_v56, %v3216_v57  ;;  %v895_v59 = vmax.f32 %v3215_v50, 0.0 }
 0x2dc   :  { %v896_v61 = vmax.f32 %v3218_v58, 0.0 }
 0x2de   :  { %v920_v60 = vpack.c.bf16 %v896_v61, %v895_v59  ;;  %v3219_v62 = vpop.f32.mrb[32].mxu1 }
 0x2df   :  { %v3220_v63 = vpop.f32.mrb[33].mxu1 }
 0x2e0   :  { %v3221_v1 = vadd.f32 %v3220_v63, %v3219_v62  ;;  %v3222_v2 = vpop.f32.mrb[34].mxu1  ;;  %3628 = vmatmul.mubr.bf16.gmra.mrb[44].mxu0 %v920_v60 }
 0x2e1   :  { %v3223_v0 = vpop.f32.mrb[35].mxu1 }
 0x2e2   :  { %v3224_v3 = vadd.f32 %v3223_v0, %v3222_v2  ;;  %v897_v4 = vmax.f32 %v3221_v1, 0.0 }
 0x2e4   :  { %v898_v6 = vmax.f32 %v3224_v3, 0.0 }
 0x2e6   :  { %v921_v5 = vpack.c.bf16 %v898_v6, %v897_v4  ;;  %v3225_v8 = vpop.f32.mrb[36].mxu1 }
 0x2e7   :  { %v3226_v22 = vpop.f32.mrb[37].mxu1 }
 0x2e8   :  { %v3227_v38 = vadd.f32 %v3226_v22, %v3225_v8  ;;  %v3228_v46 = vpop.f32.mrb[38].mxu1  ;;  %3631 = vmatprep.mubr.bf16.mxu0 %v921_v5 }
 0x2e9   :  { %v3229_v43 = vpop.f32.mrb[39].mxu1 }
 0x2ea   :  { %v3230_v47 = vadd.f32 %v3229_v43, %v3228_v46  ;;  %v899_v50 = vmax.f32 %v3227_v38, 0.0 }
 0x2ec   :  { %v900_v57 = vmax.f32 %v3230_v47, 0.0 }
 0x2ee   :  { %v922_v56 = vpack.c.bf16 %v900_v57, %v899_v50  ;;  %v3231_v58 = vpop.f32.mrb[40].mxu1 }
 0x2ef   :  { %v3232_v59 = vpop.f32.mrb[41].mxu1 }
 0x2f0   :  { %3632 = vmatmul.mubr.bf16.gmra.mrb[48].mxu0 %v922_v56  ;;  %v3233_v61 = vadd.f32 %v3232_v59, %v3231_v58  ;;  %v3234_v60 = vpop.f32.mrb[42].mxu1 }
 0x2f1   :  { %v3235_v62 = vpop.f32.mrb[43].mxu1 }
 0x2f2   :  { %v3236_v63 = vadd.f32 %v3235_v62, %v3234_v60  ;;  %v901_v1 = vmax.f32 %v3233_v61, 0.0 }
 0x2f4   :  { %v902_v2 = vmax.f32 %v3236_v63, 0.0 }
 0x2f6   :  { %v923_v0 = vpack.c.bf16 %v902_v2, %v901_v1  ;;  %v3237_v3 = vpop.f32.mrb[44].mxu1 }
 0x2f7   :  { %v3238_v4 = vpop.f32.mrb[45].mxu1 }
 0x2f8   :  { %v3239_v6 = vadd.f32 %v3238_v4, %v3237_v3  ;;  %v3240_v8 = vpop.f32.mrb[46].mxu1  ;;  %3635 = vmatprep.mubr.bf16.mxu0 %v923_v0 }
 0x2f9   :  { %v3241_v5 = vpop.f32.mrb[47].mxu1 }
 0x2fa   :  { %v3242_v22 = vadd.f32 %v3241_v5, %v3240_v8  ;;  %v903_v38 = vmax.f32 %v3239_v6, 0.0 }
 0x2fc   :  { %v904_v46 = vmax.f32 %v3242_v22, 0.0 }
 0x2fe   :  { %v924_v43 = vpack.c.bf16 %v904_v46, %v903_v38  ;;  %v3243_v47 = vpop.f32.mrb[48].mxu1 }
 0x2ff   :  { %v3244_v50 = vpop.f32.mrb[49].mxu1 }
 0x300   :  { %3636 = vmatmul.mubr.bf16.gmra.mrb[52].mxu0 %v924_v43  ;;  %v3245_v57 = vadd.f32 %v3244_v50, %v3243_v47  ;;  %v3246_v56 = vpop.f32.mrb[50].mxu1 }
 0x301   :  { %v3247_v58 = vpop.f32.mrb[51].mxu1 }
 0x302   :  { %v3248_v59 = vadd.f32 %v3247_v58, %v3246_v56  ;;  %v905_v61 = vmax.f32 %v3245_v57, 0.0 }
 0x304   :  { %v906_v60 = vmax.f32 %v3248_v59, 0.0 }
 0x306   :  { %v925_v62 = vpack.c.bf16 %v906_v60, %v905_v61  ;;  %v3249_v63 = vpop.f32.mrb[52].mxu1 }
 0x307   :  { %v3250_v1 = vpop.f32.mrb[53].mxu1 }
 0x308   :  { %v3251_v2 = vadd.f32 %v3250_v1, %v3249_v63  ;;  %v3252_v3 = vpop.f32.mrb[54].mxu1  ;;  %3639 = vmatprep.mubr.bf16.mxu0 %v925_v62 }
 0x309   :  { %v3253_v0 = vpop.f32.mrb[55].mxu1 }
 0x30a   :  { %v3254_v4 = vadd.f32 %v3253_v0, %v3252_v3  ;;  %v907_v6 = vmax.f32 %v3251_v2, 0.0 }
 0x30c   :  { %v908_v8 = vmax.f32 %v3254_v4, 0.0 }
 0x30e   :  { %v926_v5 = vpack.c.bf16 %v908_v8, %v907_v6  ;;  %v3255_v22 = vpop.f32.mrb[56].mxu1 }
 0x30f   :  { %v3256_v38 = vpop.f32.mrb[57].mxu1 }
 0x310   :  { %3640 = vmatmul.mubr.bf16.gmra.mrb[56].mxu0 %v926_v5  ;;  %v3257_v46 = vadd.f32 %v3256_v38, %v3255_v22  ;;  %v3258_v43 = vpop.f32.mrb[58].mxu1 }
 0x311   :  { %v3259_v47 = vpop.f32.mrb[59].mxu1 }
 0x312   :  { %v3260_v50 = vadd.f32 %v3259_v47, %v3258_v43  ;;  %v909_v57 = vmax.f32 %v3257_v46, 0.0 }
 0x314   :  { %v910_v56 = vmax.f32 %v3260_v50, 0.0 }
 0x316   :  { %v927_v58 = vpack.c.bf16 %v910_v56, %v909_v57  ;;  %v3261_v59 = vpop.f32.mrb[60].mxu1 }
 0x317   :  { %v3262_v61 = vpop.f32.mrb[61].mxu1 }
 0x318   :  { %v3263_v60 = vadd.f32 %v3262_v61, %v3261_v59  ;;  %v3264_v63 = vpop.f32.mrb[62].mxu1  ;;  %3643 = vmatprep.mubr.bf16.mxu0 %v927_v58 }
 0x319   :  { %v3265_v62 = vpop.f32.mrb[63].mxu1 }
 0x31a   :  { %v3266_v1 = vadd.f32 %v3265_v62, %v3264_v63  ;;  %v911_v2 = vmax.f32 %v3263_v60, 0.0 }
 0x31c   :  { %v912_v3 = vmax.f32 %v3266_v1, 0.0 }
 0x31e   :  { %v928_v0 = vpack.c.bf16 %v912_v3, %v911_v2 }
 0x320   :  { %3644 = vmatmul.mubr.bf16.gmra.mrb[60].mxu0 %v928_v0 }
 0x321   :  { %1202 = vmatprep.mubr.bf16.mxu0 %v4618_v20 }
 0x383   :  { %v3617_v4 = vpop.f32.mrb[32].mxu0 }
 0x384   :  { %v1027_v6 = vpop.f32.mrb[33].mxu0 }
 0x385   :  { %v3618_v8 = vpop.f32.mrb[34].mxu0 }
 0x386   :  { %v1155_v5 = vpack.c.bf16 %v3618_v8, %v3617_v4  ;;  %v1030_v22 = vpop.f32.mrb[35].mxu0 }
 0x387   :  { %v1154_v38 = vpack.c.bf16 %v1030_v22, %v1027_v6 }
 0x393   :  { %v3621_v46 = vpop.f32.mrb[36].mxu0 }
 0x394   :  { %v1043_v43 = vpop.f32.mrb[37].mxu0 }
 0x395   :  { %v3622_v47 = vpop.f32.mrb[38].mxu0 }
 0x396   :  { %v1157_v50 = vpack.c.bf16 %v3622_v47, %v3621_v46  ;;  %v1046_v57 = vpop.f32.mrb[39].mxu0 }
 0x397   :  { %v1156_v56 = vpack.c.bf16 %v1046_v57, %v1043_v43 }
 0x3a3   :  { %v3625_v58 = vpop.f32.mrb[40].mxu0 }
 0x3a4   :  { %v1059_v59 = vpop.f32.mrb[41].mxu0 }
 0x3a5   :  { %v3626_v61 = vpop.f32.mrb[42].mxu0 }
 0x3a6   :  { %v1159_v60 = vpack.c.bf16 %v3626_v61, %v3625_v58  ;;  %v1062_v63 = vpop.f32.mrb[43].mxu0 }
 0x3a7   :  { %v1158_v62 = vpack.c.bf16 %v1062_v63, %v1059_v59 }
 0x3b3   :  { %v3629_v1 = vpop.f32.mrb[44].mxu0 }
 0x3b4   :  { %v1075_v20 = vpop.f32.mrb[45].mxu0 }
 0x3b5   :  { %v3630_v2 = vpop.f32.mrb[46].mxu0 }
 0x3b6   :  { %v1161_v3 = vpack.c.bf16 %v3630_v2, %v3629_v1  ;;  %v1078_v0 = vpop.f32.mrb[47].mxu0 }
 0x3b7   :  { %v1160_v4 = vpack.c.bf16 %v1078_v0, %v1075_v20 }
 0x3c3   :  { %v3633_v8 = vpop.f32.mrb[48].mxu0 }
 0x3c4   :  { %v1091_v6 = vpop.f32.mrb[49].mxu0 }
 0x3c5   :  { %v3634_v22 = vpop.f32.mrb[50].mxu0 }
 0x3c6   :  { %v1163_v19 = vpack.c.bf16 %v3634_v22, %v3633_v8  ;;  %v1094_v18 = vpop.f32.mrb[51].mxu0 }
 0x3c7   :  { %v1162_v46 = vpack.c.bf16 %v1094_v18, %v1091_v6  ;;  %v3841_v6 = vld [vmem:[#allocation14] sm:$0xff]  }
 0x3c9   :  { %3291 = vmatprep.subr.bf16.mxu0 %v1162_v46  ;;  %3735 = vmatprep.subr.bf16.mxu1 %v1162_v46 }
 0x3ca   :  { %3292 = vmatpush3.bf16.msra.mxu0 %v1154_v38  ;;  %3743 = vmatpush3.bf16.msra.mxu1 %v1154_v38 }
 0x3cb   :  { %3293 = vmatprep.subr.bf16.mxu0 %v1163_v19  ;;  %3736 = vmatprep.subr.bf16.mxu1 %v1163_v19 }
 0x3ce   :  { %3294 = vmatpush3.bf16.msra.mxu0 %v1155_v5  ;;  %3744 = vmatpush3.bf16.msra.mxu1 %v1155_v5 }
 0x3d3   :  { %v3637_v43 = vpop.f32.mrb[52].mxu0 }
 0x3d4   :  { %v1107_v47 = vpop.f32.mrb[53].mxu0 }
 0x3d5   :  { %v3638_v57 = vpop.f32.mrb[54].mxu0 }
 0x3d6   :  { %v1165_v58 = vpack.c.bf16 %v3638_v57, %v3637_v43  ;;  %v1110_v59 = vpop.f32.mrb[55].mxu0 }
 0x3d7   :  { %v1164_v61 = vpack.c.bf16 %v1110_v59, %v1107_v47 }
 0x3d9   :  { %3295 = vmatprep.subr.bf16.mxu0 %v1164_v61  ;;  %3737 = vmatprep.subr.bf16.mxu1 %v1164_v61 }
 0x3da   :  { %3296 = vmatpush3.bf16.msra.mxu0 %v1156_v56  ;;  %3745 = vmatpush3.bf16.msra.mxu1 %v1156_v56 }
 0x3db   :  { %3297 = vmatprep.subr.bf16.mxu0 %v1165_v58  ;;  %3738 = vmatprep.subr.bf16.mxu1 %v1165_v58 }
 0x3de   :  { %3298 = vmatpush3.bf16.msra.mxu0 %v1157_v50  ;;  %3746 = vmatpush3.bf16.msra.mxu1 %v1157_v50 }
 0x3e3   :  { %v3641_v18 = vpop.f32.mrb[56].mxu0 }
 0x3e4   :  { %v1123_v38 = vpop.f32.mrb[57].mxu0 }
 0x3e5   :  { %v3642_v63 = vpop.f32.mrb[58].mxu0 }
 0x3e6   :  { %v1167_v19 = vpack.c.bf16 %v3642_v63, %v3641_v18  ;;  %v1126_v1 = vpop.f32.mrb[59].mxu0 }
 0x3e7   :  { %v1166_v5 = vpack.c.bf16 %v1126_v1, %v1123_v38  ;;  %v4797_v38 = vld [vmem:[#allocation15] ss:$0 sm:$0xff] }
 0x3e9   :  { %3299 = vmatprep.subr.bf16.mxu0 %v1166_v5  ;;  %3739 = vmatprep.subr.bf16.mxu1 %v1166_v5 }
 0x3ea   :  { %3300 = vmatpush3.bf16.msra.mxu0 %v1158_v62  ;;  %3747 = vmatpush3.bf16.msra.mxu1 %v1158_v62  ;;  %v3842_v62 = vld [vmem:[#allocation14 + $0x8] sm:$0xff]  }
 0x3eb   :  { %3301 = vmatprep.subr.bf16.mxu0 %v1167_v19  ;;  %3740 = vmatprep.subr.bf16.mxu1 %v1167_v19 }
 0x3ee   :  { %3302 = vmatpush3.bf16.msra.mxu0 %v1159_v60  ;;  %3748 = vmatpush3.bf16.msra.mxu1 %v1159_v60  ;;  %v3843_v60 = vld [vmem:[#allocation14 + $0x10] sm:$0xff]  }
 0x3f3   :  { %v3645_v20 = vpop.f32.mrb[60].mxu0 }
 0x3f4   :  { %v1139_v56 = vpop.f32.mrb[61].mxu0 }
 0x3f5   :  { %v3646_v2 = vpop.f32.mrb[62].mxu0 }
 0x3f6   :  { %v1169_v0 = vpack.c.bf16 %v3646_v2, %v3645_v20  ;;  %v1142_v8 = vpop.f32.mrb[63].mxu0 }
 0x3f7   :  { %v1168_v50 = vpack.c.bf16 %v1142_v8, %v1139_v56 }
 0x3f9   :  { %3303 = vmatprep.subr.bf16.mxu0 %v1168_v50  ;;  %3741 = vmatprep.subr.bf16.mxu1 %v1168_v50 }
 0x3fa   :  { %3304 = vmatpush3.bf16.msra.mxu0 %v1160_v4  ;;  %3749 = vmatpush3.bf16.msra.mxu1 %v1160_v4  ;;  %v3844_v4 = vld [vmem:[#allocation14 + $0x18] sm:$0xff]  }
 0x3fb   :  { %3305 = vmatprep.subr.bf16.mxu0 %v1169_v0  ;;  %3742 = vmatprep.subr.bf16.mxu1 %v1169_v0 }
 0x3fe   :  { %3306 = vmatpush3.bf16.msra.mxu0 %v1161_v3  ;;  %3750 = vmatpush3.bf16.msra.mxu1 %v1161_v3 }
 0x3ff   :  { %3647 = vmatprep.subr.bf16.mxu1 %v3841_v6 }
 0x401   :  { %1275 = vmatmul.mubr.bf16.vlgmr.msra.gmra.mrb[64].mxu1 %v4672_v39  ;;  %1203 = vmatmul.mubr.bf16.vlgmr.msra.gmra.mrb[64].mxu0 %v4621_v7  ;;  %v4109_v7 = vld [vmem:[#allocation3] sm:$0xff]  }
 0x402   :  { %1282 = vmatprep.mubr.bf16.mxu1 %v4674_v40  ;;  %3648 = vmatpush3.bf16.msra.mxu1 %v3841_v6 }
 0x403   :  { %3649 = vmatprep.subr.bf16.mxu1 %v3842_v62  ;;  %1210 = vmatprep.mubr.bf16.mxu0 %v4623_v21  ;;  %v4110_v21 = vld [vmem:[#allocation3 + $0x8] sm:$0xff]  }
 0x406   :  { %3650 = vmatpush3.bf16.msra.mxu1 %v3842_v62 }
 0x407   :  { %3651 = vmatprep.subr.bf16.mxu1 %v3843_v60 }
 0x409   :  { %1283 = vmatmul.mubr.bf16.gmra.mrb[68].mxu1 %v4678_v41  ;;  %1211 = vmatmul.mubr.bf16.gmra.mrb[68].mxu0 %v4627_v23  ;;  %v4111_v23 = vld [vmem:[#allocation3 + $0x10] sm:$0xff]  }
 0x40a   :  { %1290 = vmatprep.mubr.bf16.mxu1 %v4680_v42  ;;  %3652 = vmatpush3.bf16.msra.mxu1 %v3843_v60 }
 0x40b   :  { %3653 = vmatprep.subr.bf16.mxu1 %v3844_v4  ;;  %1218 = vmatprep.mubr.bf16.mxu0 %v4629_v24  ;;  %v4112_v24 = vld [vmem:[#allocation3 + $0x18] sm:$0xff]  }
 0x40e   :  { %3654 = vmatpush3.bf16.msra.mxu1 %v3844_v4 }
 0x411   :  { %1291 = vmatmul.mubr.bf16.gmra.mrb[72].mxu1 %v4684_v44  ;;  %1219 = vmatmul.mubr.bf16.gmra.mrb[72].mxu0 %v4633_v25  ;;  %v4113_v25 = vld [vmem:[#allocation3 + $0x20] sm:$0xff]  }
 0x412   :  { %1298 = vmatprep.mubr.bf16.mxu1 %v4686_v45  ;;  %1226 = vmatprep.mubr.bf16.mxu0 %v4635_v26 }
 0x419   :  { %1299 = vmatmul.mubr.bf16.gmra.mrb[76].mxu1 %v4690_v48  ;;  %1227 = vmatmul.mubr.bf16.gmra.mrb[76].mxu0 %v4639_v27 }
 0x41a   :  { %1306 = vmatprep.mubr.bf16.mxu1 %v4692_v49  ;;  %1234 = vmatprep.mubr.bf16.mxu0 %v4641_v28 }
 0x421   :  { %1307 = vmatmul.mubr.bf16.gmra.mrb[80].mxu1 %v4696_v51  ;;  %1235 = vmatmul.mubr.bf16.gmra.mrb[80].mxu0 %v4645_v29 }
 0x422   :  { %1314 = vmatprep.mubr.bf16.mxu1 %v4698_v52  ;;  %1242 = vmatprep.mubr.bf16.mxu0 %v4647_v30 }
 0x429   :  { %1315 = vmatmul.mubr.bf16.gmra.mrb[84].mxu1 %v4702_v53  ;;  %1243 = vmatmul.mubr.bf16.gmra.mrb[84].mxu0 %v4651_v31 }
 0x42a   :  { %1322 = vmatprep.mubr.bf16.mxu1 %v4704_v54  ;;  %1250 = vmatprep.mubr.bf16.mxu0 %v4653_v32 }
 0x431   :  { %1323 = vmatmul.mubr.bf16.gmra.mrb[88].mxu1 %v4708_v55  ;;  %1251 = vmatmul.mubr.bf16.gmra.mrb[88].mxu0 %v4657_v33 }
 0x432   :  { %3655 = vmatprep.mubr.msk.bf16.mxu1 %vm334_vm0, %v4109_v7  ;;  %1258 = vmatprep.mubr.bf16.mxu0 %v4659_v34 }
 0x439   :  { %3656 = vmatmul.mubr.msk.bf16.vlgmr.msra.gmra.mrb[92].mxu1 %vm334_vm0, %v4110_v21  ;;  %1259 = vmatmul.mubr.bf16.gmra.mrb[92].mxu0 %v4663_v35 }
 0x43a   :  { %3659 = vmatprep.mubr.msk.bf16.mxu1 %vm334_vm0, %v4111_v23  ;;  %1266 = vmatprep.mubr.bf16.mxu0 %v4665_v36 }
 0x441   :  { %3660 = vmatmul.mubr.msk.bf16.gmra.mrb[96].mxu1 %vm334_vm0, %v4112_v24  ;;  %1267 = vmatmul.mubr.bf16.gmra.mrb[96].mxu0 %v4669_v37 }
 0x442   :  { %3663 = vmatprep.mubr.msk.bf16.mxu1 %vm334_vm0, %v4113_v25 }
 0x449   :  { %3664 = vmatmul.mubr.msk.bf16.gmra.mrb[100].mxu1 %vm334_vm0, %v4574_v9  ;;  %v5527_v9 = vld [vmem:[#allocation25_spill] sm:$0xff] }
 0x44a   :  { %3667 = vmatprep.mubr.msk.bf16.mxu1 %vm334_vm0, %v4576_v10  ;;  %v5528_v10 = vld [vmem:[#allocation26_spill] sm:$0xff] }
 0x451   :  { %3668 = vmatmul.mubr.msk.bf16.gmra.mrb[104].mxu1 %vm334_vm0, %v4582_v11 }
 0x452   :  { %3671 = vmatprep.mubr.msk.bf16.mxu1 %vm334_vm0, %v4584_v12 }
 0x459   :  { %3672 = vmatmul.mubr.msk.bf16.gmra.mrb[108].mxu1 %vm334_vm0, %v4590_v13 }
 0x45a   :  { %3675 = vmatprep.mubr.msk.bf16.mxu1 %vm334_vm0, %v4592_v14 }
 0x461   :  { %3676 = vmatmul.mubr.msk.bf16.gmra.mrb[112].mxu1 %vm334_vm0, %v4598_v15 }
 0x462   :  { %3679 = vmatprep.mubr.msk.bf16.mxu1 %vm334_vm0, %v4600_v16 }
 0x469   :  { %3680 = vmatmul.mubr.msk.bf16.gmra.mrb[116].mxu1 %vm334_vm0, %v4606_v17 }
 0x46a   :  { %3683 = vmatprep.mubr.msk.bf16.mxu1 %vm334_vm0, %v5527_v9 }
 0x471   :  { %3684 = vmatmul.mubr.msk.bf16.gmra.mrb[120].mxu1 %vm334_vm0, %v5528_v10 }
 0x4d4   :  { %v3361_v11 = vpop.f32.mrb[64].mxu1 }
 0x4d5   :  { %v3362_v12 = vpop.f32.mrb[65].mxu1 }
 0x4d6   :  { %v4769_v13 = vadd.f32 %v3362_v12, %v3361_v11  ;;  %v3364_v14 = vpop.f32.mrb[66].mxu1 }
 0x4d7   :  { %v3365_v26 = vpop.f32.mrb[67].mxu1 }
 0x4d8   :  { %5529 = vst [vmem:[#allocation25_spill] sm:$0xff] %v4769_v13  ;;  %v4771_v27 = vadd.f32 %v3365_v26, %v3364_v14 }
 0x4da   :  { %5530 = vst [vmem:[#allocation26_spill] sm:$0xff] %v4771_v27 }
 0x4dc   :  { %v3367_v15 = vpop.f32.mrb[68].mxu1 }
 0x4dd   :  { %v3368_v28 = vpop.f32.mrb[69].mxu1 }
 0x4de   :  { %v4773_v16 = vadd.f32 %v3368_v28, %v3367_v15  ;;  %v3370_v29 = vpop.f32.mrb[70].mxu1 }
 0x4df   :  { %v3371_v17 = vpop.f32.mrb[71].mxu1 }
 0x4e0   :  { %5531 = vst [vmem:[#allocation27_spill] sm:$0xff] %v4773_v16  ;;  %v4775_v30 = vadd.f32 %v3371_v17, %v3370_v29 }
 0x4e2   :  { %5532 = vst [vmem:[#allocation28_spill] sm:$0xff] %v4775_v30 }
 0x4e4   :  { %v3373_v31 = vpop.f32.mrb[72].mxu1 }
 0x4e5   :  { %v3374_v32 = vpop.f32.mrb[73].mxu1 }
 0x4e6   :  { %v4777_v33 = vadd.f32 %v3374_v32, %v3373_v31  ;;  %v3376_v34 = vpop.f32.mrb[74].mxu1 }
 0x4e7   :  { %v3377_v35 = vpop.f32.mrb[75].mxu1 }
 0x4e8   :  { %5533 = vst [vmem:[#allocation29_spill] sm:$0xff] %v4777_v33  ;;  %v4779_v36 = vadd.f32 %v3377_v35, %v3376_v34 }
 0x4ea   :  { %5534 = vst [vmem:[#allocation30_spill] sm:$0xff] %v4779_v36 }
 0x4ec   :  { %v3379_v37 = vpop.f32.mrb[76].mxu1 }
 0x4ed   :  { %v3380_v39 = vpop.f32.mrb[77].mxu1 }
 0x4ee   :  { %v4781_v40 = vadd.f32 %v3380_v39, %v3379_v37  ;;  %v3382_v41 = vpop.f32.mrb[78].mxu1 }
 0x4ef   :  { %v3383_v42 = vpop.f32.mrb[79].mxu1 }
 0x4f0   :  { %5535 = vst [vmem:[#allocation31_spill] sm:$0xff] %v4781_v40  ;;  %v4783_v44 = vadd.f32 %v3383_v42, %v3382_v41 }
 0x4f2   :  { %5536 = vst [vmem:[#allocation32_spill] sm:$0xff] %v4783_v44 }
 0x4f4   :  { %v3385_v45 = vpop.f32.mrb[80].mxu1 }
 0x4f5   :  { %v3386_v48 = vpop.f32.mrb[81].mxu1 }
 0x4f6   :  { %v4785_v49 = vadd.f32 %v3386_v48, %v3385_v45  ;;  %v3388_v51 = vpop.f32.mrb[82].mxu1 }
 0x4f7   :  { %v3389_v52 = vpop.f32.mrb[83].mxu1 }
 0x4f8   :  { %5537 = vst [vmem:[#allocation33_spill] sm:$0xff] %v4785_v49  ;;  %v4787_v53 = vadd.f32 %v3389_v52, %v3388_v51 }
 0x4fa   :  { %5538 = vst [vmem:[#allocation34_spill] sm:$0xff] %v4787_v53 }
 0x4fc   :  { %v3391_v54 = vpop.f32.mrb[84].mxu1 }
 0x4fd   :  { %v3392_v55 = vpop.f32.mrb[85].mxu1 }
 0x4fe   :  { %v4789_v3 = vadd.f32 %v3392_v55, %v3391_v54  ;;  %v3394_v22 = vpop.f32.mrb[86].mxu1 }
 0x4ff   :  { %v3395_v46 = vpop.f32.mrb[87].mxu1 }
 0x500   :  { %5539 = vst [vmem:[#allocation35_spill] sm:$0xff] %v4789_v3  ;;  %v4791_v43 = vadd.f32 %v3395_v46, %v3394_v22 }
 0x502   :  { %5540 = vst [vmem:[#allocation36_spill] sm:$0xff] %v4791_v43 }
 0x504   :  { %v3397_v47 = vpop.f32.mrb[88].mxu1 }
 0x505   :  { %v3398_v57 = vpop.f32.mrb[89].mxu1 }
 0x506   :  { %v4793_v58 = vadd.f32 %v3398_v57, %v3397_v47  ;;  %v3400_v59 = vpop.f32.mrb[90].mxu1 }
 0x507   :  { %v3401_v61 = vpop.f32.mrb[91].mxu1 }
 0x508   :  { %5541 = vst [vmem:[#allocation37_spill] sm:$0xff] %v4793_v58  ;;  %v4795_v18 = vadd.f32 %v3401_v61, %v3400_v59 }
 0x50a   :  { %5542 = vst [vmem:[#allocation38_spill] sm:$0xff] %v4795_v18 }
 0x50c   :  { %v3657_v63 = vpop.f32.mrb[92].mxu1 }
 0x50d   :  { %v4800_v19 = vadd.f32 %v3657_v63, %v4797_v38  ;;  %v1692_v1 = vpop.f32.mrb[93].mxu1 }
 0x50e   :  { %v4803_v5 = vadd.f32 %v4797_v38, %v1692_v1  ;;  %v3658_v20 = vpop.f32.mrb[94].mxu1 }
 0x50f   :  { %1823 = vmax.xlane.f32.xlu1 %v4800_v19  ;;  %v1695_v56 = vpop.f32.mrb[95].mxu1  ;;  %v4808_v2 = vadd.f32 %v3658_v20, %v4797_v38 }
 0x510   :  { %1819 = vmax.xlane.f32.xlu0 %v4803_v5  ;;  %v4811_v0 = vadd.f32 %v4797_v38, %v1695_v56 }
 0x513   :  { %1825 = vmax.xlane.f32.xlu1 %v4808_v2 }
 0x514   :  { %v3661_v8 = vpop.f32.mrb[96].mxu1  ;;  %1821 = vmax.xlane.f32.xlu0 %v4811_v0 }
 0x515   :  { %v1708_v50 = vpop.f32.mrb[97].mxu1  ;;  %v4823_v7 = vadd.f32 %v3661_v8, %v4797_v38 }
 0x516   :  { %v4816_v6 = vadd.f32 %v4797_v38, %v1708_v50  ;;  %v3662_v62 = vpop.f32.mrb[98].mxu1 }
 0x517   :  { %v1711_v60 = vpop.f32.mrb[99].mxu1  ;;  %v4827_v21 = vadd.f32 %v3662_v62, %v4797_v38 }
 0x518   :  { %v4819_v4 = vadd.f32 %v4797_v38, %v1711_v60  ;;  %1827 = vmax.xlane.f32.xlu0 %v4816_v6 }
 0x51a   :  { %1829 = vmax.xlane.f32.xlu1 %v4819_v4 }
 0x51c   :  { %v3665_v23 = vpop.f32.mrb[100].mxu1  ;;  %1831 = vmax.xlane.f32.xlu0 %v4823_v7 }
 0x51d   :  { %v1724_v24 = vpop.f32.mrb[101].mxu1  ;;  %v4839_v12 = vadd.f32 %v3665_v23, %v4797_v38 }
 0x51e   :  { %v4831_v25 = vadd.f32 %v4797_v38, %v1724_v24  ;;  %v3666_v9 = vpop.f32.mrb[102].mxu1  ;;  %1833 = vmax.xlane.f32.xlu1 %v4827_v21 }
 0x51f   :  { %v1727_v10 = vpop.f32.mrb[103].mxu1  ;;  %v4843_v14 = vadd.f32 %v3666_v9, %v4797_v38 }
 0x520   :  { %v4835_v11 = vadd.f32 %v4797_v38, %v1727_v10  ;;  %1835 = vmax.xlane.f32.xlu0 %v4831_v25 }
 0x522   :  { %1837 = vmax.xlane.f32.xlu1 %v4835_v11 }
 0x524   :  { %v3669_v26 = vpop.f32.mrb[104].mxu1  ;;  %1839 = vmax.xlane.f32.xlu0 %v4839_v12 }
 0x525   :  { %v1740_v15 = vpop.f32.mrb[105].mxu1  ;;  %v4855_v32 = vadd.f32 %v3669_v26, %v4797_v38 }
 0x526   :  { %v4847_v28 = vadd.f32 %v4797_v38, %v1740_v15  ;;  %v3670_v29 = vpop.f32.mrb[106].mxu1  ;;  %1841 = vmax.xlane.f32.xlu1 %v4843_v14 }
 0x527   :  { %v1743_v17 = vpop.f32.mrb[107].mxu1  ;;  %v4859_v34 = vadd.f32 %v3670_v29, %v4797_v38 }
 0x528   :  { %v4851_v31 = vadd.f32 %v4797_v38, %v1743_v17  ;;  %1843 = vmax.xlane.f32.xlu0 %v4847_v28  ;;  %v3307_v17 = vpop.f32.mrb[64].mxu0 }
 0x52a   :  { %1845 = vmax.xlane.f32.xlu1 %v4851_v31 }
 0x52c   :  { %v3673_v35 = vpop.f32.mrb[108].mxu1  ;;  %1847 = vmax.xlane.f32.xlu0 %v4855_v32 }
 0x52d   :  { %v1756_v37 = vpop.f32.mrb[109].mxu1  ;;  %v4871_v48 = vadd.f32 %v3673_v35, %v4797_v38  ;;  %v3308_v35 = vpop.f32.mrb[65].mxu0 }
 0x52e   :  { %v4863_v39 = vadd.f32 %v4797_v38, %v1756_v37  ;;  %v3674_v41 = vpop.f32.mrb[110].mxu1  ;;  %1849 = vmax.xlane.f32.xlu1 %v4859_v34  ;;  %v4927_v37 = vadd.f32 %v3308_v35, %v3307_v17 }
 0x52f   :  { %v1759_v42 = vpop.f32.mrb[111].mxu1  ;;  %v4875_v51 = vadd.f32 %v3674_v41, %v4797_v38  ;;  %v3310_v41 = vpop.f32.mrb[66].mxu0 }
 0x530   :  { %v4867_v45 = vadd.f32 %v4797_v38, %v1759_v42  ;;  %1851 = vmax.xlane.f32.xlu0 %v4863_v39  ;;  %v3311_v42 = vpop.f32.mrb[67].mxu0 }
 0x532   :  { %1853 = vmax.xlane.f32.xlu1 %v4867_v45 }
 0x534   :  { %v3677_v52 = vpop.f32.mrb[112].mxu1  ;;  %1855 = vmax.xlane.f32.xlu0 %v4871_v48 }
 0x535   :  { %v1772_v54 = vpop.f32.mrb[113].mxu1  ;;  %v4887_v57 = vadd.f32 %v3677_v52, %v4797_v38  ;;  %v4929_v52 = vadd.f32 %v3311_v42, %v3310_v41 }
 0x536   :  { %v4879_v55 = vadd.f32 %v4797_v38, %v1772_v54  ;;  %v3678_v22 = vpop.f32.mrb[114].mxu1  ;;  %1857 = vmax.xlane.f32.xlu1 %v4875_v51  ;;  %v3313_v54 = vpop.f32.mrb[68].mxu0 }
 0x537   :  { %v1775_v46 = vpop.f32.mrb[115].mxu1  ;;  %v4891_v59 = vadd.f32 %v3678_v22, %v4797_v38  ;;  %v3314_v22 = vpop.f32.mrb[69].mxu0 }
 0x538   :  { %v4883_v47 = vadd.f32 %v4797_v38, %v1775_v46  ;;  %1859 = vmax.xlane.f32.xlu0 %v4879_v55  ;;  %v4931_v46 = vadd.f32 %v3314_v22, %v3313_v54 }
 0x53a   :  { %1861 = vmax.xlane.f32.xlu1 %v4883_v47 }
 0x53c   :  { %v3681_v61 = vpop.f32.mrb[116].mxu1  ;;  %1863 = vmax.xlane.f32.xlu0 %v4887_v57 }
 0x53d   :  { %v1788_v63 = vpop.f32.mrb[117].mxu1  ;;  %v4903_v50 = vadd.f32 %v3681_v61, %v4797_v38  ;;  %v3316_v61 = vpop.f32.mrb[70].mxu0 }
 0x53e   :  { %v4895_v1 = vadd.f32 %v4797_v38, %v1788_v63  ;;  %v3682_v20 = vpop.f32.mrb[118].mxu1  ;;  %1865 = vmax.xlane.f32.xlu1 %v4891_v59  ;;  %v3317_v63 = vpop.f32.mrb[71].mxu0 }
 0x53f   :  { %v1791_v56 = vpop.f32.mrb[119].mxu1  ;;  %v4907_v62 = vadd.f32 %v3682_v20, %v4797_v38  ;;  %v3319_v20 = vpop.f32.mrb[72].mxu0 }
 0x540   :  { %v4899_v8 = vadd.f32 %v4797_v38, %v1791_v56  ;;  %1867 = vmax.xlane.f32.xlu0 %v4895_v1  ;;  %v3320_v56 = vpop.f32.mrb[73].mxu0 }
 0x542   :  { %1869 = vmax.xlane.f32.xlu1 %v4899_v8 }
 0x544   :  { %v3685_v60 = vpop.f32.mrb[120].mxu1  ;;  %1871 = vmax.xlane.f32.xlu0 %v4903_v50 }
 0x545   :  { %v1804_v23 = vpop.f32.mrb[121].mxu1  ;;  %v4919_v15 = vadd.f32 %v3685_v60, %v4797_v38  ;;  %v4935_v60 = vadd.f32 %v3320_v56, %v3319_v20 }
 0x546   :  { %v4911_v24 = vadd.f32 %v4797_v38, %v1804_v23  ;;  %v3686_v9 = vpop.f32.mrb[122].mxu1  ;;  %1873 = vmax.xlane.f32.xlu1 %v4907_v62  ;;  %v3322_v23 = vpop.f32.mrb[74].mxu0 }
 0x547   :  { %v1807_v10 = vpop.f32.mrb[123].mxu1  ;;  %v4923_v29 = vadd.f32 %v3686_v9, %v4797_v38  ;;  %v3323_v9 = vpop.f32.mrb[75].mxu0 }
 0x548   :  { %v4915_v26 = vadd.f32 %v4797_v38, %v1807_v10  ;;  %1875 = vmax.xlane.f32.xlu0 %v4911_v24  ;;  %v4933_v38 = vadd.f32 %v3317_v63, %v3316_v61  ;;  %v4937_v10 = vadd.f32 %v3323_v9, %v3322_v23  ;;  %v3325_v17 = vpop.f32.mrb[76].mxu0 }
 0x549   :  { %v3326_v35 = vpop.f32.mrb[77].mxu0 }
 0x54a   :  { %1877 = vmax.xlane.f32.xlu1 %v4915_v26  ;;  %v4939_v41 = vadd.f32 %v3326_v35, %v3325_v17  ;;  %v3328_v42 = vpop.f32.mrb[78].mxu0 }
 0x54b   :  { %v3329_v18 = vpop.f32.mrb[79].mxu0 }
 0x54c   :  { %1879 = vmax.xlane.f32.xlu0 %v4919_v15  ;;  %v4941_v54 = vadd.f32 %v3329_v18, %v3328_v42  ;;  %v3331_v22 = vpop.f32.mrb[80].mxu0 }
 0x54d   :  { %v3332_v58 = vpop.f32.mrb[81].mxu0 }
 0x54e   :  { %1881 = vmax.xlane.f32.xlu1 %v4923_v29  ;;  %v4943_v61 = vadd.f32 %v3332_v58, %v3331_v22  ;;  %v3334_v63 = vpop.f32.mrb[82].mxu0 }
 0x54f   :  { %v3335_v43 = vpop.f32.mrb[83].mxu0 }
 0x550   :  { %v4945_v20 = vadd.f32 %v3335_v43, %v3334_v63  ;;  %v3337_v56 = vpop.f32.mrb[84].mxu0 }
 0x551   :  { %v3338_v3 = vpop.f32.mrb[85].mxu0 }
 0x552   :  { %v4947_v23 = vadd.f32 %v3338_v3, %v3337_v56  ;;  %v3340_v9 = vpop.f32.mrb[86].mxu0 }
 0x553   :  { %v3341_v53 = vpop.f32.mrb[87].mxu0 }
 0x554   :  { %v4949_v17 = vadd.f32 %v3341_v53, %v3340_v9  ;;  %v3343_v35 = vpop.f32.mrb[88].mxu0 }
 0x555   :  { %v3344_v49 = vpop.f32.mrb[89].mxu0 }
 0x556   :  { %v4951_v18 = vadd.f32 %v3344_v49, %v3343_v35  ;;  %v3346_v42 = vpop.f32.mrb[90].mxu0 }
 0x557   :  { %v3347_v44 = vpop.f32.mrb[91].mxu0 }
 0x558   :  { %v4953_v58 = vadd.f32 %v3347_v44, %v3346_v42  ;;  %v3349_v22 = vpop.f32.mrb[92].mxu0 }
 0x559   :  { %v3350_v40 = vpop.f32.mrb[93].mxu0 }
 0x55a   :  { %v4955_v43 = vadd.f32 %v3350_v40, %v3349_v22  ;;  %v3352_v63 = vpop.f32.mrb[94].mxu0 }
 0x55b   :  { %v3353_v36 = vpop.f32.mrb[95].mxu0 }
 0x55c   :  { %v4957_v3 = vadd.f32 %v3353_v36, %v3352_v63  ;;  %v3355_v56 = vpop.f32.mrb[96].mxu0 }
 0x55d   :  { %v3356_v33 = vpop.f32.mrb[97].mxu0 }
 0x55e   :  { %v4959_v53 = vadd.f32 %v3356_v33, %v3355_v56  ;;  %v3358_v9 = vpop.f32.mrb[98].mxu0 }
 0x55f   :  { %v3359_v30 = vpop.f32.mrb[99].mxu0 }
 0x560   :  { %5543 = vst [vmem:[#allocation39_spill] sm:$0xff] %v4959_v53  ;;  %v4961_v49 = vadd.f32 %v3359_v30, %v3358_v9 }
 0x562   :  { %5544 = vst [vmem:[#allocation40_spill] sm:$0xff] %v4961_v49 }
 0x59c   :  { %v1824_v35 = vpop.xlane.xlu1 %1823 }
 0x59d   :  { %v1885_v44 = vsub.f32 %v4800_v19, %v1824_v35  ;;  %v1820_v42 = vpop.xlane.xlu0 %1819 }
 0x59e   :  { %v1883_v16 = vsub.f32 %v4803_v5, %v1820_v42 }
 0x59f   :  { %v1919_v27 = vmul.f32 1.442695, %v1885_v44 }
 0x5a0   :  { %v1915_v40 = vmul.f32 1.442695, %v1883_v16  ;;  %v1826_v22 = vpop.xlane.xlu1 %1825 }
 0x5a1   :  { %v1886_v36 = vsub.f32 %v4808_v2, %v1826_v22  ;;  %v1822_v63 = vpop.xlane.xlu0 %1821  ;;  %v3845_v22 = vld [vmem:[#allocation17] sm:$0xff]  }
 0x5a2   :  { %3853 = vpow2.f32 %v1915_v40  ;;  %v1884_v33 = vsub.f32 %v4811_v0, %v1822_v63  ;;  %3687 = vmatprep.subr.bf16.mxu1 %v3845_v22 }
 0x5a3   :  { %3855 = vpow2.f32 %v1919_v27  ;;  %v1921_v13 = vmul.f32 1.442695, %v1886_v36  ;;  %3688 = vmatpush3.bf16.msra.mxu1 %v3845_v22 }
 0x5a4   :  { %v1917_v56 = vmul.f32 1.442695, %v1884_v33 }
 0x5a5   :  { %v1828_v30 = vpop.xlane.xlu0 %1827 }
 0x5a6   :  { %3857 = vpow2.f32 %v1917_v56  ;;  %v1887_v9 = vsub.f32 %v4816_v6, %v1828_v30 }
 0x5a7   :  { %v1830_v19 = vpop.xlane.xlu1 %1829  ;;  %3859 = vpow2.f32 %v1921_v13 }
 0x5a8   :  { %v1923_v35 = vmul.f32 1.442695, %v1887_v9  ;;  %v1888_v5 = vsub.f32 %v4819_v4, %v1830_v19  ;;  %v3846_v4 = vld [vmem:[#allocation17 + $0x8] sm:$0xff]   ;;  %v3847_v19 = vld [vmem:[#allocation17 + $0x10] sm:$0xff]  }
 0x5a9   :  { %v1832_v16 = vpop.xlane.xlu0 %1831  ;;  %3689 = vmatprep.subr.bf16.mxu1 %v3846_v4 }
 0x5aa   :  { %3861 = vpow2.f32 %v1923_v35  ;;  %v1925_v44 = vmul.f32 1.442695, %v1888_v5  ;;  %v1889_v2 = vsub.f32 %v4823_v7, %v1832_v16  ;;  %3690 = vmatpush3.bf16.msra.mxu1 %v3846_v4 }
 0x5ab   :  { %v1834_v42 = vpop.xlane.xlu1 %1833  ;;  %3691 = vmatprep.subr.bf16.mxu1 %v3847_v19 }
 0x5ac   :  { %v4970_v40 = vpop.eup %3853  ;;  %v1927_v0 = vmul.f32 1.442695, %v1889_v2  ;;  %v1890_v27 = vsub.f32 %v4827_v21, %v1834_v42  ;;  %3863 = vpow2.f32 %v1925_v44 }
 0x5ad   :  { %1979 = vadd.xlane.f32.xlu0 %v4970_v40  ;;  %v1836_v6 = vpop.xlane.xlu0 %1835  ;;  %v4975_v63 = vpop.eup %3855 }
 0x5ae   :  { %3865 = vpow2.f32 %v1927_v0  ;;  %v1929_v36 = vmul.f32 1.442695, %v1890_v27  ;;  %v1891_v13 = vsub.f32 %v4831_v25, %v1836_v6  ;;  %3692 = vmatpush3.bf16.msra.mxu1 %v3847_v19 }
 0x5af   :  { %v1838_v33 = vpop.xlane.xlu1 %1837 }
 0x5b0   :  { %v4977_v7 = vpop.eup %3857  ;;  %v1931_v56 = vmul.f32 1.442695, %v1891_v13  ;;  %v1892_v30 = vsub.f32 %v4835_v11, %v1838_v33  ;;  %3867 = vpow2.f32 %v1929_v36 }
 0x5b1   :  { %1983 = vadd.xlane.f32.xlu0 %v4975_v63  ;;  %1981 = vadd.xlane.f32.xlu1 %v4977_v7  ;;  %v1840_v21 = vpop.xlane.xlu0 %1839  ;;  %v4983_v35 = vpop.eup %3859 }
 0x5b2   :  { %3869 = vpow2.f32 %v1931_v56  ;;  %v1933_v9 = vmul.f32 1.442695, %v1892_v30  ;;  %v1893_v25 = vsub.f32 %v4839_v12, %v1840_v21  ;;  %v3848_v56 = vld [vmem:[#allocation17 + $0x18] sm:$0xff]  }
 0x5b3   :  { %v1842_v5 = vpop.xlane.xlu1 %1841  ;;  %3693 = vmatprep.subr.bf16.mxu1 %v3848_v56 }
 0x5b4   :  { %v4985_v16 = vpop.eup %3861  ;;  %v1935_v44 = vmul.f32 1.442695, %v1893_v25  ;;  %v1894_v11 = vsub.f32 %v4843_v14, %v1842_v5  ;;  %3871 = vpow2.f32 %v1933_v9  ;;  %3694 = vmatpush3.bf16.msra.mxu1 %v3848_v56 }
 0x5b5   :  { %1985 = vadd.xlane.f32.xlu1 %v4983_v35  ;;  %1987 = vadd.xlane.f32.xlu0 %v4985_v16  ;;  %v1844_v2 = vpop.xlane.xlu0 %1843 }
 0x5b6   :  { %3873 = vpow2.f32 %v1935_v44  ;;  %v1937_v42 = vmul.f32 1.442695, %v1894_v11  ;;  %v1895_v12 = vsub.f32 %v4847_v28, %v1844_v2  ;;  %v4991_v0 = vpop.eup %3863 }
 0x5b7   :  { %v1846_v27 = vpop.xlane.xlu1 %1845 }
 0x5b8   :  { %v4993_v6 = vpop.eup %3865  ;;  %v1939_v22 = vmul.f32 1.442695, %v1895_v12  ;;  %v1896_v14 = vsub.f32 %v4851_v31, %v1846_v27  ;;  %3875 = vpow2.f32 %v1937_v42  ;;  %v3849_v42 = vld [vmem:[#allocation17 + $0x20] sm:$0xff]  }
 0x5b9   :  { %1989 = vadd.xlane.f32.xlu1 %v4991_v0  ;;  %1991 = vadd.xlane.f32.xlu0 %v4993_v6  ;;  %v1848_v36 = vpop.xlane.xlu0 %1847 }
 0x5ba   :  { %3877 = vpow2.f32 %v1939_v22  ;;  %v1941_v13 = vmul.f32 1.442695, %v1896_v14  ;;  %v1897_v28 = vsub.f32 %v4855_v32, %v1848_v36  ;;  %v4999_v4 = vpop.eup %3867  ;;  %3695 = vmatprep.subr.bf16.mxu1 %v3849_v42 }
 0x5bb   :  { %v1850_v33 = vpop.xlane.xlu1 %1849  ;;  %3696 = vmatpush3.bf16.msra.mxu1 %v3849_v42 }
 0x5bc   :  { %v5001_v30 = vpop.eup %3869  ;;  %v1943_v21 = vmul.f32 1.442695, %v1897_v28  ;;  %v1898_v31 = vsub.f32 %v4859_v34, %v1850_v33  ;;  %3879 = vpow2.f32 %v1941_v13  ;;  %v3850_v28 = vld [vmem:[#allocation17 + $0x28] sm:$0xff]  }
 0x5bd   :  { %1993 = vadd.xlane.f32.xlu1 %v4999_v4  ;;  %1995 = vadd.xlane.f32.xlu0 %v5001_v30  ;;  %v1852_v9 = vpop.xlane.xlu0 %1851 }
 0x5be   :  { %3881 = vpow2.f32 %v1943_v21  ;;  %v1945_v25 = vmul.f32 1.442695, %v1898_v31  ;;  %v1899_v19 = vsub.f32 %v4863_v39, %v1852_v9  ;;  %v5007_v32 = vpop.eup %3871  ;;  %3697 = vmatprep.subr.bf16.mxu1 %v3850_v28 }
 0x5bf   :  { %v1854_v5 = vpop.xlane.xlu1 %1853  ;;  %3698 = vmatpush3.bf16.msra.mxu1 %v3850_v28 }
 0x5c0   :  { %v5009_v44 = vpop.eup %3873  ;;  %v1947_v11 = vmul.f32 1.442695, %v1899_v19  ;;  %v1900_v34 = vsub.f32 %v4867_v45, %v1854_v5  ;;  %3883 = vpow2.f32 %v1945_v25  ;;  %v3851_v19 = vld [vmem:[#allocation17 + $0x30] sm:$0xff]  }
 0x5c1   :  { %1997 = vadd.xlane.f32.xlu1 %v5007_v32  ;;  %1999 = vadd.xlane.f32.xlu0 %v5009_v44  ;;  %v1856_v2 = vpop.xlane.xlu0 %1855 }
 0x5c2   :  { %3885 = vpow2.f32 %v1947_v11  ;;  %v1949_v12 = vmul.f32 1.442695, %v1900_v34  ;;  %v1901_v39 = vsub.f32 %v4871_v48, %v1856_v2  ;;  %v5015_v27 = vpop.eup %3875  ;;  %3699 = vmatprep.subr.bf16.mxu1 %v3851_v19 }
 0x5c3   :  { %v1858_v22 = vpop.xlane.xlu1 %1857  ;;  %3700 = vmatpush3.bf16.msra.mxu1 %v3851_v19 }
 0x5c4   :  { %v5017_v14 = vpop.eup %3877  ;;  %v1951_v36 = vmul.f32 1.442695, %v1901_v39  ;;  %v1902_v45 = vsub.f32 %v4875_v51, %v1858_v22  ;;  %3887 = vpow2.f32 %v1949_v12  ;;  %v3852_v39 = vld [vmem:[#allocation17 + $0x38] sm:$0xff]  }
 0x5c5   :  { %2001 = vadd.xlane.f32.xlu1 %v5015_v27  ;;  %2003 = vadd.xlane.f32.xlu0 %v5017_v14  ;;  %v1860_v13 = vpop.xlane.xlu0 %1859 }
 0x5c6   :  { %3889 = vpow2.f32 %v1951_v36  ;;  %v1953_v33 = vmul.f32 1.442695, %v1902_v45  ;;  %v1903_v48 = vsub.f32 %v4879_v55, %v1860_v13  ;;  %v5023_v56 = vpop.eup %3879  ;;  %3701 = vmatprep.subr.bf16.mxu1 %v3852_v39 }
 0x5c7   :  { %v1862_v21 = vpop.xlane.xlu1 %1861  ;;  %3702 = vmatpush3.bf16.msra.mxu1 %v3852_v39 }
 0x5c8   :  { %v5025_v31 = vpop.eup %3881  ;;  %v1955_v9 = vmul.f32 1.442695, %v1903_v48  ;;  %v1904_v51 = vsub.f32 %v4883_v47, %v1862_v21  ;;  %3891 = vpow2.f32 %v1953_v33 }
 0x5c9   :  { %2005 = vadd.xlane.f32.xlu1 %v5023_v56  ;;  %2007 = vadd.xlane.f32.xlu0 %v5025_v31  ;;  %v1864_v25 = vpop.xlane.xlu0 %1863 }
 0x5ca   :  { %3893 = vpow2.f32 %v1955_v9  ;;  %v1957_v5 = vmul.f32 1.442695, %v1904_v51  ;;  %v1905_v55 = vsub.f32 %v4887_v57, %v1864_v25  ;;  %v5031_v11 = vpop.eup %3883 }
 0x5cb   :  { %v1866_v34 = vpop.xlane.xlu1 %1865 }
 0x5cc   :  { %v5033_v2 = vpop.eup %3885  ;;  %v1959_v42 = vmul.f32 1.442695, %v1905_v55  ;;  %v1906_v47 = vsub.f32 %v4891_v59, %v1866_v34  ;;  %3895 = vpow2.f32 %v1957_v5 }
 0x5cd   :  { %2009 = vadd.xlane.f32.xlu1 %v5031_v11  ;;  %2011 = vadd.xlane.f32.xlu0 %v5033_v2  ;;  %v1868_v12 = vpop.xlane.xlu0 %1867 }
 0x5ce   :  { %3897 = vpow2.f32 %v1959_v42  ;;  %v1961_v22 = vmul.f32 1.442695, %v1906_v47  ;;  %v1907_v57 = vsub.f32 %v4895_v1, %v1868_v12  ;;  %v5039_v36 = vpop.eup %3887 }
 0x5cf   :  { %v1870_v45 = vpop.xlane.xlu1 %1869 }
 0x5d0   :  { %v5041_v13 = vpop.eup %3889  ;;  %v1963_v28 = vmul.f32 1.442695, %v1907_v57  ;;  %v1908_v59 = vsub.f32 %v4899_v8, %v1870_v45  ;;  %3899 = vpow2.f32 %v1961_v22 }
 0x5d1   :  { %2013 = vadd.xlane.f32.xlu1 %v5039_v36  ;;  %2015 = vadd.xlane.f32.xlu0 %v5041_v13  ;;  %v1872_v33 = vpop.xlane.xlu0 %1871 }
 0x5d2   :  { %3901 = vpow2.f32 %v1963_v28  ;;  %v1965_v48 = vmul.f32 1.442695, %v1908_v59  ;;  %v1909_v1 = vsub.f32 %v4903_v50, %v1872_v33  ;;  %v5047_v21 = vpop.eup %3891 }
 0x5d3   :  { %v1874_v9 = vpop.xlane.xlu1 %1873 }
 0x5d4   :  { %v5049_v51 = vpop.eup %3893  ;;  %v1967_v25 = vmul.f32 1.442695, %v1909_v1  ;;  %v1910_v19 = vsub.f32 %v4907_v62, %v1874_v9  ;;  %3903 = vpow2.f32 %v1965_v48 }
 0x5d5   :  { %2017 = vadd.xlane.f32.xlu1 %v5047_v21  ;;  %2019 = vadd.xlane.f32.xlu0 %v5049_v51  ;;  %v1876_v8 = vpop.xlane.xlu0 %1875 }
 0x5d6   :  { %3905 = vpow2.f32 %v1967_v25  ;;  %v1969_v5 = vmul.f32 1.442695, %v1910_v19  ;;  %v1911_v55 = vsub.f32 %v4911_v24, %v1876_v8  ;;  %v5055_v34 = vpop.eup %3895  ;;  %v5545_v19 = vld [vmem:[#allocation25_spill] sm:$0xff]  ;;  %v5546_v8 = vld [vmem:[#allocation26_spill] sm:$0xff] }
 0x5d7   :  { %v1878_v50 = vpop.xlane.xlu1 %1877 }
 0x5d8   :  { %v5057_v42 = vpop.eup %3897  ;;  %v1971_v47 = vmul.f32 1.442695, %v1911_v55  ;;  %v1912_v12 = vsub.f32 %v4915_v26, %v1878_v50  ;;  %3907 = vpow2.f32 %v1969_v5  ;;  %v5547_v5 = vld [vmem:[#allocation27_spill] sm:$0xff]  ;;  %v5548_v55 = vld [vmem:[#allocation28_spill] sm:$0xff]  ;;  %v5549_v50 = vld [vmem:[#allocation29_spill] sm:$0xff] }
 0x5d9   :  { %2021 = vadd.xlane.f32.xlu1 %v5055_v34  ;;  %2023 = vadd.xlane.f32.xlu0 %v5057_v42  ;;  %v1880_v62 = vpop.xlane.xlu0 %1879 }
 0x5da   :  { %3909 = vpow2.f32 %v1971_v47  ;;  %v1973_v39 = vmul.f32 1.442695, %v1912_v12  ;;  %v1913_v22 = vsub.f32 %v4919_v15, %v1880_v62  ;;  %v5063_v57 = vpop.eup %3899  ;;  %v5550_v47 = vld [vmem:[#allocation30_spill] sm:$0xff]  ;;  %v5551_v12 = vld [vmem:[#allocation31_spill] sm:$0xff]  ;;  %v5552_v62 = vld [vmem:[#allocation32_spill] sm:$0xff] }
 0x5db   :  { %v1882_v24 = vpop.xlane.xlu1 %1881 }
 0x5dc   :  { %v5065_v45 = vpop.eup %3901  ;;  %v1975_v28 = vmul.f32 1.442695, %v1913_v22  ;;  %v1914_v59 = vsub.f32 %v4923_v29, %v1882_v24  ;;  %3911 = vpow2.f32 %v1973_v39  ;;  %v5553_v39 = vld [vmem:[#allocation33_spill] sm:$0xff]  ;;  %v5554_v22 = vld [vmem:[#allocation34_spill] sm:$0xff]  ;;  %v5555_v24 = vld [vmem:[#allocation35_spill] sm:$0xff] }
 0x5dd   :  { %2025 = vadd.xlane.f32.xlu1 %v5063_v57  ;;  %2027 = vadd.xlane.f32.xlu0 %v5065_v45 }
 0x5de   :  { %3913 = vpow2.f32 %v1975_v28  ;;  %v1977_v26 = vmul.f32 1.442695, %v1914_v59  ;;  %v5070_v33 = vpop.eup %3903  ;;  %v5556_v28 = vld [vmem:[#allocation36_spill] sm:$0xff]  ;;  %v5557_v59 = vld [vmem:[#allocation37_spill] sm:$0xff] }
 0x5e0   :  { %v5072_v48 = vpop.eup %3905  ;;  %3915 = vpow2.f32 %v1977_v26  ;;  %v5558_v26 = vld [vmem:[#allocation38_spill] sm:$0xff] }
 0x5e1   :  { %2029 = vadd.xlane.f32.xlu1 %v5070_v33  ;;  %2031 = vadd.xlane.f32.xlu0 %v5072_v48 }
 0x5e2   :  { %v5076_v15 = vpop.eup %3907 }
 0x5e4   :  { %v5078_v1 = vpop.eup %3909 }
 0x5e5   :  { %2033 = vadd.xlane.f32.xlu1 %v5076_v15  ;;  %2035 = vadd.xlane.f32.xlu0 %v5078_v1 }
 0x5e6   :  { %v5082_v29 = vpop.eup %3911 }
 0x5e8   :  { %v5084_v9 = vpop.eup %3913 }
 0x5e9   :  { %2037 = vadd.xlane.f32.xlu1 %v5082_v29  ;;  %2039 = vadd.xlane.f32.xlu0 %v5084_v9 }
 0x5ea   :  { %v5088_v25 = vpop.eup %3915 }
 0x5ed   :  { %2041 = vadd.xlane.f32.xlu1 %v5088_v25  ;;  %1331 = vmax.xlane.f32.xlu0 %v4927_v37 }
 0x5f1   :  { %1333 = vmax.xlane.f32.xlu1 %v4929_v52  ;;  %1335 = vmax.xlane.f32.xlu0 %v4931_v46 }
 0x5f5   :  { %1337 = vmax.xlane.f32.xlu1 %v4933_v38  ;;  %1339 = vmax.xlane.f32.xlu0 %v4935_v60 }
 0x5f9   :  { %1341 = vmax.xlane.f32.xlu1 %v4937_v10  ;;  %1343 = vmax.xlane.f32.xlu0 %v4939_v41 }
 0x5fd   :  { %1345 = vmax.xlane.f32.xlu1 %v4941_v54  ;;  %1347 = vmax.xlane.f32.xlu0 %v4943_v61 }
 0x601   :  { %1349 = vmax.xlane.f32.xlu1 %v4945_v20  ;;  %1351 = vmax.xlane.f32.xlu0 %v4947_v23 }
 0x605   :  { %1353 = vmax.xlane.f32.xlu1 %v4949_v17  ;;  %1355 = vmax.xlane.f32.xlu0 %v4951_v18 }
 0x609   :  { %1357 = vmax.xlane.f32.xlu1 %v4953_v58  ;;  %1359 = vmax.xlane.f32.xlu0 %v4955_v43 }
 0x60d   :  { %1361 = vmax.xlane.f32.xlu1 %v4957_v3  ;;  %1363 = vmax.xlane.f32.xlu0 %v4959_v53 }
 0x611   :  { %1365 = vmax.xlane.f32.xlu1 %v4961_v49  ;;  %1367 = vmax.xlane.f32.xlu0 %v5545_v19 }
 0x615   :  { %1369 = vmax.xlane.f32.xlu1 %v5546_v8  ;;  %1371 = vmax.xlane.f32.xlu0 %v5547_v5 }
 0x619   :  { %1373 = vmax.xlane.f32.xlu1 %v5548_v55  ;;  %1375 = vmax.xlane.f32.xlu0 %v5549_v50 }
 0x61d   :  { %1377 = vmax.xlane.f32.xlu1 %v5550_v47  ;;  %1379 = vmax.xlane.f32.xlu0 %v5551_v12 }
 0x621   :  { %1381 = vmax.xlane.f32.xlu1 %v5552_v62  ;;  %1383 = vmax.xlane.f32.xlu0 %v5553_v39 }
 0x625   :  { %1385 = vmax.xlane.f32.xlu1 %v5554_v22  ;;  %1387 = vmax.xlane.f32.xlu0 %v5555_v24 }
 0x629   :  { %1389 = vmax.xlane.f32.xlu1 %v5556_v28  ;;  %1391 = vmax.xlane.f32.xlu0 %v5557_v59 }
 0x62d   :  { %1393 = vmax.xlane.f32.xlu1 %v5558_v26 }
 0x63a   :  { %v1980_v55 = vpop.xlane.xlu0 %1979 }
 0x63b   :  { %3917 = vrcp.f32 %v1980_v55 }
 0x63e   :  { %v1982_v50 = vpop.xlane.xlu1 %1981  ;;  %v1984_v47 = vpop.xlane.xlu0 %1983 }
 0x63f   :  { %3919 = vrcp.f32 %v1982_v50 }
 0x640   :  { %3921 = vrcp.f32 %v1984_v47 }
 0x642   :  { %v1986_v12 = vpop.xlane.xlu1 %1985  ;;  %v1988_v62 = vpop.xlane.xlu0 %1987 }
 0x643   :  { %3923 = vrcp.f32 %v1986_v12 }
 0x644   :  { %3925 = vrcp.f32 %v1988_v62 }
 0x645   :  { %v3918_v5 = vpop.eup %3917 }
 0x646   :  { %v1990_v39 = vpop.xlane.xlu1 %1989  ;;  %v1992_v22 = vpop.xlane.xlu0 %1991  ;;  %v2075_v26 = vmul.f32 %v3918_v5, %v4970_v40 }
 0x647   :  { %3927 = vrcp.f32 %v1990_v39 }
 0x648   :  { %3929 = vrcp.f32 %v1992_v22 }
 0x649   :  { %v3920_v24 = vpop.eup %3919 }
 0x64a   :  { %v1994_v28 = vpop.xlane.xlu1 %1993  ;;  %v1996_v59 = vpop.xlane.xlu0 %1995  ;;  %v2076_v55 = vmul.f32 %v3920_v24, %v4977_v7 }
 0x64b   :  { %v3922_v8 = vpop.eup %3921  ;;  %3931 = vrcp.f32 %v1994_v28 }
 0x64c   :  { %v2107_v50 = vpack.c.bf16 %v2076_v55, %v2075_v26  ;;  %3933 = vrcp.f32 %v1996_v59  ;;  %v2077_v12 = vmul.f32 %v3922_v8, %v4975_v63 }
 0x64d   :  { %v3924_v47 = vpop.eup %3923 }
 0x64e   :  { %v2078_v62 = vmul.f32 %v3924_v47, %v4983_v35  ;;  %v1998_v19 = vpop.xlane.xlu1 %1997  ;;  %3703 = vmatprep.mubr.bf16.mxu1 %v2107_v50  ;;  %v2000_v39 = vpop.xlane.xlu0 %1999 }
 0x64f   :  { %v3926_v49 = vpop.eup %3925  ;;  %3935 = vrcp.f32 %v1998_v19 }
 0x650   :  { %v2108_v22 = vpack.c.bf16 %v2078_v62, %v2077_v12  ;;  %3937 = vrcp.f32 %v2000_v39  ;;  %v2079_v5 = vmul.f32 %v3926_v49, %v4985_v16 }
 0x651   :  { %v3928_v53 = vpop.eup %3927 }
 0x652   :  { %v2002_v40 = vpop.xlane.xlu1 %2001  ;;  %3704 = vmatmul.mubr.bf16.vlgmr.msra.gmra.mrb[124].mxu1 %v2108_v22  ;;  %v2004_v7 = vpop.xlane.xlu0 %2003  ;;  %v2080_v24 = vmul.f32 %v3928_v53, %v4991_v0 }
 0x653   :  { %v3930_v28 = vpop.eup %3929  ;;  %3939 = vrcp.f32 %v2002_v40 }
 0x654   :  { %v2109_v63 = vpack.c.bf16 %v2080_v24, %v2079_v5  ;;  %3941 = vrcp.f32 %v2004_v7  ;;  %v2081_v19 = vmul.f32 %v3930_v28, %v4993_v6 }
 0x655   :  { %v3932_v8 = vpop.eup %3931 }
 0x656   :  { %v2006_v35 = vpop.xlane.xlu1 %2005  ;;  %3707 = vmatprep.mubr.bf16.mxu1 %v2109_v63  ;;  %v2008_v59 = vpop.xlane.xlu0 %2007  ;;  %v2082_v26 = vmul.f32 %v3932_v8, %v4999_v4 }
 0x657   :  { %v3934_v55 = vpop.eup %3933  ;;  %3943 = vrcp.f32 %v2006_v35 }
 0x658   :  { %v2110_v50 = vpack.c.bf16 %v2082_v26, %v2081_v19  ;;  %3945 = vrcp.f32 %v2008_v59  ;;  %v2083_v16 = vmul.f32 %v3934_v55, %v5001_v30 }
 0x659   :  { %v3936_v47 = vpop.eup %3935 }
 0x65a   :  { %v2010_v49 = vpop.xlane.xlu1 %2009  ;;  %3708 = vmatmul.mubr.bf16.gmra.mrb[128].mxu1 %v2110_v50  ;;  %v2012_v53 = vpop.xlane.xlu0 %2011  ;;  %v2084_v0 = vmul.f32 %v3936_v47, %v5007_v32 }
 0x65b   :  { %v3938_v12 = vpop.eup %3937  ;;  %3947 = vrcp.f32 %v2010_v49 }
 0x65c   :  { %v2111_v62 = vpack.c.bf16 %v2084_v0, %v2083_v16  ;;  %3949 = vrcp.f32 %v2012_v53  ;;  %v2085_v22 = vmul.f32 %v3938_v12, %v5009_v44 }
 0x65d   :  { %v3940_v39 = vpop.eup %3939 }
 0x65e   :  { %v2014_v6 = vpop.xlane.xlu1 %2013  ;;  %3711 = vmatprep.mubr.bf16.mxu1 %v2111_v62  ;;  %v2016_v4 = vpop.xlane.xlu0 %2015  ;;  %v2086_v40 = vmul.f32 %v3940_v39, %v5015_v27 }
 0x65f   :  { %v3942_v7 = vpop.eup %3941  ;;  %3951 = vrcp.f32 %v2014_v6 }
 0x660   :  { %v2112_v5 = vpack.c.bf16 %v2086_v40, %v2085_v22  ;;  %3953 = vrcp.f32 %v2016_v4  ;;  %v2087_v28 = vmul.f32 %v3942_v7, %v5017_v14 }
 0x661   :  { %v3944_v24 = vpop.eup %3943 }
 0x662   :  { %v2018_v30 = vpop.xlane.xlu1 %2017  ;;  %3712 = vmatmul.mubr.bf16.gmra.mrb[132].mxu1 %v2112_v5  ;;  %v2020_v32 = vpop.xlane.xlu0 %2019  ;;  %v2088_v63 = vmul.f32 %v3944_v24, %v5023_v56 }
 0x663   :  { %v3946_v8 = vpop.eup %3945  ;;  %3955 = vrcp.f32 %v2018_v30 }
 0x664   :  { %v2113_v35 = vpack.c.bf16 %v2088_v63, %v2087_v28  ;;  %3957 = vrcp.f32 %v2020_v32  ;;  %v2089_v19 = vmul.f32 %v3946_v8, %v5025_v31 }
 0x665   :  { %v3948_v59 = vpop.eup %3947 }
 0x666   :  { %v2022_v44 = vpop.xlane.xlu1 %2021  ;;  %3715 = vmatprep.mubr.bf16.mxu1 %v2113_v35  ;;  %v2024_v27 = vpop.xlane.xlu0 %2023  ;;  %v2090_v26 = vmul.f32 %v3948_v59, %v5031_v11 }
 0x667   :  { %v3950_v55 = vpop.eup %3949  ;;  %3959 = vrcp.f32 %v2022_v44 }
 0x668   :  { %v2114_v50 = vpack.c.bf16 %v2090_v26, %v2089_v19  ;;  %3961 = vrcp.f32 %v2024_v27  ;;  %v2091_v49 = vmul.f32 %v3950_v55, %v5033_v2 }
 0x669   :  { %v3952_v47 = vpop.eup %3951 }
 0x66a   :  { %v2026_v14 = vpop.xlane.xlu1 %2025  ;;  %3716 = vmatmul.mubr.bf16.gmra.mrb[136].mxu1 %v2114_v50  ;;  %v2028_v56 = vpop.xlane.xlu0 %2027  ;;  %v2092_v53 = vmul.f32 %v3952_v47, %v5039_v36 }
 0x66b   :  { %v3954_v16 = vpop.eup %3953  ;;  %3963 = vrcp.f32 %v2026_v14 }
 0x66c   :  { %v2115_v0 = vpack.c.bf16 %v2092_v53, %v2091_v49  ;;  %3965 = vrcp.f32 %v2028_v56  ;;  %v2093_v62 = vmul.f32 %v3954_v16, %v5041_v13 }
 0x66d   :  { %v3956_v12 = vpop.eup %3955 }
 0x66e   :  { %v2030_v31 = vpop.xlane.xlu1 %2029  ;;  %3719 = vmatprep.mubr.bf16.mxu1 %v2115_v0  ;;  %v2032_v11 = vpop.xlane.xlu0 %2031  ;;  %v2094_v39 = vmul.f32 %v3956_v12, %v5047_v21 }
 0x66f   :  { %v3958_v6 = vpop.eup %3957  ;;  %3967 = vrcp.f32 %v2030_v31 }
 0x670   :  { %v2116_v4 = vpack.c.bf16 %v2094_v39, %v2093_v62  ;;  %3969 = vrcp.f32 %v2032_v11  ;;  %v2095_v40 = vmul.f32 %v3958_v6, %v5049_v51 }
 0x671   :  { %v3960_v22 = vpop.eup %3959 }
 0x672   :  { %v2034_v2 = vpop.xlane.xlu1 %2033  ;;  %3720 = vmatmul.mubr.bf16.gmra.mrb[140].mxu1 %v2116_v4  ;;  %v2036_v36 = vpop.xlane.xlu0 %2035  ;;  %v2096_v7 = vmul.f32 %v3960_v22, %v5055_v34 }
 0x673   :  { %v3962_v5 = vpop.eup %3961  ;;  %3971 = vrcp.f32 %v2034_v2 }
 0x674   :  { %v2117_v24 = vpack.c.bf16 %v2096_v7, %v2095_v40  ;;  %3973 = vrcp.f32 %v2036_v36  ;;  %v2097_v32 = vmul.f32 %v3962_v5, %v5057_v42 }
 0x675   :  { %v3964_v30 = vpop.eup %3963 }
 0x676   :  { %v2038_v13 = vpop.xlane.xlu1 %2037  ;;  %3723 = vmatprep.mubr.bf16.mxu1 %v2117_v24  ;;  %v2040_v21 = vpop.xlane.xlu0 %2039  ;;  %v2098_v28 = vmul.f32 %v3964_v30, %v5063_v57 }
 0x677   :  { %v3966_v63 = vpop.eup %3965  ;;  %3975 = vrcp.f32 %v2038_v13 }
 0x678   :  { %v2118_v8 = vpack.c.bf16 %v2098_v28, %v2097_v32  ;;  %3977 = vrcp.f32 %v2040_v21  ;;  %v2099_v59 = vmul.f32 %v3966_v63, %v5065_v45 }
 0x679   :  { %v3968_v35 = vpop.eup %3967 }
 0x67a   :  { %v2042_v51 = vpop.xlane.xlu1 %2041  ;;  %3724 = vmatmul.mubr.bf16.gmra.mrb[144].mxu1 %v2118_v8  ;;  %v1332_v34 = vpop.xlane.xlu0 %1331  ;;  %v2100_v44 = vmul.f32 %v3968_v35, %v5070_v33 }
 0x67b   :  { %v3970_v27 = vpop.eup %3969  ;;  %3979 = vrcp.f32 %v2042_v51  ;;  %v1395_v19 = vsub.f32 %v4927_v37, %v1332_v34 }
 0x67c   :  { %v2119_v26 = vpack.c.bf16 %v2100_v44, %v2099_v59  ;;  %v2101_v47 = vmul.f32 %v3970_v27, %v5072_v48 }
 0x67d   :  { %v3972_v42 = vpop.eup %3971  ;;  %v1427_v55 = vmul.f32 1.442695, %v1395_v19 }
 0x67e   :  { %3727 = vmatprep.mubr.bf16.mxu1 %v2119_v26  ;;  %v1334_v57 = vpop.xlane.xlu1 %1333  ;;  %v1336_v50 = vpop.xlane.xlu0 %1335  ;;  %v2102_v14 = vmul.f32 %v3972_v42, %v5076_v15 }
 0x67f   :  { %v3974_v56 = vpop.eup %3973  ;;  %3981 = vpow2.f32 %v1427_v55  ;;  %v1396_v45 = vsub.f32 %v4929_v52, %v1334_v57  ;;  %v1397_v33 = vsub.f32 %v4931_v46, %v1336_v50 }
 0x680   :  { %v2120_v49 = vpack.c.bf16 %v2102_v14, %v2101_v47  ;;  %v2103_v31 = vmul.f32 %v3974_v56, %v5078_v1 }
 0x681   :  { %v3976_v53 = vpop.eup %3975  ;;  %v1429_v16 = vmul.f32 1.442695, %v1396_v45  ;;  %v1431_v37 = vmul.f32 1.442695, %v1397_v33 }
 0x682   :  { %3728 = vmatmul.mubr.bf16.gmra.mrb[148].mxu1 %v2120_v49  ;;  %v1338_v0 = vpop.xlane.xlu1 %1337  ;;  %v1340_v12 = vpop.xlane.xlu0 %1339  ;;  %v2104_v11 = vmul.f32 %v3976_v53, %v5082_v29 }
 0x683   :  { %v3978_v48 = vpop.eup %3977  ;;  %3983 = vpow2.f32 %v1429_v16  ;;  %v1398_v15 = vsub.f32 %v4933_v38, %v1338_v0  ;;  %v1399_v62 = vsub.f32 %v4935_v60, %v1340_v12  ;;  %v5560_v12 = vld [vmem:[#allocation40_spill] sm:$0xff] }
 0x684   :  { %3985 = vpow2.f32 %v1431_v37  ;;  %v2121_v52 = vpack.c.bf16 %v2104_v11, %v2103_v31  ;;  %v2105_v2 = vmul.f32 %v3978_v48, %v5084_v9 }
 0x685   :  { %v3980_v46 = vpop.eup %3979  ;;  %v1433_v39 = vmul.f32 1.442695, %v1398_v15  ;;  %v1435_v6 = vmul.f32 1.442695, %v1399_v62 }
 0x686   :  { %3731 = vmatprep.mubr.bf16.mxu1 %v2121_v52  ;;  %v1342_v4 = vpop.xlane.xlu1 %1341  ;;  %v1344_v22 = vpop.xlane.xlu0 %1343  ;;  %v2106_v1 = vmul.f32 %v3980_v46, %v5088_v25 }
 0x687   :  { %3987 = vpow2.f32 %v1433_v39  ;;  %v1400_v29 = vsub.f32 %v4937_v10, %v1342_v4  ;;  %v1401_v36 = vsub.f32 %v4939_v41, %v1344_v22  ;;  %v5563_v22 = vld [vmem:[#allocation27_spill] sm:$0xff] }
 0x688   :  { %3989 = vpow2.f32 %v1435_v6  ;;  %v2122_v38 = vpack.c.bf16 %v2106_v1, %v2105_v2  ;;  %v5562_v6 = vld [vmem:[#allocation26_spill] sm:$0xff] }
 0x689   :  { %v5162_v60 = vpop.eup %3981  ;;  %v1437_v40 = vmul.f32 1.442695, %v1400_v29  ;;  %v1439_v7 = vmul.f32 1.442695, %v1401_v36 }
 0x68a   :  { %3732 = vmatmul.mubr.bf16.gmra.mrb[152].mxu1 %v2122_v38  ;;  %v1346_v5 = vpop.xlane.xlu1 %1345  ;;  %1491 = vadd.xlane.f32.xlu0 %v5162_v60  ;;  %v1348_v24 = vpop.xlane.xlu0 %1347 }
 0x68b   :  { %3991 = vpow2.f32 %v1437_v40  ;;  %v1402_v9 = vsub.f32 %v4941_v54, %v1346_v5  ;;  %v1403_v25 = vsub.f32 %v4943_v61, %v1348_v24  ;;  %v5564_v5 = vld [vmem:[#allocation28_spill] sm:$0xff] }
 0x68c   :  { %3993 = vpow2.f32 %v1439_v7 }
 0x68d   :  { %v5167_v10 = vpop.eup %3983  ;;  %v1441_v41 = vmul.f32 1.442695, %v1402_v9  ;;  %v1443_v30 = vmul.f32 1.442695, %v1403_v25  ;;  %v5565_v9 = vld [vmem:[#allocation29_spill] sm:$0xff] }
 0x68e   :  { %v5169_v13 = vpop.eup %3985  ;;  %1493 = vadd.xlane.f32.xlu1 %v5167_v10  ;;  %v1350_v21 = vpop.xlane.xlu1 %1349 }
 0x68f   :  { %v1352_v32 = vpop.xlane.xlu0 %1351  ;;  %3995 = vpow2.f32 %v1441_v41  ;;  %v1404_v28 = vsub.f32 %v4945_v20, %v1350_v21  ;;  %1495 = vadd.xlane.f32.xlu0 %v5169_v13 }
 0x690   :  { %v1405_v54 = vsub.f32 %v4947_v23, %v1352_v32  ;;  %3997 = vpow2.f32 %v1443_v30 }
 0x691   :  { %v5175_v61 = vpop.eup %3987  ;;  %v1445_v63 = vmul.f32 1.442695, %v1404_v28 }
 0x692   :  { %v1447_v8 = vmul.f32 1.442695, %v1405_v54  ;;  %v5177_v35 = vpop.eup %3989  ;;  %1497 = vadd.xlane.f32.xlu1 %v5175_v61  ;;  %v1354_v51 = vpop.xlane.xlu1 %1353 }
 0x693   :  { %v1356_v34 = vpop.xlane.xlu0 %1355  ;;  %3999 = vpow2.f32 %v1445_v63  ;;  %v1406_v59 = vsub.f32 %v4949_v17, %v1354_v51  ;;  %1499 = vadd.xlane.f32.xlu0 %v5177_v35  ;;  %v5566_v63 = vld [vmem:[#allocation30_spill] sm:$0xff]  ;;  %v5567_v51 = vld [vmem:[#allocation31_spill] sm:$0xff] }
 0x694   :  { %v1407_v20 = vsub.f32 %v4951_v18, %v1356_v34  ;;  %4001 = vpow2.f32 %v1447_v8 }
 0x695   :  { %v5183_v23 = vpop.eup %3991  ;;  %v1449_v44 = vmul.f32 1.442695, %v1406_v59 }
 0x696   :  { %v1451_v27 = vmul.f32 1.442695, %v1407_v20  ;;  %v5185_v19 = vpop.eup %3993  ;;  %1501 = vadd.xlane.f32.xlu1 %v5183_v23  ;;  %v1358_v26 = vpop.xlane.xlu1 %1357 }
 0x697   :  { %v1360_v42 = vpop.xlane.xlu0 %1359  ;;  %4003 = vpow2.f32 %v1449_v44  ;;  %v1408_v55 = vsub.f32 %v4953_v58, %v1358_v26  ;;  %1503 = vadd.xlane.f32.xlu0 %v5185_v19  ;;  %v5559_v58 = vld [vmem:[#allocation39_spill] sm:$0xff] }
 0x698   :  { %v1409_v17 = vsub.f32 %v4955_v43, %v1360_v42  ;;  %4005 = vpow2.f32 %v1451_v27 }
 0x699   :  { %v5191_v18 = vpop.eup %3995  ;;  %v1453_v57 = vmul.f32 1.442695, %v1408_v55  ;;  %v5568_v55 = vld [vmem:[#allocation32_spill] sm:$0xff] }
 0x69a   :  { %v1455_v50 = vmul.f32 1.442695, %v1409_v17  ;;  %v5193_v47 = vpop.eup %3997  ;;  %1505 = vadd.xlane.f32.xlu1 %v5191_v18  ;;  %v1362_v14 = vpop.xlane.xlu1 %1361 }
 0x69b   :  { %v1364_v56 = vpop.xlane.xlu0 %1363  ;;  %4007 = vpow2.f32 %v1453_v57  ;;  %v1410_v45 = vsub.f32 %v4957_v3, %v1362_v14  ;;  %1507 = vadd.xlane.f32.xlu0 %v5193_v47  ;;  %v5561_v3 = vld [vmem:[#allocation25_spill] sm:$0xff] }
 0x69c   :  { %v1411_v33 = vsub.f32 %v5559_v58, %v1364_v56  ;;  %4009 = vpow2.f32 %v1455_v50  ;;  %v5569_v57 = vld [vmem:[#allocation33_spill] sm:$0xff] }
 0x69d   :  { %v5199_v43 = vpop.eup %3999  ;;  %v1457_v49 = vmul.f32 1.442695, %v1410_v45 }
 0x69e   :  { %v1459_v53 = vmul.f32 1.442695, %v1411_v33  ;;  %v5201_v16 = vpop.eup %4001  ;;  %1509 = vadd.xlane.f32.xlu1 %v5199_v43  ;;  %v1366_v37 = vpop.xlane.xlu1 %1365 }
 0x69f   :  { %v1368_v0 = vpop.xlane.xlu0 %1367  ;;  %4011 = vpow2.f32 %v1457_v49  ;;  %v1412_v31 = vsub.f32 %v5560_v12, %v1366_v37  ;;  %1511 = vadd.xlane.f32.xlu0 %v5201_v16 }
 0x6a0   :  { %v1413_v11 = vsub.f32 %v5561_v3, %v1368_v0  ;;  %4013 = vpow2.f32 %v1459_v53  ;;  %v5570_v53 = vld [vmem:[#allocation34_spill] sm:$0xff]  ;;  %v5571_v0 = vld [vmem:[#allocation35_spill] sm:$0xff] }
 0x6a1   :  { %v5207_v48 = vpop.eup %4003  ;;  %v1461_v15 = vmul.f32 1.442695, %v1412_v31 }
 0x6a2   :  { %v1463_v62 = vmul.f32 1.442695, %v1413_v11  ;;  %v5209_v52 = vpop.eup %4005  ;;  %1513 = vadd.xlane.f32.xlu1 %v5207_v48  ;;  %v1370_v46 = vpop.xlane.xlu1 %1369 }
 0x6a3   :  { %v1372_v39 = vpop.xlane.xlu0 %1371  ;;  %4015 = vpow2.f32 %v1461_v15  ;;  %v1414_v4 = vsub.f32 %v5562_v6, %v1370_v46  ;;  %1515 = vadd.xlane.f32.xlu0 %v5209_v52 }
 0x6a4   :  { %v1415_v2 = vsub.f32 %v5563_v22, %v1372_v39  ;;  %4017 = vpow2.f32 %v1463_v62  ;;  %v5572_v39 = vld [vmem:[#allocation36_spill] sm:$0xff] }
 0x6a5   :  { %v5215_v1 = vpop.eup %4007  ;;  %v1465_v29 = vmul.f32 1.442695, %v1414_v4  ;;  %v5573_v4 = vld [vmem:[#allocation37_spill] sm:$0xff] }
 0x6a6   :  { %v1467_v36 = vmul.f32 1.442695, %v1415_v2  ;;  %v5217_v38 = vpop.eup %4009  ;;  %1517 = vadd.xlane.f32.xlu1 %v5215_v1  ;;  %v1374_v40 = vpop.xlane.xlu1 %1373 }
 0x6a7   :  { %v1376_v7 = vpop.xlane.xlu0 %1375  ;;  %4019 = vpow2.f32 %v1465_v29  ;;  %v1416_v24 = vsub.f32 %v5564_v5, %v1374_v40  ;;  %1519 = vadd.xlane.f32.xlu0 %v5217_v38  ;;  %v5574_v5 = vld [vmem:[#allocation38_spill] sm:$0xff] }
 0x6a8   :  { %v1417_v25 = vsub.f32 %v5565_v9, %v1376_v7  ;;  %4021 = vpow2.f32 %v1467_v36 }
 0x6a9   :  { %v5223_v41 = vpop.eup %4011  ;;  %v1469_v30 = vmul.f32 1.442695, %v1416_v24 }
 0x6aa   :  { %v1471_v21 = vmul.f32 1.442695, %v1417_v25  ;;  %v5225_v32 = vpop.eup %4013  ;;  %1521 = vadd.xlane.f32.xlu1 %v5223_v41  ;;  %v1378_v28 = vpop.xlane.xlu1 %1377 }
 0x6ab   :  { %v1380_v54 = vpop.xlane.xlu0 %1379  ;;  %4023 = vpow2.f32 %v1469_v30  ;;  %v1418_v8 = vsub.f32 %v5566_v63, %v1378_v28  ;;  %1523 = vadd.xlane.f32.xlu0 %v5225_v32 }
 0x6ac   :  { %v1419_v34 = vsub.f32 %v5567_v51, %v1380_v54  ;;  %4025 = vpow2.f32 %v1471_v21  ;;  %v2349_v51 = vld [vmem:[#allocation8] sm:$0xff] }
 0x6ad   :  { %v5231_v59 = vpop.eup %4015  ;;  %v1473_v20 = vmul.f32 1.442695, %v1418_v8 }
 0x6ae   :  { %v1475_v44 = vmul.f32 1.442695, %v1419_v34  ;;  %v5233_v27 = vpop.eup %4017  ;;  %1525 = vadd.xlane.f32.xlu1 %v5231_v59  ;;  %v1382_v26 = vpop.xlane.xlu1 %1381  ;;  %v2350_v34 = vld [vmem:[#allocation8 + $0x8] sm:$0xff] }
 0x6af   :  { %v1384_v42 = vpop.xlane.xlu0 %1383  ;;  %4027 = vpow2.f32 %v1473_v20  ;;  %v1420_v17 = vsub.f32 %v5568_v55, %v1382_v26  ;;  %1527 = vadd.xlane.f32.xlu0 %v5233_v27  ;;  %v2511_v20 = vld [vmem:[#allocation9] sm:$0xff]  ;;  %v2384_v26 = vunpack.c.h.bf16 %v2350_v34 }
 0x6b0   :  { %v1421_v50 = vsub.f32 %v5569_v57, %v1384_v42  ;;  %4029 = vpow2.f32 %v1475_v44  ;;  %v2382_v44 = vunpack.c.h.bf16 %v2349_v51  ;;  %v2512_v42 = vld [vmem:[#allocation9 + $0x8] sm:$0xff]  ;;  %v2544_v55 = vunpack.c.h.bf16 %v2511_v20 }
 0x6b1   :  { %v5239_v14 = vpop.eup %4019  ;;  %v1477_v56 = vmul.f32 1.442695, %v1420_v17  ;;  %v2381_v17 = vunpack.c.l.bf16 %v2349_v51  ;;  %v2383_v57 = vunpack.c.l.bf16 %v2350_v34 }
 0x6b2   :  { %v1479_v45 = vmul.f32 1.442695, %v1421_v50  ;;  %v5241_v58 = vpop.eup %4021  ;;  %1529 = vadd.xlane.f32.xlu1 %v5239_v14  ;;  %v1386_v33 = vpop.xlane.xlu1 %1385  ;;  %v5289_v50 = vstv %s5492_s0  ;;  %s4359_s0 = smov [#allocation18]  }
 0x6b3   :  { %v1388_v49 = vpop.xlane.xlu0 %1387  ;;  %4031 = vpow2.f32 %v1477_v56  ;;  %v1422_v37 = vsub.f32 %v5570_v53, %v1386_v33  ;;  %1531 = vadd.xlane.f32.xlu0 %v5241_v58  ;;  %v2543_v56 = vunpack.c.l.bf16 %v2511_v20  ;;  %v2449_v33 = vmul.f32 %v5289_v50, %v2384_v26  ;;  %s3014_s25 = sshll.u32 %s4359_s0, 4  ;;  %s3015_s25 = int_to_ptr.vmem [resolvable:$true] %s3014_s25 }
 0x6b4   :  { %v1423_v12 = vsub.f32 %v5571_v0, %v1388_v49  ;;  %4033 = vpow2.f32 %v1479_v45  ;;  %v2447_v45 = vmul.f32 %v5289_v50, %v2382_v44  ;;  %v2545_v49 = vunpack.c.l.bf16 %v2512_v42  ;;  %s4312_s6 = scalar_lea.vmem %s3015_s25, 4096  ;;  %p4317_p3 = scmp.lt.s32.totalorder %s3015_s25, %s3015_s25 }
 0x6b5   :  { %v5247_v31 = vpop.eup %4023  ;;  %v1481_v3 = vmul.f32 1.442695, %v1422_v37  ;;  %v2546_v53 = vunpack.c.h.bf16 %v2512_v42  ;;  %v2446_v37 = vmul.f32 %v5289_v50, %v2381_v17  ;;  %v2448_v0 = vmul.f32 %v5289_v50, %v2383_v57  ;;  %p4313_p2 = scmp.ne.s32.totalorder %s3015_s25, %s4312_s6  ;;  %p4318_p4 = scmp.lt.s32.totalorder %s4312_s6, %s4312_s6 }
 0x6b6   :  { %v1483_v11 = vmul.f32 1.442695, %v1423_v12  ;;  %v5249_v15 = vpop.eup %4025  ;;  %1533 = vadd.xlane.f32.xlu1 %v5247_v31  ;;  %v1390_v62 = vpop.xlane.xlu1 %1389  ;;  %v5295_v12 = vstv %s2510_s12 }
 0x6b7   :  { %v1392_v46 = vpop.xlane.xlu0 %1391  ;;  %4035 = vpow2.f32 %v1481_v3  ;;  %v1424_v6 = vsub.f32 %v5572_v39, %v1390_v62  ;;  %1535 = vadd.xlane.f32.xlu0 %v5249_v15  ;;  %v2608_v3 = vmul.f32 %v5295_v12, %v2543_v56  ;;  %v2610_v62 = vmul.f32 %v5295_v12, %v2545_v49  ;;  %p4319_p5 = por %p4318_p4, %p4317_p3 }
 0x6b8   :  { %v1425_v22 = vsub.f32 %v5573_v4, %v1392_v46  ;;  %4037 = vpow2.f32 %v1483_v11  ;;  %v2609_v11 = vmul.f32 %v5295_v12, %v2544_v55  ;;  %v2611_v46 = vmul.f32 %v5295_v12, %v2546_v53 }
 0x6b9   :  { %v5255_v2 = vpop.eup %4027  ;;  %v1485_v29 = vmul.f32 1.442695, %v1424_v6  ;;  %v5301_v4 = vadd.f32 %v2608_v3, %v2446_v37  ;;  %p4320_p6 = pnand %p4319_p5, %p4313_p2 }
 0x6ba   :  { %v1487_v36 = vmul.f32 1.442695, %v1425_v22  ;;  %v5257_v40 = vpop.eup %4029  ;;  %1537 = vadd.xlane.f32.xlu1 %v5255_v2  ;;  %v1394_v7 = vpop.xlane.xlu1 %1393  ;;  %v2673_v39 = vadd.f32 %v2609_v11, %v2447_v45  ;;  %v2675_v6 = vadd.f32 %v2611_v46, %v2449_v33  ;;  %v5303_v22 = vadd.f32 %v2610_v62, %v2448_v0 }
 0x6bb   :  { %4039 = vpow2.f32 %v1485_v29  ;;  %v1426_v24 = vsub.f32 %v5574_v5, %v1394_v7  ;;  %1539 = vadd.xlane.f32.xlu0 %v5257_v40 }
 0x6bc   :  { %4041 = vpow2.f32 %v1487_v36  ;;  %v2737_v29 = vpack.c.bf16 %v2675_v6, %v2673_v39 }
 0x6bd   :  { %v5262_v9 = vpop.eup %4031  ;;  %v1489_v25 = vmul.f32 1.442695, %v1426_v24 }
 0x6be   :  { %v5264_v30 = vpop.eup %4033  ;;  %1541 = vadd.xlane.f32.xlu1 %v5262_v9  ;;  %2816 = vmatprep.mubr.bf16.mxu0 %v2737_v29 }
 0x6bf   :  { %4043 = vpow2.f32 %v1489_v25  ;;  %1543 = vadd.xlane.f32.xlu0 %v5264_v30 }
 0x6c1   :  { %v5268_v21 = vpop.eup %4035 }
 0x6c2   :  { %v5270_v28 = vpop.eup %4037  ;;  %1545 = vadd.xlane.f32.xlu1 %v5268_v21 }
 0x6c3   :  { %5575 = vst [vmem:[#allocation39_spill] sm:$0xff] %v5270_v28  ;;  %1547 = vadd.xlane.f32.xlu0 %v5270_v28 }
 0x6c5   :  { %v5274_v54 = vpop.eup %4039 }
 0x6c6   :  { %5576 = vst [vmem:[#allocation40_spill] sm:$0xff] %v5274_v54  ;;  %v5276_v63 = vpop.eup %4041  ;;  %1549 = vadd.xlane.f32.xlu1 %v5274_v54 }
 0x6c7   :  { %5577 = vst [vmem:[#allocation25_spill] sm:$0xff] %v5276_v63  ;;  %1551 = vadd.xlane.f32.xlu0 %v5276_v63 }
 0x6c9   :  { %v5280_v8 = vpop.eup %4043 }
 0x6ca   :  { %5578 = vst [vmem:[#allocation26_spill] sm:$0xff] %v5280_v8  ;;  %1553 = vadd.xlane.f32.xlu1 %v5280_v8 }
 0x725   :  { %v3705_v7 = vpop.f32.mrb[124].mxu1 }
 0x726   :  { %v2221_v5 = vpop.f32.mrb[125].mxu1 }
 0x727   :  { %v3706_v24 = vpop.f32.mrb[126].mxu1 }
 0x728   :  { %v2769_v25 = vpack.c.bf16 %v3706_v24, %v3705_v7  ;;  %v2224_v51 = vpop.f32.mrb[127].mxu1 }
 0x729   :  { %v2768_v34 = vpack.c.bf16 %v2224_v51, %v2221_v5 }
 0x72d   :  { %v3709_v20 = vpop.f32.mrb[128].mxu1 }
 0x72e   :  { %v2237_v44 = vpop.f32.mrb[129].mxu1 }
 0x72f   :  { %v3710_v26 = vpop.f32.mrb[130].mxu1 }
 0x730   :  { %v2771_v42 = vpack.c.bf16 %v3710_v26, %v3709_v20  ;;  %v2240_v55 = vpop.f32.mrb[131].mxu1 }
 0x731   :  { %v2770_v17 = vpack.c.bf16 %v2240_v55, %v2237_v44 }
 0x735   :  { %v3713_v57 = vpop.f32.mrb[132].mxu1 }
 0x736   :  { %v2253_v56 = vpop.f32.mrb[133].mxu1 }
 0x737   :  { %v3714_v45 = vpop.f32.mrb[134].mxu1 }
 0x738   :  { %v2773_v33 = vpack.c.bf16 %v3714_v45, %v3713_v57  ;;  %v2256_v49 = vpop.f32.mrb[135].mxu1 }
 0x739   :  { %v2772_v53 = vpack.c.bf16 %v2256_v49, %v2253_v56 }
 0x73d   :  { %v5307_v37 = vpop.f32.mrb[136].mxu1 }
 0x73e   :  { %v5309_v0 = vpop.f32.mrb[137].mxu1 }
 0x73f   :  { %v5311_v3 = vpop.f32.mrb[138].mxu1 }
 0x740   :  { %v5315_v62 = vpop.f32.mrb[139].mxu1 }
 0x741   :  { %v2774_v46 = vpack.c.bf16 %v5315_v62, %v5309_v0 }
 0x745   :  { %v3721_v39 = vpop.f32.mrb[140].mxu1 }
 0x746   :  { %v2285_v6 = vpop.f32.mrb[141].mxu1 }
 0x747   :  { %v3722_v29 = vpop.f32.mrb[142].mxu1 }
 0x748   :  { %v2777_v7 = vpack.c.bf16 %v3722_v29, %v3721_v39  ;;  %v2288_v5 = vpop.f32.mrb[143].mxu1  ;;  %v2351_v39 = vld [vmem:[#allocation8 + $0x10] sm:$0xff] }
 0x749   :  { %v2776_v24 = vpack.c.bf16 %v2288_v5, %v2285_v6  ;;  %v2513_v29 = vld [vmem:[#allocation9 + $0x10] sm:$0xff]  ;;  %v2386_v5 = vunpack.c.h.bf16 %v2351_v39  ;;  %v2385_v11 = vunpack.c.l.bf16 %v2351_v39 }
 0x74a   :  { %v2547_v8 = vunpack.c.l.bf16 %v2513_v29 }
 0x74b   :  { %3447 = vmatprep.subr.bf16.mxu0 %v2776_v24 }
 0x74c   :  { %3448 = vmatpush3.bf16.msra.mxu0 %v2768_v34  ;;  %v2352_v34 = vld [vmem:[#allocation8 + $0x18] sm:$0xff]  ;;  %v2612_v28 = vmul.f32 %v5295_v12, %v2547_v8 }
 0x74d   :  { %v3725_v51 = vpop.f32.mrb[144].mxu1  ;;  %3449 = vmatprep.subr.bf16.mxu0 %v2777_v7  ;;  %v2514_v7 = vld [vmem:[#allocation9 + $0x18] sm:$0xff]  ;;  %v2388_v24 = vunpack.c.h.bf16 %v2352_v34 }
 0x74e   :  { %v2301_v20 = vpop.f32.mrb[145].mxu1  ;;  %v2549_v63 = vunpack.c.l.bf16 %v2514_v7 }
 0x74f   :  { %v3726_v44 = vpop.f32.mrb[146].mxu1 }
 0x750   :  { %v2779_v26 = vpack.c.bf16 %v3726_v44, %v3725_v51  ;;  %v2304_v55 = vpop.f32.mrb[147].mxu1  ;;  %3450 = vmatpush3.bf16.msra.mxu0 %v2769_v25  ;;  %v2548_v25 = vunpack.c.h.bf16 %v2513_v29  ;;  %v2550_v51 = vunpack.c.h.bf16 %v2514_v7  ;;  %v2614_v39 = vmul.f32 %v5295_v12, %v2549_v63  ;;  %v2517_v63 = vld [vmem:[#allocation9 + $0x30] sm:$0xff] }
 0x751   :  { %v2778_v57 = vpack.c.bf16 %v2304_v55, %v2301_v20  ;;  %v2353_v55 = vld [vmem:[#allocation8 + $0x20] sm:$0xff] }
 0x753   :  { %3451 = vmatprep.subr.bf16.mxu0 %v2778_v57 }
 0x754   :  { %3452 = vmatpush3.bf16.msra.mxu0 %v2770_v17 }
 0x755   :  { %v3729_v56 = vpop.f32.mrb[148].mxu1  ;;  %3453 = vmatprep.subr.bf16.mxu0 %v2779_v26  ;;  %v2451_v26 = vmul.f32 %v5289_v50, %v2386_v5  ;;  %v2390_v5 = vunpack.c.h.bf16 %v2353_v55 }
 0x756   :  { %v2317_v45 = vpop.f32.mrb[149].mxu1 }
 0x757   :  { %v3730_v49 = vpop.f32.mrb[150].mxu1 }
 0x758   :  { %v2781_v0 = vpack.c.bf16 %v3730_v49, %v3729_v56  ;;  %v2320_v62 = vpop.f32.mrb[151].mxu1  ;;  %3454 = vmatpush3.bf16.msra.mxu0 %v2771_v42  ;;  %v2453_v56 = vmul.f32 %v5289_v50, %v2388_v24  ;;  %v2615_v49 = vmul.f32 %v5295_v12, %v2550_v51 }
 0x759   :  { %v2780_v6 = vpack.c.bf16 %v2320_v62, %v2317_v45  ;;  %v2613_v45 = vmul.f32 %v5295_v12, %v2548_v25  ;;  %v2515_v62 = vld [vmem:[#allocation9 + $0x20] sm:$0xff]  ;;  %v2450_v25 = vmul.f32 %v5289_v50, %v2385_v11  ;;  %v2355_v11 = vld [vmem:[#allocation8 + $0x30] sm:$0xff] }
 0x75a   :  { %v2679_v24 = vadd.f32 %v2615_v49, %v2453_v56  ;;  %v2356_v56 = vld [vmem:[#allocation8 + $0x38] sm:$0xff] }
 0x75b   :  { %3455 = vmatprep.subr.bf16.mxu0 %v2780_v6  ;;  %v2516_v6 = vld [vmem:[#allocation9 + $0x28] sm:$0xff]  ;;  %v2676_v49 = vadd.f32 %v2612_v28, %v2450_v25 }
 0x75c   :  { %3456 = vmatpush3.bf16.msra.mxu0 %v2772_v53  ;;  %v2354_v53 = vld [vmem:[#allocation8 + $0x28] sm:$0xff]  ;;  %v2553_v8 = vunpack.c.l.bf16 %v2516_v6 }
 0x75d   :  { %v3733_v20 = vpop.f32.mrb[152].mxu1  ;;  %3457 = vmatprep.subr.bf16.mxu0 %v2781_v0  ;;  %v2387_v0 = vunpack.c.l.bf16 %v2352_v34  ;;  %v2392_v54 = vunpack.c.h.bf16 %v2354_v53  ;;  %v2455_v34 = vmul.f32 %v5289_v50, %v2390_v5 }
 0x75e   :  { %v2333_v17 = vpop.f32.mrb[153].mxu1 }
 0x75f   :  { %v3734_v44 = vpop.f32.mrb[154].mxu1  ;;  %v2452_v51 = vmul.f32 %v5289_v50, %v2387_v0 }
 0x760   :  { %v2783_v57 = vpack.c.bf16 %v3734_v44, %v3733_v20  ;;  %v2336_v42 = vpop.f32.mrb[155].mxu1  ;;  %3458 = vmatpush3.bf16.msra.mxu0 %v2773_v33  ;;  %v2552_v20 = vunpack.c.h.bf16 %v2515_v62  ;;  %v2554_v44 = vunpack.c.h.bf16 %v2516_v6  ;;  %v2677_v33 = vadd.f32 %v2613_v45, %v2451_v26  ;;  %v2518_v45 = vld [vmem:[#allocation9 + $0x38] sm:$0xff] }
 0x761   :  { %v2782_v36 = vpack.c.bf16 %v2336_v42, %v2333_v17  ;;  %v2389_v26 = vunpack.c.l.bf16 %v2353_v55  ;;  %v2551_v42 = vunpack.c.l.bf16 %v2515_v62  ;;  %v2678_v0 = vadd.f32 %v2614_v39, %v2452_v51 }
 0x762   :  { %v2617_v29 = vmul.f32 %v5295_v12, %v2552_v20  ;;  %v2619_v7 = vmul.f32 %v5295_v12, %v2554_v44  ;;  %v2739_v17 = vpack.c.bf16 %v2679_v24, %v2677_v33  ;;  %v2556_v44 = vunpack.c.h.bf16 %v2517_v63 }
 0x763   :  { %3459 = vmatprep.subr.bf16.mxu0 %v2782_v36  ;;  %v2457_v36 = vmul.f32 %v5289_v50, %v2392_v54  ;;  %v5580_v54 = vpack.c.bf16 %v5303_v22, %v5301_v4  ;;  %v2558_v33 = vunpack.c.h.bf16 %v2518_v45  ;;  %v2454_v55 = vmul.f32 %v5289_v50, %v2389_v26  ;;  %v2357_v22 = vld [vmem:[#allocation8 + $0x40] sm:$0xff] }
 0x764   :  { %3460 = vmatpush3.bf16.msra.mxu0 %v2774_v46  ;;  %v5579_v46 = vpack.c.bf16 %v5311_v3, %v5307_v37  ;;  %v2681_v5 = vadd.f32 %v2617_v29, %v2455_v34  ;;  %v2394_v37 = vunpack.c.h.bf16 %v2355_v11  ;;  %v2396_v3 = vunpack.c.h.bf16 %v2356_v56  ;;  %v2358_v34 = vld [vmem:[#allocation8 + $0x48] sm:$0xff] }
 0x765   :  { %3461 = vmatprep.subr.bf16.mxu0 %v2783_v57  ;;  %v2391_v57 = vunpack.c.l.bf16 %v2354_v53  ;;  %v2683_v20 = vadd.f32 %v2619_v7, %v2457_v36  ;;  %v2616_v62 = vmul.f32 %v5295_v12, %v2551_v42  ;;  %v2618_v6 = vmul.f32 %v5295_v12, %v2553_v8  ;;  %v2519_v36 = vld [vmem:[#allocation9 + $0x40] sm:$0xff]  ;;  %v2520_v29 = vld [vmem:[#allocation9 + $0x48] sm:$0xff] }
 0x766   :  { %v2738_v24 = vpack.c.bf16 %v2678_v0, %v2676_v49  ;;  %v2459_v28 = vmul.f32 %v5289_v50, %v2394_v37  ;;  %v2461_v25 = vmul.f32 %v5289_v50, %v2396_v3  ;;  %v2621_v51 = vmul.f32 %v5295_v12, %v2556_v44 }
 0x767   :  { %v2456_v53 = vmul.f32 %v5289_v50, %v2391_v57  ;;  %v2741_v4 = vpack.c.bf16 %v2683_v20, %v2681_v5  ;;  %v2623_v39 = vmul.f32 %v5295_v12, %v2558_v33  ;;  %v2680_v7 = vadd.f32 %v2616_v62, %v2454_v55  ;;  %v2359_v62 = vld [vmem:[#allocation8 + $0x50] sm:$0xff] }
 0x768   :  { %3462 = vmatpush3.bf16.msra.mxu0 %v5579_v46  ;;  %v2395_v26 = vunpack.c.l.bf16 %v2356_v56  ;;  %v2555_v57 = vunpack.c.l.bf16 %v2517_v63  ;;  %v2557_v42 = vunpack.c.l.bf16 %v2518_v45  ;;  %v2398_v8 = vunpack.c.h.bf16 %v2357_v22 }
 0x769   :  { %v2682_v46 = vadd.f32 %v2618_v6, %v2456_v53  ;;  %v2560_v49 = vunpack.c.h.bf16 %v2519_v36  ;;  %v2562_v0 = vunpack.c.h.bf16 %v2520_v29  ;;  %v2685_v5 = vadd.f32 %v2621_v51, %v2459_v28  ;;  %v2521_v51 = vld [vmem:[#allocation9 + $0x50] sm:$0xff] }
 0x76a   :  { %v2687_v20 = vadd.f32 %v2623_v39, %v2461_v25  ;;  %v2460_v44 = vmul.f32 %v5289_v50, %v2395_v26  ;;  %v2620_v33 = vmul.f32 %v5295_v12, %v2555_v57  ;;  %v2463_v56 = vmul.f32 %v5289_v50, %v2398_v8  ;;  %v2360_v25 = vld [vmem:[#allocation8 + $0x58] sm:$0xff] }
 0x76b   :  { %2817 = vmatmul.mubr.bf16.vlgmr.msra.gmra.mrb[100].mxu0 %v5580_v54  ;;  %v2400_v54 = vunpack.c.h.bf16 %v2358_v34  ;;  %v2740_v37 = vpack.c.bf16 %v2682_v46, %v2680_v7  ;;  %v2625_v45 = vmul.f32 %v5295_v12, %v2560_v49  ;;  %v2627_v55 = vmul.f32 %v5295_v12, %v2562_v0  ;;  %v2522_v39 = vld [vmem:[#allocation9 + $0x58] sm:$0xff] }
 0x76c   :  { %2824 = vmatprep.mubr.bf16.mxu0 %v2739_v17  ;;  %v2393_v17 = vunpack.c.l.bf16 %v2355_v11  ;;  %v2622_v11 = vmul.f32 %v5295_v12, %v2557_v42  ;;  %v2743_v53 = vpack.c.bf16 %v2687_v20, %v2685_v5  ;;  %v2397_v6 = vunpack.c.l.bf16 %v2357_v22  ;;  %v2361_v5 = vld [vmem:[#allocation8 + $0x60] sm:$0xff] }
 0x76d   :  { %v2465_v63 = vmul.f32 %v5289_v50, %v2400_v54  ;;  %v2561_v28 = vunpack.c.l.bf16 %v2520_v29  ;;  %v2402_v57 = vunpack.c.h.bf16 %v2359_v62  ;;  %v2404_v42 = vunpack.c.h.bf16 %v2360_v25 }
 0x76e   :  { %v2458_v3 = vmul.f32 %v5289_v50, %v2393_v17  ;;  %v2686_v46 = vadd.f32 %v2622_v11, %v2460_v44  ;;  %v2689_v17 = vadd.f32 %v2625_v45, %v2463_v56  ;;  %v2564_v8 = vunpack.c.h.bf16 %v2521_v51  ;;  %v2523_v11 = vld [vmem:[#allocation9 + $0x60] sm:$0xff]  ;;  %v2524_v56 = vld [vmem:[#allocation9 + $0x68] sm:$0xff] }
 0x76f   :  { %v2691_v26 = vadd.f32 %v2627_v55, %v2465_v63  ;;  %v2566_v54 = vunpack.c.h.bf16 %v2522_v39  ;;  %v2462_v49 = vmul.f32 %v5289_v50, %v2397_v6  ;;  %v2467_v20 = vmul.f32 %v5289_v50, %v2402_v57 }
 0x770   :  { %v2684_v7 = vadd.f32 %v2620_v33, %v2458_v3  ;;  %v2629_v3 = vmul.f32 %v5295_v12, %v2564_v8  ;;  %v2362_v33 = vld [vmem:[#allocation8 + $0x68] sm:$0xff]  ;;  %v2401_v55 = vunpack.c.l.bf16 %v2359_v62  ;;  %v2563_v6 = vunpack.c.l.bf16 %v2521_v51 }
 0x771   :  { %v2745_v0 = vpack.c.bf16 %v2691_v26, %v2689_v17  ;;  %v2631_v44 = vmul.f32 %v5295_v12, %v2566_v54 }
 0x772   :  { %v2742_v29 = vpack.c.bf16 %v2686_v46, %v2684_v7  ;;  %v2568_v7 = vunpack.c.h.bf16 %v2523_v11  ;;  %v2570_v46 = vunpack.c.h.bf16 %v2524_v56  ;;  %v2693_v17 = vadd.f32 %v2629_v3, %v2467_v20  ;;  %v2525_v3 = vld [vmem:[#allocation9 + $0x70] sm:$0xff] }
 0x773   :  { %2825 = vmatmul.mubr.bf16.gmra.mrb[104].mxu0 %v2738_v24  ;;  %v2399_v24 = vunpack.c.l.bf16 %v2358_v34  ;;  %v2628_v54 = vmul.f32 %v5295_v12, %v2563_v6  ;;  %v2569_v20 = vunpack.c.l.bf16 %v2524_v56 }
 0x774   :  { %2832 = vmatprep.mubr.bf16.mxu0 %v2741_v4  ;;  %v2559_v4 = vunpack.c.l.bf16 %v2519_v36  ;;  %v2626_v36 = vmul.f32 %v5295_v12, %v2561_v28  ;;  %v2408_v28 = vunpack.c.h.bf16 %v2362_v33 }
 0x775   :  { %v2464_v22 = vmul.f32 %v5289_v50, %v2399_v24  ;;  %v2565_v24 = vunpack.c.l.bf16 %v2522_v39  ;;  %v2633_v39 = vmul.f32 %v5295_v12, %v2568_v7 }
 0x776   :  { %v2624_v34 = vmul.f32 %v5295_v12, %v2559_v4  ;;  %v2406_v4 = vunpack.c.h.bf16 %v2361_v5  ;;  %v2473_v51 = vmul.f32 %v5289_v50, %v2408_v28 }
 0x777   :  { %v2690_v45 = vadd.f32 %v2626_v36, %v2464_v22  ;;  %v2630_v62 = vmul.f32 %v5295_v12, %v2565_v24  ;;  %v2405_v36 = vunpack.c.l.bf16 %v2361_v5 }
 0x778   :  { %v2688_v63 = vadd.f32 %v2624_v34, %v2462_v49  ;;  %v2635_v49 = vmul.f32 %v5295_v12, %v2570_v46  ;;  %v2363_v34 = vld [vmem:[#allocation8 + $0x70] sm:$0xff] }
 0x779   :  { %v2410_v6 = vunpack.c.h.bf16 %v2363_v34  ;;  %v2470_v7 = vmul.f32 %v5289_v50, %v2405_v36  ;;  %v2571_v36 = vunpack.c.l.bf16 %v2525_v3 }
 0x77a   :  { %v2744_v57 = vpack.c.bf16 %v2690_v45, %v2688_v63 }
 0x77b   :  { %2833 = vmatmul.mubr.bf16.gmra.mrb[108].mxu0 %v2740_v37  ;;  %v2469_v37 = vmul.f32 %v5289_v50, %v2404_v42  ;;  %v2466_v42 = vmul.f32 %v5289_v50, %v2401_v55 }
 0x77c   :  { %2840 = vmatprep.mubr.bf16.mxu0 %v2743_v53  ;;  %v2403_v53 = vunpack.c.l.bf16 %v2360_v25  ;;  %v2471_v25 = vmul.f32 %v5289_v50, %v2406_v4  ;;  %v2572_v4 = vunpack.c.h.bf16 %v2525_v3 }
 0x77d   :  { %v2695_v26 = vadd.f32 %v2631_v44, %v2469_v37  ;;  %v2364_v37 = vld [vmem:[#allocation8 + $0x78] sm:$0xff]  ;;  %v2692_v63 = vadd.f32 %v2628_v54, %v2466_v42  ;;  %v2366_v54 = vld [vmem:[#allocation8 + $0x88] sm:$0xff] }
 0x77e   :  { %v2468_v8 = vmul.f32 %v5289_v50, %v2403_v53  ;;  %v2526_v44 = vld [vmem:[#allocation9 + $0x78] sm:$0xff]  ;;  %v2697_v55 = vadd.f32 %v2633_v39, %v2471_v25  ;;  %v2699_v53 = vadd.f32 %v2635_v49, %v2473_v51  ;;  %v2412_v24 = vunpack.c.h.bf16 %v2364_v37  ;;  %v2528_v25 = vld [vmem:[#allocation9 + $0x88] sm:$0xff] }
 0x77f   :  { %v2747_v22 = vpack.c.bf16 %v2695_v26, %v2693_v17  ;;  %v2574_v28 = vunpack.c.h.bf16 %v2526_v44  ;;  %v2365_v17 = vld [vmem:[#allocation8 + $0x80] sm:$0xff]  ;;  %v2475_v26 = vmul.f32 %v5289_v50, %v2410_v6  ;;  %v2637_v42 = vmul.f32 %v5295_v12, %v2572_v4 }
 0x780   :  { %v2694_v45 = vadd.f32 %v2630_v62, %v2468_v8  ;;  %v2749_v46 = vpack.c.bf16 %v2699_v53, %v2697_v55  ;;  %v2527_v62 = vld [vmem:[#allocation9 + $0x80] sm:$0xff]  ;;  %v2409_v49 = vunpack.c.l.bf16 %v2363_v34 }
 0x781   :  { %v2639_v8 = vmul.f32 %v5295_v12, %v2574_v28  ;;  %v2701_v55 = vadd.f32 %v2637_v42, %v2475_v26  ;;  %v2636_v28 = vmul.f32 %v5295_v12, %v2571_v36  ;;  %v2577_v26 = vunpack.c.l.bf16 %v2528_v25  ;;  %v2529_v42 = vld [vmem:[#allocation9 + $0x90] sm:$0xff] }
 0x782   :  { %v2746_v56 = vpack.c.bf16 %v2694_v45, %v2692_v63  ;;  %v2576_v63 = vunpack.c.h.bf16 %v2527_v62  ;;  %v2578_v45 = vunpack.c.h.bf16 %v2528_v25 }
 0x783   :  { %2841 = vmatmul.mubr.bf16.gmra.mrb[112].mxu0 %v2742_v29  ;;  %v2407_v29 = vunpack.c.l.bf16 %v2362_v33 }
 0x784   :  { %2848 = vmatprep.mubr.bf16.mxu0 %v2745_v0  ;;  %v2567_v0 = vunpack.c.l.bf16 %v2523_v11  ;;  %v2634_v11 = vmul.f32 %v5295_v12, %v2569_v20  ;;  %v2416_v20 = vunpack.c.h.bf16 %v2366_v54 }
 0x785   :  { %v2472_v5 = vmul.f32 %v5289_v50, %v2407_v29  ;;  %v2573_v29 = vunpack.c.l.bf16 %v2526_v44  ;;  %v2641_v44 = vmul.f32 %v5295_v12, %v2576_v63 }
 0x786   :  { %v2632_v33 = vmul.f32 %v5295_v12, %v2567_v0  ;;  %v2414_v0 = vunpack.c.h.bf16 %v2365_v17  ;;  %v2481_v3 = vmul.f32 %v5289_v50, %v2416_v20 }
 0x787   :  { %v2698_v39 = vadd.f32 %v2634_v11, %v2472_v5  ;;  %v2638_v34 = vmul.f32 %v5295_v12, %v2573_v29  ;;  %v2413_v11 = vunpack.c.l.bf16 %v2365_v17 }
 0x788   :  { %v2696_v51 = vadd.f32 %v2632_v33, %v2470_v7  ;;  %v2643_v7 = vmul.f32 %v5295_v12, %v2578_v45  ;;  %v2367_v33 = vld [vmem:[#allocation8 + $0x90] sm:$0xff] }
 0x789   :  { %v2418_v36 = vunpack.c.h.bf16 %v2367_v33  ;;  %v2478_v63 = vmul.f32 %v5289_v50, %v2413_v11  ;;  %v2579_v11 = vunpack.c.l.bf16 %v2529_v42 }
 0x78a   :  { %v2748_v6 = vpack.c.bf16 %v2698_v39, %v2696_v51 }
 0x78b   :  { %2849 = vmatmul.mubr.bf16.gmra.mrb[116].mxu0 %v2744_v57  ;;  %v2477_v57 = vmul.f32 %v5289_v50, %v2412_v24  ;;  %v2474_v24 = vmul.f32 %v5289_v50, %v2409_v49 }
 0x78c   :  { %2856 = vmatprep.mubr.bf16.mxu0 %v2747_v22  ;;  %v2411_v22 = vunpack.c.l.bf16 %v2364_v37  ;;  %v2479_v37 = vmul.f32 %v5289_v50, %v2414_v0  ;;  %v2580_v0 = vunpack.c.h.bf16 %v2529_v42 }
 0x78d   :  { %v2703_v53 = vadd.f32 %v2639_v8, %v2477_v57  ;;  %v2368_v57 = vld [vmem:[#allocation8 + $0x98] sm:$0xff]  ;;  %v2700_v51 = vadd.f32 %v2636_v28, %v2474_v24  ;;  %v2370_v28 = vld [vmem:[#allocation8 + $0xa8] sm:$0xff] }
 0x78e   :  { %v2476_v4 = vmul.f32 %v5289_v50, %v2411_v22  ;;  %v2530_v8 = vld [vmem:[#allocation9 + $0x98] sm:$0xff]  ;;  %v2705_v49 = vadd.f32 %v2641_v44, %v2479_v37  ;;  %v2707_v22 = vadd.f32 %v2643_v7, %v2481_v3  ;;  %v2420_v29 = vunpack.c.h.bf16 %v2368_v57  ;;  %v2532_v37 = vld [vmem:[#allocation9 + $0xa8] sm:$0xff] }
 0x78f   :  { %v2751_v5 = vpack.c.bf16 %v2703_v53, %v2701_v55  ;;  %v2582_v20 = vunpack.c.h.bf16 %v2530_v8  ;;  %v2369_v55 = vld [vmem:[#allocation8 + $0xa0] sm:$0xff]  ;;  %v2483_v53 = vmul.f32 %v5289_v50, %v2418_v36  ;;  %v2645_v24 = vmul.f32 %v5295_v12, %v2580_v0 }
 0x790   :  { %v2702_v39 = vadd.f32 %v2638_v34, %v2476_v4  ;;  %v2753_v45 = vpack.c.bf16 %v2707_v22, %v2705_v49  ;;  %v2531_v34 = vld [vmem:[#allocation9 + $0xa0] sm:$0xff]  ;;  %v2417_v7 = vunpack.c.l.bf16 %v2367_v33 }
 0x791   :  { %v2647_v4 = vmul.f32 %v5295_v12, %v2582_v20  ;;  %v2709_v49 = vadd.f32 %v2645_v24, %v2483_v53  ;;  %v2644_v20 = vmul.f32 %v5295_v12, %v2579_v11  ;;  %v2585_v53 = vunpack.c.l.bf16 %v2532_v37  ;;  %v2533_v24 = vld [vmem:[#allocation9 + $0xb0] sm:$0xff] }
 0x792   :  { %v2750_v25 = vpack.c.bf16 %v2702_v39, %v2700_v51  ;;  %v2584_v51 = vunpack.c.h.bf16 %v2531_v34  ;;  %v2586_v39 = vunpack.c.h.bf16 %v2532_v37 }
 0x793   :  { %2857 = vmatmul.mubr.bf16.gmra.mrb[120].mxu0 %v2746_v56  ;;  %v2415_v56 = vunpack.c.l.bf16 %v2366_v54 }
 0x794   :  { %2864 = vmatprep.mubr.bf16.mxu0 %v2749_v46  ;;  %v2575_v46 = vunpack.c.l.bf16 %v2527_v62  ;;  %v2642_v62 = vmul.f32 %v5295_v12, %v2577_v26  ;;  %v2424_v26 = vunpack.c.h.bf16 %v2370_v28 }
 0x795   :  { %v2480_v17 = vmul.f32 %v5289_v50, %v2415_v56  ;;  %v2581_v56 = vunpack.c.l.bf16 %v2530_v8  ;;  %v2649_v8 = vmul.f32 %v5295_v12, %v2584_v51 }
 0x796   :  { %v2640_v54 = vmul.f32 %v5295_v12, %v2575_v46  ;;  %v2422_v46 = vunpack.c.h.bf16 %v2369_v55  ;;  %v2489_v42 = vmul.f32 %v5289_v50, %v2424_v26 }
 0x797   :  { %v2706_v44 = vadd.f32 %v2642_v62, %v2480_v17  ;;  %v2646_v33 = vmul.f32 %v5295_v12, %v2581_v56  ;;  %v2421_v62 = vunpack.c.l.bf16 %v2369_v55 }
 0x798   :  { %v2704_v3 = vadd.f32 %v2640_v54, %v2478_v63  ;;  %v2651_v63 = vmul.f32 %v5295_v12, %v2586_v39  ;;  %v2371_v54 = vld [vmem:[#allocation8 + $0xb0] sm:$0xff] }
 0x799   :  { %v2426_v11 = vunpack.c.h.bf16 %v2371_v54  ;;  %v2486_v51 = vmul.f32 %v5289_v50, %v2421_v62  ;;  %v2587_v62 = vunpack.c.l.bf16 %v2533_v24 }
 0x79a   :  { %v2752_v36 = vpack.c.bf16 %v2706_v44, %v2704_v3 }
 0x79b   :  { %2865 = vmatmul.mubr.bf16.gmra.mrb[124].mxu0 %v2748_v6  ;;  %v2485_v6 = vmul.f32 %v5289_v50, %v2420_v29  ;;  %v2482_v29 = vmul.f32 %v5289_v50, %v2417_v7 }
 0x79c   :  { %2872 = vmatprep.mubr.bf16.mxu0 %v2751_v5  ;;  %v2419_v5 = vunpack.c.l.bf16 %v2368_v57  ;;  %v2487_v57 = vmul.f32 %v5289_v50, %v2422_v46  ;;  %v2588_v46 = vunpack.c.h.bf16 %v2533_v24 }
 0x79d   :  { %v2711_v22 = vadd.f32 %v2647_v4, %v2485_v6  ;;  %v2372_v6 = vld [vmem:[#allocation8 + $0xb8] sm:$0xff]  ;;  %v2708_v3 = vadd.f32 %v2644_v20, %v2482_v29  ;;  %v2374_v20 = vld [vmem:[#allocation8 + $0xc8] sm:$0xff] }
 0x79e   :  { %v2484_v0 = vmul.f32 %v5289_v50, %v2419_v5  ;;  %v2534_v4 = vld [vmem:[#allocation9 + $0xb8] sm:$0xff]  ;;  %v2713_v7 = vadd.f32 %v2649_v8, %v2487_v57  ;;  %v2715_v5 = vadd.f32 %v2651_v63, %v2489_v42  ;;  %v2428_v56 = vunpack.c.h.bf16 %v2372_v6  ;;  %v2536_v57 = vld [vmem:[#allocation9 + $0xc8] sm:$0xff] }
 0x79f   :  { %v2755_v17 = vpack.c.bf16 %v2711_v22, %v2709_v49  ;;  %v2590_v26 = vunpack.c.h.bf16 %v2534_v4  ;;  %v2373_v49 = vld [vmem:[#allocation8 + $0xc0] sm:$0xff]  ;;  %v2491_v22 = vmul.f32 %v5289_v50, %v2426_v11  ;;  %v2653_v29 = vmul.f32 %v5295_v12, %v2588_v46 }
 0x7a0   :  { %v2710_v44 = vadd.f32 %v2646_v33, %v2484_v0  ;;  %v2757_v39 = vpack.c.bf16 %v2715_v5, %v2713_v7  ;;  %v2535_v33 = vld [vmem:[#allocation9 + $0xc0] sm:$0xff]  ;;  %v2425_v63 = vunpack.c.l.bf16 %v2371_v54 }
 0x7a1   :  { %v2655_v0 = vmul.f32 %v5295_v12, %v2590_v26  ;;  %v2717_v7 = vadd.f32 %v2653_v29, %v2491_v22  ;;  %v2652_v26 = vmul.f32 %v5295_v12, %v2587_v62  ;;  %v2593_v22 = vunpack.c.l.bf16 %v2536_v57  ;;  %v2537_v29 = vld [vmem:[#allocation9 + $0xd0] sm:$0xff] }
 0x7a2   :  { %v2754_v37 = vpack.c.bf16 %v2710_v44, %v2708_v3  ;;  %v2592_v3 = vunpack.c.h.bf16 %v2535_v33  ;;  %v2594_v44 = vunpack.c.h.bf16 %v2536_v57 }
 0x7a3   :  { %2873 = vmatmul.mubr.bf16.gmra.mrb[128].mxu0 %v2750_v25  ;;  %v2423_v25 = vunpack.c.l.bf16 %v2370_v28 }
 0x7a4   :  { %2880 = vmatprep.mubr.bf16.mxu0 %v2753_v45  ;;  %v2583_v45 = vunpack.c.l.bf16 %v2531_v34  ;;  %v2650_v34 = vmul.f32 %v5295_v12, %v2585_v53  ;;  %v2432_v53 = vunpack.c.h.bf16 %v2374_v20 }
 0x7a5   :  { %v2488_v55 = vmul.f32 %v5289_v50, %v2423_v25  ;;  %v2589_v25 = vunpack.c.l.bf16 %v2534_v4  ;;  %v2657_v4 = vmul.f32 %v5295_v12, %v2592_v3 }
 0x7a6   :  { %v2648_v28 = vmul.f32 %v5295_v12, %v2583_v45  ;;  %v2430_v45 = vunpack.c.h.bf16 %v2373_v49  ;;  %v2497_v24 = vmul.f32 %v5289_v50, %v2432_v53 }
 0x7a7   :  { %v2714_v8 = vadd.f32 %v2650_v34, %v2488_v55  ;;  %v2654_v54 = vmul.f32 %v5295_v12, %v2589_v25  ;;  %v2429_v34 = vunpack.c.l.bf16 %v2373_v49 }
 0x7a8   :  { %v2712_v42 = vadd.f32 %v2648_v28, %v2486_v51  ;;  %v2659_v51 = vmul.f32 %v5295_v12, %v2594_v44  ;;  %v2375_v28 = vld [vmem:[#allocation8 + $0xd0] sm:$0xff] }
 0x7a9   :  { %v2434_v62 = vunpack.c.h.bf16 %v2375_v28  ;;  %v2494_v3 = vmul.f32 %v5289_v50, %v2429_v34  ;;  %v2595_v34 = vunpack.c.l.bf16 %v2537_v29 }
 0x7aa   :  { %v2756_v11 = vpack.c.bf16 %v2714_v8, %v2712_v42 }
 0x7ab   :  { %2881 = vmatmul.mubr.bf16.gmra.mrb[132].mxu0 %v2752_v36  ;;  %v2493_v36 = vmul.f32 %v5289_v50, %v2428_v56  ;;  %v2490_v56 = vmul.f32 %v5289_v50, %v2425_v63 }
 0x7ac   :  { %2888 = vmatprep.mubr.bf16.mxu0 %v2755_v17  ;;  %v2427_v17 = vunpack.c.l.bf16 %v2372_v6  ;;  %v2495_v6 = vmul.f32 %v5289_v50, %v2430_v45  ;;  %v2596_v45 = vunpack.c.h.bf16 %v2537_v29 }
 0x7ad   :  { %v2719_v5 = vadd.f32 %v2655_v0, %v2493_v36  ;;  %v2376_v36 = vld [vmem:[#allocation8 + $0xd8] sm:$0xff]  ;;  %v2716_v42 = vadd.f32 %v2652_v26, %v2490_v56  ;;  %v2378_v26 = vld [vmem:[#allocation8 + $0xe8] sm:$0xff] }
 0x7ae   :  { %v2492_v46 = vmul.f32 %v5289_v50, %v2427_v17  ;;  %v2538_v0 = vld [vmem:[#allocation9 + $0xd8] sm:$0xff]  ;;  %v2721_v63 = vadd.f32 %v2657_v4, %v2495_v6  ;;  %v2723_v17 = vadd.f32 %v2659_v51, %v2497_v24  ;;  %v2436_v25 = vunpack.c.h.bf16 %v2376_v36  ;;  %v2540_v6 = vld [vmem:[#allocation9 + $0xe8] sm:$0xff] }
 0x7af   :  { %v2759_v55 = vpack.c.bf16 %v2719_v5, %v2717_v7  ;;  %v2598_v53 = vunpack.c.h.bf16 %v2538_v0  ;;  %v2377_v7 = vld [vmem:[#allocation8 + $0xe0] sm:$0xff]  ;;  %v2499_v5 = vmul.f32 %v5289_v50, %v2434_v62  ;;  %v2661_v56 = vmul.f32 %v5295_v12, %v2596_v45 }
 0x7b0   :  { %v2718_v8 = vadd.f32 %v2654_v54, %v2492_v46  ;;  %v2761_v44 = vpack.c.bf16 %v2723_v17, %v2721_v63  ;;  %v2539_v54 = vld [vmem:[#allocation9 + $0xe0] sm:$0xff]  ;;  %v2433_v51 = vunpack.c.l.bf16 %v2375_v28 }
 0x7b1   :  { %v2663_v46 = vmul.f32 %v5295_v12, %v2598_v53  ;;  %v2725_v63 = vadd.f32 %v2661_v56, %v2499_v5  ;;  %v2660_v53 = vmul.f32 %v5295_v12, %v2595_v34  ;;  %v2437_v5 = vunpack.c.l.bf16 %v2377_v7 }
 0x7b2   :  { %v2758_v57 = vpack.c.bf16 %v2718_v8, %v2716_v42  ;;  %v2600_v42 = vunpack.c.h.bf16 %v2539_v54  ;;  %v2602_v8 = vunpack.c.h.bf16 %v2540_v6  ;;  %v2599_v56 = vunpack.c.l.bf16 %v2539_v54 }
 0x7b3   :  { %2889 = vmatmul.mubr.bf16.gmra.mrb[136].mxu0 %v2754_v37  ;;  %v2431_v37 = vunpack.c.l.bf16 %v2374_v20 }
 0x7b4   :  { %2896 = vmatprep.mubr.bf16.mxu0 %v2757_v39  ;;  %v2591_v39 = vunpack.c.l.bf16 %v2535_v33  ;;  %v2658_v33 = vmul.f32 %v5295_v12, %v2593_v22  ;;  %v2440_v22 = vunpack.c.h.bf16 %v2378_v26 }
 0x7b5   :  { %v2496_v49 = vmul.f32 %v5289_v50, %v2431_v37  ;;  %v2597_v37 = vunpack.c.l.bf16 %v2538_v0  ;;  %v2665_v0 = vmul.f32 %v5295_v12, %v2600_v42  ;;  %v2502_v42 = vmul.f32 %v5289_v50, %v2437_v5 }
 0x7b6   :  { %v2656_v20 = vmul.f32 %v5295_v12, %v2591_v39  ;;  %v2438_v39 = vunpack.c.h.bf16 %v2377_v7  ;;  %v2505_v29 = vmul.f32 %v5289_v50, %v2440_v22 }
 0x7b7   :  { %v2722_v4 = vadd.f32 %v2658_v33, %v2496_v49  ;;  %v2662_v28 = vmul.f32 %v5295_v12, %v2597_v37  ;;  %v2380_v33 = vld [vmem:[#allocation8 + $0xf8] sm:$0xff] }
 0x7b8   :  { %v2720_v24 = vadd.f32 %v2656_v20, %v2494_v3  ;;  %v2667_v3 = vmul.f32 %v5295_v12, %v2602_v8  ;;  %v2379_v20 = vld [vmem:[#allocation8 + $0xf0] sm:$0xff]  ;;  %v2444_v37 = vunpack.c.h.bf16 %v2380_v33 }
 0x7b9   :  { %v2442_v34 = vunpack.c.h.bf16 %v2379_v20 }
 0x7ba   :  { %v2760_v62 = vpack.c.bf16 %v2722_v4, %v2720_v24 }
 0x7bb   :  { %2897 = vmatmul.mubr.bf16.gmra.mrb[140].mxu0 %v2756_v11  ;;  %v2501_v11 = vmul.f32 %v5289_v50, %v2436_v25  ;;  %v2498_v25 = vmul.f32 %v5289_v50, %v2433_v51 }
 0x7bc   :  { %2904 = vmatprep.mubr.bf16.mxu0 %v2759_v55  ;;  %v2435_v55 = vunpack.c.l.bf16 %v2376_v36  ;;  %v2503_v36 = vmul.f32 %v5289_v50, %v2438_v39 }
 0x7bd   :  { %v2727_v17 = vadd.f32 %v2663_v46, %v2501_v11  ;;  %v2439_v11 = vunpack.c.l.bf16 %v2378_v26  ;;  %v2601_v46 = vunpack.c.l.bf16 %v2540_v6  ;;  %v2724_v24 = vadd.f32 %v2660_v53, %v2498_v25 }
 0x7be   :  { %v2500_v45 = vmul.f32 %v5289_v50, %v2435_v55  ;;  %v2729_v51 = vadd.f32 %v2665_v0, %v2503_v36  ;;  %v2731_v55 = vadd.f32 %v2667_v3, %v2505_v29  ;;  %v2507_v6 = vmul.f32 %v5289_v50, %v2442_v34 }
 0x7bf   :  { %v2763_v49 = vpack.c.bf16 %v2727_v17, %v2725_v63  ;;  %v2504_v8 = vmul.f32 %v5289_v50, %v2439_v11  ;;  %v2664_v63 = vmul.f32 %v5295_v12, %v2599_v56  ;;  %v2666_v7 = vmul.f32 %v5295_v12, %v2601_v46 }
 0x7c0   :  { %v2726_v4 = vadd.f32 %v2662_v28, %v2500_v45  ;;  %v2765_v54 = vpack.c.bf16 %v2731_v55, %v2729_v51  ;;  %v2509_v17 = vmul.f32 %v5289_v50, %v2444_v37  ;;  %v2441_v28 = vunpack.c.l.bf16 %v2379_v20 }
 0x7c1   :  { %v2728_v45 = vadd.f32 %v2664_v63, %v2502_v42  ;;  %v2730_v53 = vadd.f32 %v2666_v7, %v2504_v8  ;;  %v2443_v36 = vunpack.c.l.bf16 %v2380_v33  ;;  %v1492_v33 = vpop.xlane.xlu0 %1491 }
 0x7c2   :  { %v2762_v26 = vpack.c.bf16 %v2726_v4, %v2724_v24  ;;  %v2506_v11 = vmul.f32 %v5289_v50, %v2441_v28  ;;  %4045 = vrcp.f32 %v1492_v33 }
 0x7c3   :  { %2905 = vmatmul.mubr.bf16.gmra.mrb[144].mxu0 %v2758_v57  ;;  %v2541_v57 = vld [vmem:[#allocation9 + $0xf0] sm:$0xff]  ;;  %v2764_v5 = vpack.c.bf16 %v2730_v53, %v2728_v45  ;;  %v2508_v56 = vmul.f32 %v5289_v50, %v2443_v36 }
 0x7c4   :  { %2912 = vmatprep.mubr.bf16.mxu0 %v2761_v44  ;;  %v2542_v44 = vld [vmem:[#allocation9 + $0xf8] sm:$0xff]  ;;  %v2604_v39 = vunpack.c.h.bf16 %v2541_v57  ;;  %v2603_v29 = vunpack.c.l.bf16 %v2541_v57  ;;  %v1494_v57 = vpop.xlane.xlu1 %1493 }
 0x7c5   :  { %v2606_v22 = vunpack.c.h.bf16 %v2542_v44  ;;  %v2605_v0 = vunpack.c.l.bf16 %v2542_v44  ;;  %4047 = vrcp.f32 %v1494_v57  ;;  %v1496_v44 = vpop.xlane.xlu0 %1495 }
 0x7c6   :  { %v2668_v46 = vmul.f32 %v5295_v12, %v2603_v29  ;;  %4049 = vrcp.f32 %v1496_v44 }
 0x7c7   :  { %v2671_v25 = vmul.f32 %v5295_v12, %v2606_v22  ;;  %v2670_v24 = vmul.f32 %v5295_v12, %v2605_v0 }
 0x7c8   :  { %v2732_v51 = vadd.f32 %v2668_v46, %v2506_v11  ;;  %v1498_v34 = vpop.xlane.xlu1 %1497 }
 0x7c9   :  { %v2734_v55 = vadd.f32 %v2670_v24, %v2508_v56  ;;  %4051 = vrcp.f32 %v1498_v34  ;;  %v1500_v7 = vpop.xlane.xlu0 %1499 }
 0x7ca   :  { %4053 = vrcp.f32 %v1500_v7 }
 0x7cb   :  { %2913 = vmatmul.mubr.bf16.gmra.mrb[148].mxu0 %v2760_v62  ;;  %v2669_v62 = vmul.f32 %v5295_v12, %v2604_v39  ;;  %v2766_v20 = vpack.c.bf16 %v2734_v55, %v2732_v51 }
 0x7cc   :  { %2920 = vmatprep.mubr.bf16.mxu0 %v2763_v49  ;;  %v2735_v49 = vadd.f32 %v2671_v25, %v2509_v17  ;;  %v4046_v37 = vpop.eup %4045  ;;  %v1502_v17 = vpop.xlane.xlu1 %1501 }
 0x7cd   :  { %v2733_v3 = vadd.f32 %v2669_v62, %v2507_v6  ;;  %v1587_v12 = vmul.f32 %v4046_v37, %v5162_v60  ;;  %4055 = vrcp.f32 %v1502_v17 }
 0x7cf   :  { %v2767_v4 = vpack.c.bf16 %v2735_v49, %v2733_v3  ;;  %v4048_v39 = vpop.eup %4047  ;;  %v1504_v3 = vpop.xlane.xlu0 %1503 }
 0x7d0   :  { %v4050_v25 = vpop.eup %4049  ;;  %4057 = vrcp.f32 %v1504_v3  ;;  %v1506_v11 = vpop.xlane.xlu1 %1505 }
 0x7d1   :  { %v1589_v60 = vmul.f32 %v4050_v25, %v5169_v13  ;;  %4059 = vrcp.f32 %v1506_v11 }
 0x7d3   :  { %2921 = vmatmul.mubr.bf16.gmra.mrb[152].mxu0 %v2762_v26  ;;  %v4052_v53 = vpop.eup %4051  ;;  %v1508_v57 = vpop.xlane.xlu0 %1507 }
 0x7d4   :  { %2928 = vmatprep.mubr.bf16.mxu0 %v2765_v54  ;;  %v1588_v54 = vmul.f32 %v4048_v39, %v5167_v10  ;;  %v1590_v10 = vmul.f32 %v4052_v53, %v5175_v61  ;;  %v4054_v46 = vpop.eup %4053  ;;  %4061 = vrcp.f32 %v1508_v57  ;;  %v1510_v37 = vpop.xlane.xlu1 %1509 }
 0x7d5   :  { %v1591_v13 = vmul.f32 %v4054_v46, %v5177_v35  ;;  %4063 = vrcp.f32 %v1510_v37 }
 0x7d8   :  { %v1514_v17 = vpop.xlane.xlu1 %1513 }
 0x7db   :  { %2929 = vmatmul.mubr.bf16.gmra.mrb[156].mxu0 %v2764_v5 }
 0x7dc   :  { %2936 = vmatprep.mubr.bf16.mxu0 %v2767_v4  ;;  %v4056_v4 = vpop.eup %4055 }
 0x7dd   :  { %v1592_v61 = vmul.f32 %v4056_v4, %v5183_v23  ;;  %v4058_v39 = vpop.eup %4057 }
 0x7de   :  { %v1593_v35 = vmul.f32 %v4058_v39, %v5185_v19 }
 0x7e3   :  { %2937 = vmatmul.mubr.bf16.gmra.mrb[160].mxu0 %v2766_v20 }
 0x83e   :  { %v3463_v50 = vpop.f32.mrb[100].mxu0 }
 0x83f   :  { %v3464_v22 = vpop.f32.mrb[101].mxu0 }
 0x840   :  { %v3465_v42 = vadd.f32 %v3464_v22, %v3463_v50  ;;  %v3466_v8 = vpop.f32.mrb[102].mxu0 }
 0x841   :  { %v3467_v63 = vpop.f32.mrb[103].mxu0 }
 0x842   :  { %v2945_v26 = vadd.f32 %v3465_v42, %v1587_v12  ;;  %v3468_v6 = vadd.f32 %v3467_v63, %v3466_v8  ;;  %v4060_v12 = vpop.eup %4059 }
 0x843   :  { %v1594_v23 = vmul.f32 %v4060_v12, %v5191_v18  ;;  %v4062_v25 = vpop.eup %4061 }
 0x844   :  { %2977 = vst [vmem:[#allocation18] sm:$0xff] %v2945_v26  ;;  %v2946_v62 = vadd.f32 %v3468_v6, %v1588_v54  ;;  %v1512_v26 = vpop.xlane.xlu0 %1511  ;;  %v4064_v53 = vpop.eup %4063  ;;  %v1595_v19 = vmul.f32 %v4062_v25, %v5193_v47 }
 0x845   :  { %4065 = vrcp.f32 %v1512_v26  ;;  %v1596_v18 = vmul.f32 %v4064_v53, %v5199_v43 }
 0x846   :  { %2978 = vst [vmem:[#allocation18 + $0x8] sm:$0xff] %v2946_v62  ;;  %v3469_v45 = vpop.f32.mrb[104].mxu0  ;;  %4067 = vrcp.f32 %v1514_v17 }
 0x847   :  { %v3470_v28 = vpop.f32.mrb[105].mxu0 }
 0x848   :  { %v3471_v36 = vadd.f32 %v3470_v28, %v3469_v45  ;;  %v3472_v29 = vpop.f32.mrb[106].mxu0 }
 0x849   :  { %v3473_v0 = vpop.f32.mrb[107].mxu0 }
 0x84a   :  { %v2947_v49 = vadd.f32 %v3471_v36, %v1589_v60  ;;  %v3474_v5 = vadd.f32 %v3473_v0, %v3472_v29  ;;  %v1516_v0 = vpop.xlane.xlu0 %1515 }
 0x84b   :  { %4069 = vrcp.f32 %v1516_v0 }
 0x84c   :  { %2979 = vst [vmem:[#allocation18 + $0x10] sm:$0xff] %v2947_v49  ;;  %v2948_v56 = vadd.f32 %v3474_v5, %v1590_v10  ;;  %v1518_v10 = vpop.xlane.xlu1 %1517 }
 0x84d   :  { %4071 = vrcp.f32 %v1518_v10 }
 0x84e   :  { %2980 = vst [vmem:[#allocation18 + $0x18] sm:$0xff] %v2948_v56  ;;  %v3475_v24 = vpop.f32.mrb[108].mxu0 }
 0x84f   :  { %v3476_v51 = vpop.f32.mrb[109].mxu0  ;;  %v4066_v11 = vpop.eup %4065 }
 0x850   :  { %v3477_v55 = vadd.f32 %v3476_v51, %v3475_v24  ;;  %v3478_v20 = vpop.f32.mrb[110].mxu0  ;;  %v4068_v46 = vpop.eup %4067  ;;  %v1597_v47 = vmul.f32 %v4066_v11, %v5201_v16 }
 0x851   :  { %v3479_v33 = vpop.f32.mrb[111].mxu0  ;;  %v1598_v43 = vmul.f32 %v4068_v46, %v5207_v48  ;;  %v1522_v57 = vpop.xlane.xlu1 %1521 }
 0x852   :  { %v2949_v44 = vadd.f32 %v3477_v55, %v1591_v13  ;;  %v3480_v34 = vadd.f32 %v3479_v33, %v3478_v20  ;;  %v1520_v55 = vpop.xlane.xlu0 %1519 }
 0x853   :  { %4073 = vrcp.f32 %v1520_v55 }
 0x854   :  { %2981 = vst [vmem:[#allocation18 + $0x20] sm:$0xff] %v2949_v44  ;;  %v2950_v50 = vadd.f32 %v3480_v34, %v1592_v61  ;;  %4075 = vrcp.f32 %v1522_v57 }
 0x855   :  { %v4070_v61 = vpop.eup %4069 }
 0x856   :  { %2982 = vst [vmem:[#allocation18 + $0x28] sm:$0xff] %v2950_v50  ;;  %v3481_v22 = vpop.f32.mrb[112].mxu0  ;;  %v1599_v16 = vmul.f32 %v4070_v61, %v5209_v52 }
 0x857   :  { %v3482_v42 = vpop.f32.mrb[113].mxu0  ;;  %v4072_v37 = vpop.eup %4071 }
 0x858   :  { %v3483_v8 = vadd.f32 %v3482_v42, %v3481_v22  ;;  %v3484_v63 = vpop.f32.mrb[114].mxu0  ;;  %v1524_v42 = vpop.xlane.xlu0 %1523  ;;  %v1600_v48 = vmul.f32 %v4072_v37, %v5215_v1 }
 0x859   :  { %v3485_v7 = vpop.f32.mrb[115].mxu0  ;;  %4077 = vrcp.f32 %v1524_v42 }
 0x85a   :  { %v2951_v54 = vadd.f32 %v3483_v8, %v1593_v35  ;;  %v3486_v6 = vadd.f32 %v3485_v7, %v3484_v63  ;;  %v1526_v63 = vpop.xlane.xlu1 %1525 }
 0x85b   :  { %4079 = vrcp.f32 %v1526_v63 }
 0x85c   :  { %2983 = vst [vmem:[#allocation18 + $0x30] sm:$0xff] %v2951_v54  ;;  %v2952_v62 = vadd.f32 %v3486_v6, %v1594_v23  ;;  %v1528_v17 = vpop.xlane.xlu0 %1527 }
 0x85d   :  { %v4074_v26 = vpop.eup %4073  ;;  %4081 = vrcp.f32 %v1528_v17 }
 0x85e   :  { %2984 = vst [vmem:[#allocation18 + $0x38] sm:$0xff] %v2952_v62  ;;  %v3487_v45 = vpop.f32.mrb[116].mxu0  ;;  %v4076_v23 = vpop.eup %4075  ;;  %v1601_v52 = vmul.f32 %v4074_v26, %v5217_v38 }
 0x85f   :  { %v3488_v28 = vpop.f32.mrb[117].mxu0  ;;  %v1530_v53 = vpop.xlane.xlu1 %1529  ;;  %v1602_v1 = vmul.f32 %v4076_v23, %v5223_v41 }
 0x860   :  { %v3489_v60 = vadd.f32 %v3488_v28, %v3487_v45  ;;  %v3490_v36 = vpop.f32.mrb[118].mxu0  ;;  %4083 = vrcp.f32 %v1530_v53 }
 0x861   :  { %v3491_v29 = vpop.f32.mrb[119].mxu0 }
 0x862   :  { %v2953_v3 = vadd.f32 %v3489_v60, %v1595_v19  ;;  %v3492_v49 = vadd.f32 %v3491_v29, %v3490_v36 }
 0x863   :  { %v4078_v36 = vpop.eup %4077  ;;  %v1534_v11 = vpop.xlane.xlu1 %1533 }
 0x864   :  { %2985 = vst [vmem:[#allocation18 + $0x40] sm:$0xff] %v2953_v3  ;;  %v2954_v5 = vadd.f32 %v3492_v49, %v1596_v18  ;;  %v1532_v18 = vpop.xlane.xlu0 %1531  ;;  %v1603_v38 = vmul.f32 %v4078_v36, %v5225_v32 }
 0x865   :  { %v4080_v0 = vpop.eup %4079  ;;  %4085 = vrcp.f32 %v1532_v18 }
 0x866   :  { %2986 = vst [vmem:[#allocation18 + $0x48] sm:$0xff] %v2954_v5  ;;  %v3493_v56 = vpop.f32.mrb[120].mxu0  ;;  %v1604_v41 = vmul.f32 %v4080_v0, %v5231_v59  ;;  %4087 = vrcp.f32 %v1534_v11 }
 0x867   :  { %v3494_v24 = vpop.f32.mrb[121].mxu0  ;;  %v1538_v57 = vpop.xlane.xlu1 %1537 }
 0x868   :  { %v3495_v4 = vadd.f32 %v3494_v24, %v3493_v56  ;;  %v3496_v51 = vpop.f32.mrb[122].mxu0  ;;  %v1536_v55 = vpop.xlane.xlu0 %1535 }
 0x869   :  { %v3497_v13 = vpop.f32.mrb[123].mxu0  ;;  %4089 = vrcp.f32 %v1536_v55 }
 0x86a   :  { %v2955_v20 = vadd.f32 %v3495_v4, %v1597_v47  ;;  %v3498_v33 = vadd.f32 %v3497_v13, %v3496_v51  ;;  %v4082_v47 = vpop.eup %4081  ;;  %4091 = vrcp.f32 %v1538_v57 }
 0x86b   :  { %v4084_v51 = vpop.eup %4083  ;;  %v1605_v32 = vmul.f32 %v4082_v47, %v5233_v27 }
 0x86c   :  { %2987 = vst [vmem:[#allocation18 + $0x50] sm:$0xff] %v2955_v20  ;;  %v2956_v44 = vadd.f32 %v3498_v33, %v1598_v43  ;;  %v1606_v59 = vmul.f32 %v4084_v51, %v5239_v14 }
 0x86e   :  { %2988 = vst [vmem:[#allocation18 + $0x58] sm:$0xff] %v2956_v44  ;;  %v3499_v34 = vpop.f32.mrb[124].mxu0 }
 0x86f   :  { %v3500_v50 = vpop.f32.mrb[125].mxu0  ;;  %v4086_v37 = vpop.eup %4085 }
 0x870   :  { %v3501_v39 = vadd.f32 %v3500_v50, %v3499_v34  ;;  %v3502_v22 = vpop.f32.mrb[126].mxu0  ;;  %v1607_v27 = vmul.f32 %v4086_v37, %v5241_v58 }
 0x871   :  { %v3503_v12 = vpop.f32.mrb[127].mxu0 }
 0x872   :  { %v2957_v35 = vadd.f32 %v3501_v39, %v1599_v16  ;;  %v3504_v8 = vadd.f32 %v3503_v12, %v3502_v22  ;;  %v4088_v16 = vpop.eup %4087  ;;  %v1540_v22 = vpop.xlane.xlu0 %1539 }
 0x873   :  { %v1608_v14 = vmul.f32 %v4088_v16, %v5247_v31  ;;  %4093 = vrcp.f32 %v1540_v22  ;;  %v4090_v26 = vpop.eup %4089 }
 0x874   :  { %2989 = vst [vmem:[#allocation18 + $0x60] sm:$0xff] %v2957_v35  ;;  %v2958_v7 = vadd.f32 %v3504_v8, %v1600_v48  ;;  %v1542_v48 = vpop.xlane.xlu1 %1541  ;;  %v4092_v23 = vpop.eup %4091  ;;  %v1609_v58 = vmul.f32 %v4090_v26, %v5249_v15 }
 0x875   :  { %4095 = vrcp.f32 %v1542_v48  ;;  %v1610_v31 = vmul.f32 %v4092_v23, %v5255_v2  ;;  %v5584_v23 = vld [vmem:[#allocation26_spill] sm:$0xff] }
 0x876   :  { %2990 = vst [vmem:[#allocation18 + $0x68] sm:$0xff] %v2958_v7  ;;  %v3505_v54 = vpop.f32.mrb[128].mxu0  ;;  %v1544_v17 = vpop.xlane.xlu0 %1543 }
 0x877   :  { %v3506_v6 = vpop.f32.mrb[129].mxu0  ;;  %4097 = vrcp.f32 %v1544_v17 }
 0x878   :  { %v3507_v62 = vadd.f32 %v3506_v6, %v3505_v54  ;;  %v3508_v25 = vpop.f32.mrb[130].mxu0 }
 0x879   :  { %v3509_v45 = vpop.f32.mrb[131].mxu0 }
 0x87a   :  { %v2959_v28 = vadd.f32 %v3507_v62, %v1601_v52  ;;  %v3510_v19 = vadd.f32 %v3509_v45, %v3508_v25  ;;  %v1546_v45 = vpop.xlane.xlu1 %1545  ;;  %v1548_v0 = vpop.xlane.xlu0 %1547 }
 0x87b   :  { %4099 = vrcp.f32 %v1546_v45 }
 0x87c   :  { %2991 = vst [vmem:[#allocation18 + $0x70] sm:$0xff] %v2959_v28  ;;  %v2960_v60 = vadd.f32 %v3510_v19, %v1602_v1  ;;  %4101 = vrcp.f32 %v1548_v0 }
 0x87d   :  { %v4094_v19 = vpop.eup %4093 }
 0x87e   :  { %2992 = vst [vmem:[#allocation18 + $0x78] sm:$0xff] %v2960_v60  ;;  %v3511_v29 = vpop.f32.mrb[132].mxu0  ;;  %v1611_v15 = vmul.f32 %v4094_v19, %v5257_v40  ;;  %v1552_v47 = vpop.xlane.xlu0 %1551 }
 0x87f   :  { %v3512_v3 = vpop.f32.mrb[133].mxu0  ;;  %v4096_v36 = vpop.eup %4095 }
 0x880   :  { %v3513_v49 = vadd.f32 %v3512_v3, %v3511_v29  ;;  %v3514_v10 = vpop.f32.mrb[134].mxu0  ;;  %v1612_v2 = vmul.f32 %v4096_v36, %v5262_v9 }
 0x881   :  { %v3515_v5 = vpop.f32.mrb[135].mxu0 }
 0x882   :  { %v2961_v56 = vadd.f32 %v3513_v49, %v1603_v38  ;;  %v3516_v46 = vadd.f32 %v3515_v5, %v3514_v10  ;;  %v1550_v49 = vpop.xlane.xlu1 %1549 }
 0x883   :  { %4103 = vrcp.f32 %v1550_v49 }
 0x884   :  { %2993 = vst [vmem:[#allocation18 + $0x80] sm:$0xff] %v2961_v56  ;;  %v2962_v24 = vadd.f32 %v3516_v46, %v1604_v41  ;;  %v4098_v56 = vpop.eup %4097  ;;  %4105 = vrcp.f32 %v1552_v47 }
 0x885   :  { %v4100_v46 = vpop.eup %4099  ;;  %v1613_v40 = vmul.f32 %v4098_v56, %v5264_v30 }
 0x886   :  { %2994 = vst [vmem:[#allocation18 + $0x88] sm:$0xff] %v2962_v24  ;;  %v3517_v4 = vpop.f32.mrb[136].mxu0  ;;  %v1554_v55 = vpop.xlane.xlu1 %1553  ;;  %v1614_v9 = vmul.f32 %v4100_v46, %v5268_v21 }
 0x887   :  { %v3518_v13 = vpop.f32.mrb[137].mxu0  ;;  %4107 = vrcp.f32 %v1554_v55 }
 0x888   :  { %v3519_v20 = vadd.f32 %v3518_v13, %v3517_v4  ;;  %v3520_v43 = vpop.f32.mrb[138].mxu0 }
 0x889   :  { %v3521_v33 = vpop.f32.mrb[139].mxu0 }
 0x88a   :  { %v2963_v44 = vadd.f32 %v3519_v20, %v1605_v32  ;;  %v3522_v61 = vadd.f32 %v3521_v33, %v3520_v43  ;;  %v4102_v33 = vpop.eup %4101 }
 0x88c   :  { %2995 = vst [vmem:[#allocation18 + $0x90] sm:$0xff] %v2963_v44  ;;  %v2964_v34 = vadd.f32 %v3522_v61, %v1606_v59  ;;  %v5581_v61 = vld [vmem:[#allocation39_spill] sm:$0xff] }
 0x88d   :  { %v4104_v44 = vpop.eup %4103 }
 0x88e   :  { %2996 = vst [vmem:[#allocation18 + $0x98] sm:$0xff] %v2964_v34  ;;  %v3523_v50 = vpop.f32.mrb[140].mxu0  ;;  %v1615_v34 = vmul.f32 %v4102_v33, %v5581_v61 }
 0x88f   :  { %v3524_v39 = vpop.f32.mrb[141].mxu0 }
 0x890   :  { %v3525_v12 = vadd.f32 %v3524_v39, %v3523_v50  ;;  %v3526_v42 = vpop.f32.mrb[142].mxu0  ;;  %v5582_v39 = vld [vmem:[#allocation40_spill] sm:$0xff] }
 0x891   :  { %v3527_v35 = vpop.f32.mrb[143].mxu0  ;;  %v1616_v22 = vmul.f32 %v4104_v44, %v5582_v39 }
 0x892   :  { %v2965_v8 = vadd.f32 %v3525_v12, %v1607_v27  ;;  %v3528_v63 = vadd.f32 %v3527_v35, %v3526_v42  ;;  %v4106_v12 = vpop.eup %4105 }
 0x893   :  { %v4108_v35 = vpop.eup %4107 }
 0x894   :  { %2997 = vst [vmem:[#allocation18 + $0xa0] sm:$0xff] %v2965_v8  ;;  %v2966_v7 = vadd.f32 %v3528_v63, %v1608_v14  ;;  %v5583_v8 = vld [vmem:[#allocation25_spill] sm:$0xff] }
 0x895   :  { %v1617_v14 = vmul.f32 %v4106_v12, %v5583_v8 }
 0x896   :  { %2998 = vst [vmem:[#allocation18 + $0xa8] sm:$0xff] %v2966_v7  ;;  %v3529_v54 = vpop.f32.mrb[144].mxu0 }
 0x897   :  { %v3530_v6 = vpop.f32.mrb[145].mxu0 }
 0x898   :  { %v3531_v52 = vadd.f32 %v3530_v6, %v3529_v54  ;;  %v3532_v62 = vpop.f32.mrb[146].mxu0  ;;  %v1618_v6 = vmul.f32 %v4108_v35, %v5584_v23 }
 0x899   :  { %v3533_v25 = vpop.f32.mrb[147].mxu0 }
 0x89a   :  { %v2967_v53 = vadd.f32 %v3531_v52, %v1609_v58  ;;  %v3534_v28 = vadd.f32 %v3533_v25, %v3532_v62 }
 0x89c   :  { %2999 = vst [vmem:[#allocation18 + $0xb0] sm:$0xff] %v2967_v53  ;;  %v2968_v1 = vadd.f32 %v3534_v28, %v1610_v31 }
 0x89e   :  { %3000 = vst [vmem:[#allocation18 + $0xb8] sm:$0xff] %v2968_v1  ;;  %v3535_v60 = vpop.f32.mrb[148].mxu0 }
 0x89f   :  { %v3536_v29 = vpop.f32.mrb[149].mxu0 }
 0x8a0   :  { %v3537_v3 = vadd.f32 %v3536_v29, %v3535_v60  ;;  %v3538_v18 = vpop.f32.mrb[150].mxu0 }
 0x8a1   :  { %v3539_v38 = vpop.f32.mrb[151].mxu0 }
 0x8a2   :  { %v2969_v10 = vadd.f32 %v3537_v3, %v1611_v15  ;;  %v3540_v5 = vadd.f32 %v3539_v38, %v3538_v18 }
 0x8a4   :  { %3001 = vst [vmem:[#allocation18 + $0xc0] sm:$0xff] %v2969_v10  ;;  %v2970_v11 = vadd.f32 %v3540_v5, %v1612_v2 }
 0x8a6   :  { %3002 = vst [vmem:[#allocation18 + $0xc8] sm:$0xff] %v2970_v11  ;;  %v3541_v41 = vpop.f32.mrb[152].mxu0 }
 0x8a7   :  { %v3542_v24 = vpop.f32.mrb[153].mxu0 }
 0x8a8   :  { %v3543_v4 = vadd.f32 %v3542_v24, %v3541_v41  ;;  %v3544_v51 = vpop.f32.mrb[154].mxu0 }
 0x8a9   :  { %v3545_v13 = vpop.f32.mrb[155].mxu0 }
 0x8aa   :  { %v2971_v32 = vadd.f32 %v3543_v4, %v1613_v40  ;;  %v3546_v20 = vadd.f32 %v3545_v13, %v3544_v51 }
 0x8ac   :  { %3003 = vst [vmem:[#allocation18 + $0xd0] sm:$0xff] %v2971_v32  ;;  %v2972_v43 = vadd.f32 %v3546_v20, %v1614_v9 }
 0x8ae   :  { %3004 = vst [vmem:[#allocation18 + $0xd8] sm:$0xff] %v2972_v43  ;;  %v3547_v57 = vpop.f32.mrb[156].mxu0 }
 0x8af   :  { %v3548_v59 = vpop.f32.mrb[157].mxu0 }
 0x8b0   :  { %v3549_v30 = vadd.f32 %v3548_v59, %v3547_v57  ;;  %v3550_v37 = vpop.f32.mrb[158].mxu0 }
 0x8b1   :  { %v3551_v50 = vpop.f32.mrb[159].mxu0 }
 0x8b2   :  { %v2973_v16 = vadd.f32 %v3549_v30, %v1615_v34  ;;  %v3552_v27 = vadd.f32 %v3551_v50, %v3550_v37 }
 0x8b4   :  { %3005 = vst [vmem:[#allocation18 + $0xe0] sm:$0xff] %v2973_v16  ;;  %v2974_v21 = vadd.f32 %v3552_v27, %v1616_v22 }
 0x8b6   :  { %3006 = vst [vmem:[#allocation18 + $0xe8] sm:$0xff] %v2974_v21  ;;  %v3553_v42 = vpop.f32.mrb[160].mxu0 }
 0x8b7   :  { %v3554_v48 = vpop.f32.mrb[161].mxu0 }
 0x8b8   :  { %v3555_v63 = vadd.f32 %v3554_v48, %v3553_v42  ;;  %v3556_v7 = vpop.f32.mrb[162].mxu0 }
 0x8b9   :  { %v3557_v26 = vpop.f32.mrb[163].mxu0 }
 0x8ba   :  { %v2975_v54 = vadd.f32 %v3555_v63, %v1617_v14  ;;  %v3558_v17 = vadd.f32 %v3557_v26, %v3556_v7 }
 0x8bc   :  { %3007 = vst [vmem:[#allocation18 + $0xf0] sm:$0xff] %v2975_v54  ;;  %v2976_v58 = vadd.f32 %v3558_v17, %v1618_v6 }
 0x8be   :  { %3008 = vst [vmem:[#allocation18 + $0xf8] sm:$0xff] %v2976_v58 }
 0x8bf   :  { %4323 = shalt.err (!%p4320_p6)
}
 0x8c0   :  { %s4324_s27 = scalar_lea.hbm %s5502_s10, 4096 }
 0x8c1   :  { %p4325_p7 = scmp.ne.s32.totalorder %s5502_s10, %s4324_s27  ;;  %p4328_p8 = scmp.lt.u32.totalorder %s4324_s27, %s5502_s10 }
 0x8c3   :  { %p4330_p9 = pnand %p4328_p8, %p4325_p7 }
 0x8c5   :  { %4333 = shalt.err (!%p4330_p9)
}
 0x8c6   :  { %3020 = dma.vmem_to_hbm [thread:$0]  %s3015_s25, 4096, %s5502_s10, [#allocation5], %s4347_s23, %s4347_s23, %s4348_s24  }
 0x8c7   :  { %4344 = dma.done.wait [#allocation5], 4096  }
 0x8c8   :  { %4345 = vsyncadd [#allocation5], 4294963200 }
 0x8c9   :  { %3024 = vsyncpa [#allocation4], 1 }
 0x8ca   :  { %3025 = vsyncpa [#allocation7], 1 }
 0x8cb   :  { %3026 = vsyncpa [#allocation10], 1 }
 0x8cc   :  { %3027 = vsyncpa [#allocation13], 1 }
 0x8cd   :  { %3028 = vsyncpa [#allocation16], 1 }
 0x8ce   :  { %3029 = vsyncpa [#allocation5], 1 }

</bundles_post_ra>
